<compile_context>
chip_gen: v7x
topology: tpu7x:2x2x1
jax: 0.10.0
libtpu: 0.0.40
codegen_flags: <defaults>
</compile_context>

<pallas_src>
import functools
import math

import jax
import jax.numpy as jnp
import numpy as np
from jax.experimental import pallas as pl
from jax.experimental.pallas import tpu as pltpu

# ----------------------------- model config -----------------------------------
HIDDEN = 32          # args.hidden_dim
NUM_HEADS = 4
HEAD_DIM = HIDDEN // NUM_HEADS
INTERMEDIATE = 64
NUM_LAYERS = 2
VOCAB = 100
MAX_POS = 32
TYPE_VOCAB = 2
NUM_TAGS = 2         # args.num_tags
CLASS_NUM = 2        # args.class_num
ALPHA_RATIONLE = 0.5 # args.alpha_rationle
MASK_TOKEN_ID = 99   # tokenizer.mask_token_id (synthetic)
LN_EPS = 1e-12
NEG_INF = -1e9

BATCH = 2
SEQ = 8

_VMEM = pl.BlockSpec(memory_space=pltpu.MemorySpace.VMEM)


# ----------------------------- in-kernel helpers --------------------------------
def _ln(x, g, b, eps):
    mean = jnp.mean(x, axis=-1, keepdims=True)
    var = jnp.mean((x - mean) ** 2, axis=-1, keepdims=True)
    return (x - mean) * jax.lax.rsqrt(var + eps) * g + b


# ----------------------------- the single fused kernel ---------------------------
def _forward_kernel(
        # activations / precomputed glue
        emb_ref, pt_ref, mask_emb_ref, emb_g_ref, emb_b_ref,
        amask_ref, special_ref, bias_s_ref, bias_p_ref, cls_sel_ref,
        # stacked per-layer encoder weights (leading L axis)
        qkv_w_ref, qkv_b_ref, ao_w_ref, ao_b_ref, ln1_g_ref, ln1_b_ref,
        i_w_ref, i_b_ref, o_w_ref, o_b_ref, ln2_g_ref, ln2_b_ref,
        # heads
        x2z_w_ref, x2z_b_ref, pool_w_ref, pool_b_ref, cls_w_ref, cls_b_ref,
        # outputs
        logits_ref, pooled_ref, rat_ref, samp_ref,
        *, num_heads, head_dim, num_layers, eps):
    H = num_heads * head_dim
    scale = 1.0 / math.sqrt(head_dim)
    bf16 = jnp.bfloat16

    def encoder(x, bias):
        """x: (M, H) f32 activation slab; bias: (M, M) additive attention bias
        (block-diagonal over batch + key-padding), shared by every head/layer."""
        for l in range(num_layers):                       # static unroll over layers
            xb = x.astype(bf16)
            qkv = (jnp.dot(xb, qkv_w_ref[l], preferred_element_type=jnp.float32)
                   + qkv_b_ref[l])                        # (M, 3H) fused Q|K|V GEMM
            ctx_heads = []
            for h in range(num_heads):                    # static unroll over heads
                c0 = h * head_dim
                q = qkv[:, c0:c0 + head_dim].astype(bf16)
                k = qkv[:, H + c0:H + c0 + head_dim].astype(bf16)
                v = qkv[:, 2 * H + c0:2 * H + c0 + head_dim].astype(bf16)
                # one (M,Dh)x(Dh,M) score matmul over ALL batches at once
                s = jax.lax.dot_general(q, k, (((1,), (1,)), ((), ())),
                                        preferred_element_type=jnp.float32)
                s = s * scale + bias
                s = s - jnp.max(s, axis=-1, keepdims=True)
                p = jnp.exp(s)
                p = p * pl.reciprocal(jnp.sum(p, axis=-1, keepdims=True), approx=True)
                ctx_heads.append(jnp.dot(p.astype(bf16), v,
                                         preferred_element_type=jnp.float32))
            # lane-concat per-head contexts -> ONE output-projection GEMM
            ctx = jnp.concatenate(ctx_heads, axis=-1)                        # (M, H)
            attn = (jnp.dot(ctx.astype(bf16), ao_w_ref[l],
                            preferred_element_type=jnp.float32) + ao_b_ref[l])
            x1 = _ln(x + attn, ln1_g_ref[l], ln1_b_ref[l], eps)
            inter = jax.nn.gelu(
                jnp.dot(x1.astype(bf16), i_w_ref[l],
                        preferred_element_type=jnp.float32) + i_b_ref[l],
                approximate=True)
            ffn = (jnp.dot(inter.astype(bf16), o_w_ref[l],
                           preferred_element_type=jnp.float32) + o_b_ref[l])
            x = _ln(x1 + ffn, ln2_g_ref[l], ln2_b_ref[l], eps)
        return x

    emb_g = emb_g_ref[...]
    emb_b = emb_b_ref[...]
    embeds = emb_ref[...]                                  # (Ms, H) flattened embeds
    pt = pt_ref[...]                                       # (Ms, H) pos+type, tiled

    # ---------------- selector pass ----------------
    x0 = _ln(embeds + pt, emb_g, emb_b, eps)
    sel = encoder(x0, bias_s_ref[...])                     # (Ms, H)
    feats = (jnp.dot(sel.astype(bf16), x2z_w_ref[...],
                     preferred_element_type=jnp.float32) + x2z_b_ref[...])   # (Ms, 2)
    # argmax over NUM_TAGS=2 == (feats[:,1] > feats[:,0])
    rat = (feats[:, 1:2] > feats[:, 0:1]).astype(jnp.float32)                # (Ms, 1)
    sampled = rat * amask_ref[...]
    sampled = 1.0 - (1.0 - sampled) * (1.0 - special_ref[...])
    rat_ref[...] = rat
    samp_ref[...] = sampled

    # ---------------- predictor + non-rationale passes (stacked 2B batch) ----------
    m_emb = mask_emb_ref[...]                              # (1, H)
    masked_e = embeds * sampled + m_emb * (1.0 - sampled)
    nonrat_e = m_emb * sampled + embeds * (1.0 - sampled)
    xp0 = jnp.concatenate([_ln(masked_e + pt, emb_g, emb_b, eps),
                           _ln(nonrat_e + pt, emb_g, emb_b, eps)], axis=0)   # (Mp, H)
    pred = encoder(xp0, bias_p_ref[...])                   # (Mp, H)
    # CLS-row extraction via one-hot matmul gather (no strided sublane slicing)
    cls_x = jnp.dot(cls_sel_ref[...], pred.astype(bf16),
                    preferred_element_type=jnp.float32)    # (2B, H)
    pooled = jnp.tanh(jnp.dot(cls_x.astype(bf16), pool_w_ref[...],
                              preferred_element_type=jnp.float32) + pool_b_ref[...])
    pooled_ref[...] = pooled
    logits_ref[...] = (jnp.dot(pooled.astype(bf16), cls_w_ref[...],
                               preferred_element_type=jnp.float32) + cls_b_ref[...])


def fused_forward(params, embeds_flat, pt_flat, mask_emb, amask_flat, special_flat,
                  bias_s, bias_p, cls_sel, batch, seq):
    Ms = batch * seq
    Mp = 2 * batch * seq
    kernel = functools.partial(_forward_kernel, num_heads=NUM_HEADS,
                               head_dim=HEAD_DIM, num_layers=NUM_LAYERS, eps=LN_EPS)
    out_shapes = (
        jax.ShapeDtypeStruct((2 * batch, CLASS_NUM), jnp.float32),   # logits (both passes)
        jax.ShapeDtypeStruct((2 * batch, HIDDEN), jnp.float32),      # pooled (both passes)
        jax.ShapeDtypeStruct((Ms, 1), jnp.float32),                  # rationales (flat)
        jax.ShapeDtypeStruct((Ms, 1), jnp.float32),                  # sampled_seq (flat)
    )
    return pl.pallas_call(
        kernel,
        out_shape=out_shapes,
        in_specs=[_VMEM] * 28,
        out_specs=(_VMEM,) * 4,
    )(embeds_flat, pt_flat, mask_emb, params["emb_ln_g"], params["emb_ln_b"],
      amask_flat, special_flat, bias_s, bias_p, cls_sel,
      params["qkv_w"], params["qkv_b"], params["ao_w"], params["ao_b"],
      params["ln1_g"], params["ln1_b"], params["i_w"], params["i_b"],
      params["o_w"], params["o_b"], params["ln2_g"], params["ln2_b"],
      params["x2z_w"], params["x2z_b"], params["pool_w"], params["pool_b"],
      params["cls_w"], params["cls_b"])


# ----------------------------- parameter init ------------------------------------
def init_params(key):
    def w(k, shape):
        return 0.02 * jax.random.normal(k, shape, jnp.float32)

    keys = jax.random.split(key, 12)
    p = {
        "word_emb": w(keys[0], (VOCAB, HIDDEN)),
        "pos_emb": w(keys[1], (MAX_POS, HIDDEN)),
        "type_emb": w(keys[2], (TYPE_VOCAB, HIDDEN)),
        "emb_ln_g": jnp.ones((1, HIDDEN), jnp.float32),
        "emb_ln_b": jnp.zeros((1, HIDDEN), jnp.float32),
    }
    # stacked per-layer weights; matmul weights stored bf16 (MXU-native), rest f32
    p["qkv_w"] = w(keys[3], (NUM_LAYERS, HIDDEN, 3 * HIDDEN)).astype(jnp.bfloat16)
    p["qkv_b"] = jnp.zeros((NUM_LAYERS, 1, 3 * HIDDEN), jnp.float32)
    p["ao_w"] = w(keys[4], (NUM_LAYERS, HIDDEN, HIDDEN)).astype(jnp.bfloat16)
    p["ao_b"] = jnp.zeros((NUM_LAYERS, 1, HIDDEN), jnp.float32)
    p["ln1_g"] = jnp.ones((NUM_LAYERS, 1, HIDDEN), jnp.float32)
    p["ln1_b"] = jnp.zeros((NUM_LAYERS, 1, HIDDEN), jnp.float32)
    p["i_w"] = w(keys[5], (NUM_LAYERS, HIDDEN, INTERMEDIATE)).astype(jnp.bfloat16)
    p["i_b"] = jnp.zeros((NUM_LAYERS, 1, INTERMEDIATE), jnp.float32)
    p["o_w"] = w(keys[6], (NUM_LAYERS, INTERMEDIATE, HIDDEN)).astype(jnp.bfloat16)
    p["o_b"] = jnp.zeros((NUM_LAYERS, 1, HIDDEN), jnp.float32)
    p["ln2_g"] = jnp.ones((NUM_LAYERS, 1, HIDDEN), jnp.float32)
    p["ln2_b"] = jnp.zeros((NUM_LAYERS, 1, HIDDEN), jnp.float32)
    # heads of Bert_RNP2_share
    p["x2z_w"] = w(keys[7], (HIDDEN, NUM_TAGS)).astype(jnp.bfloat16)   # x_2_prob_z
    p["x2z_b"] = jnp.zeros((1, NUM_TAGS), jnp.float32)
    p["pool_w"] = w(keys[8], (HIDDEN, HIDDEN)).astype(jnp.bfloat16)    # pooler
    p["pool_b"] = jnp.zeros((1, HIDDEN), jnp.float32)
    p["cls_w"] = w(keys[9], (HIDDEN, CLASS_NUM)).astype(jnp.bfloat16)  # classifier
    p["cls_b"] = jnp.zeros((1, CLASS_NUM), jnp.float32)
    return p


# ----------------------------- JAX glue (jitted) ----------------------------------
def make_attn_bias(attention_mask):
    """(Bm, S) padding mask -> (Bm*S, Bm*S) additive bias: -inf on cross-batch
    blocks + -inf on padded key columns.  Softmax rows then only see own-batch,
    unmasked keys (same result as per-batch attention)."""
    bm, s = attention_mask.shape
    key_bias = ((1.0 - attention_mask) * NEG_INF).reshape(1, bm * s)
    blocks = jnp.kron(jnp.eye(bm, dtype=jnp.float32), jnp.ones((s, s), jnp.float32))
    return (1.0 - blocks) * NEG_INF + key_bias


def bert_rnp2_share_forward(params, input_ids, attention_mask):
    eps = 1e-8
    B, S = input_ids.shape
    H = HIDDEN
    Ms, Mp = B * S, 2 * B * S
    attention_mask = attention_mask.astype(jnp.float32)

    # layer-invariant glue, computed once per forward (fused by jit around the call)
    inputs_embeds = params["word_emb"][input_ids].reshape(Ms, H)
    pos_type = params["pos_emb"][:S] + params["type_emb"][0:1]          # (S, H)
    pt_flat = jnp.tile(pos_type, (B, 1))                                # (Ms, H)
    mask_emb = params["word_emb"][MASK_TOKEN_ID:MASK_TOKEN_ID + 1]      # (1, H)
    amask_flat = attention_mask.reshape(Ms, 1)
    special_flat = (jnp.arange(Ms) % S == 0).astype(jnp.float32).reshape(Ms, 1)
    bias_s = make_attn_bias(attention_mask)                             # (Ms, Ms)
    bias_p = make_attn_bias(jnp.concatenate([attention_mask, attention_mask], 0))
    cls_sel = jax.nn.one_hot(jnp.arange(2 * B) * S, Mp, dtype=jnp.bfloat16)

    logits_all, pooled_all, rat_flat, samp_flat = fused_forward(
        params, inputs_embeds, pt_flat, mask_emb, amask_flat, special_flat,
        bias_s, bias_p, cls_sel, B, S)

    rationales = rat_flat.reshape(B, S).astype(jnp.int32)
    sampled_seq = samp_flat.reshape(B, S)
    output = logits_all[:B]                   # classifier(pooled) of masked pass
    output_non_rationale = pooled_all[B:]     # pooled output of non-rationale pass

    # regularization terms (cheap scalar reductions, kept as JAX glue)
    infor = sampled_seq.sum(-1) / (attention_mask.sum(1) + eps) - ALPHA_RATIONLE
    infor_loss = jnp.abs(infor).mean()
    regular = jnp.abs(sampled_seq[:, 1:] - sampled_seq[:, :-1]).sum(1) / (
        attention_mask.sum(1) - 1 + eps)
    regular = regular.mean()

    return output, rationales, output_non_rationale, infor_loss, regular


# ----------------------------- main ------------------------------------------------
if __name__ == "__main__":
    key = jax.random.PRNGKey(0)
    k_param, k_ids = jax.random.split(key)
    params = init_params(k_param)

    input_ids = jax.random.randint(k_ids, (BATCH, SEQ), 0, VOCAB, dtype=jnp.int32)
    lengths = [SEQ, SEQ - 2]
    attention_mask = jnp.array(
        [[1.0 if j < lengths[i] else 0.0 for j in range(SEQ)] for i in range(BATCH)],
        dtype=jnp.float32)

    forward = jax.jit(bert_rnp2_share_forward)
    output, rationales, output_non_rationale, infor_loss, regular = forward(
        params, input_ids, attention_mask)
    jax.block_until_ready((output, rationales, output_non_rationale,
                           infor_loss, regular))

    # rationale_mask: host-side ragged list, like the PyTorch eval branch
    rat_np = np.asarray(rationales)
    mask_len = np.asarray(attention_mask.sum(-1)).astype(int)
    rationale_mask = [rat_np[i, :mask_len[i]] for i in range(BATCH)]

    assert output.shape == (BATCH, CLASS_NUM)
    assert output_non_rationale.shape == (BATCH, HIDDEN)
    assert len(rationale_mask) == BATCH
    assert np.isfinite(np.asarray(output)).all()

    print("KERNEL_OK")
</pallas_src>

<mosaic_0001>
module attributes {stable_mosaic.version = 11 : i64} {
  func.func @_forward_kernel(%arg0: memref<16x32xf32, #tpu.memory_space<vmem>>, %arg1: memref<16x32xf32, #tpu.memory_space<vmem>>, %arg2: memref<1x32xf32, #tpu.memory_space<vmem>>, %arg3: memref<1x32xf32, #tpu.memory_space<vmem>>, %arg4: memref<1x32xf32, #tpu.memory_space<vmem>>, %arg5: memref<16x1xf32, #tpu.memory_space<vmem>>, %arg6: memref<16x1xf32, #tpu.memory_space<vmem>>, %arg7: memref<16x16xf32, #tpu.memory_space<vmem>>, %arg8: memref<32x32xf32, #tpu.memory_space<vmem>>, %arg9: memref<4x32xbf16, #tpu.memory_space<vmem>>, %arg10: memref<2x32x96xbf16, #tpu.memory_space<vmem>>, %arg11: memref<2x1x96xf32, #tpu.memory_space<vmem>>, %arg12: memref<2x32x32xbf16, #tpu.memory_space<vmem>>, %arg13: memref<2x1x32xf32, #tpu.memory_space<vmem>>, %arg14: memref<2x1x32xf32, #tpu.memory_space<vmem>>, %arg15: memref<2x1x32xf32, #tpu.memory_space<vmem>>, %arg16: memref<2x32x64xbf16, #tpu.memory_space<vmem>>, %arg17: memref<2x1x64xf32, #tpu.memory_space<vmem>>, %arg18: memref<2x64x32xbf16, #tpu.memory_space<vmem>>, %arg19: memref<2x1x32xf32, #tpu.memory_space<vmem>>, %arg20: memref<2x1x32xf32, #tpu.memory_space<vmem>>, %arg21: memref<2x1x32xf32, #tpu.memory_space<vmem>>, %arg22: memref<32x2xbf16, #tpu.memory_space<vmem>>, %arg23: memref<1x2xf32, #tpu.memory_space<vmem>>, %arg24: memref<32x32xbf16, #tpu.memory_space<vmem>>, %arg25: memref<1x32xf32, #tpu.memory_space<vmem>>, %arg26: memref<32x2xbf16, #tpu.memory_space<vmem>>, %arg27: memref<1x2xf32, #tpu.memory_space<vmem>>, %arg28: memref<4x2xf32, #tpu.memory_space<vmem>>, %arg29: memref<4x32xf32, #tpu.memory_space<vmem>>, %arg30: memref<16x1xf32, #tpu.memory_space<vmem>>, %arg31: memref<16x1xf32, #tpu.memory_space<vmem>>) attributes {dimension_semantics = [], scalar_prefetch = 0 : i64, scratch_operands = 0 : i64, tpu.core_type = #tpu.core_type<tc>} {
    %c0 = arith.constant 0 : index
    %c0_0 = arith.constant 0 : index
    %0 = vector.load %arg3[%c0, %c0_0] : memref<1x32xf32, #tpu.memory_space<vmem>>, vector<1x32xf32>
    %c0_1 = arith.constant 0 : index
    %c0_2 = arith.constant 0 : index
    %1 = vector.load %arg4[%c0_1, %c0_2] : memref<1x32xf32, #tpu.memory_space<vmem>>, vector<1x32xf32>
    %c0_3 = arith.constant 0 : index
    %c0_4 = arith.constant 0 : index
    %2 = vector.load %arg0[%c0_3, %c0_4] : memref<16x32xf32, #tpu.memory_space<vmem>>, vector<16x32xf32>
    %c0_5 = arith.constant 0 : index
    %c0_6 = arith.constant 0 : index
    %3 = vector.load %arg1[%c0_5, %c0_6] : memref<16x32xf32, #tpu.memory_space<vmem>>, vector<16x32xf32>
    %4 = arith.addf %2, %3 : vector<16x32xf32>
    %cst = arith.constant dense<0.000000e+00> : vector<16xf32>
    %5 = vector.multi_reduction <add>, %4, %cst [1] : vector<16x32xf32> to vector<16xf32>
    %6 = vector.shape_cast %5 : vector<16xf32> to vector<16x1xf32>
    %cst_7 = arith.constant 3.200000e+01 : f32
    %7 = vector.broadcast %cst_7 : f32 to vector<16x1xf32>
    %8 = arith.divf %6, %7 : vector<16x1xf32>
    %9 = vector.broadcast %8 : vector<16x1xf32> to vector<16x32xf32>
    %10 = arith.subf %4, %9 : vector<16x32xf32>
    %11 = arith.mulf %10, %10 : vector<16x32xf32>
    %cst_8 = arith.constant dense<0.000000e+00> : vector<16xf32>
    %12 = vector.multi_reduction <add>, %11, %cst_8 [1] : vector<16x32xf32> to vector<16xf32>
    %13 = vector.shape_cast %12 : vector<16xf32> to vector<16x1xf32>
    %cst_9 = arith.constant 3.200000e+01 : f32
    %14 = vector.broadcast %cst_9 : f32 to vector<16x1xf32>
    %15 = arith.divf %13, %14 : vector<16x1xf32>
    %16 = vector.broadcast %8 : vector<16x1xf32> to vector<16x32xf32>
    %17 = arith.subf %4, %16 : vector<16x32xf32>
    %cst_10 = arith.constant 9.99999996E-13 : f32
    %18 = vector.broadcast %cst_10 : f32 to vector<16x1xf32>
    %19 = arith.addf %15, %18 : vector<16x1xf32>
    %20 = math.rsqrt %19 : vector<16x1xf32>
    %21 = vector.broadcast %20 : vector<16x1xf32> to vector<16x32xf32>
    %22 = arith.mulf %17, %21 : vector<16x32xf32>
    %23 = vector.broadcast %0 : vector<1x32xf32> to vector<16x32xf32>
    %24 = arith.mulf %22, %23 : vector<16x32xf32>
    %25 = vector.broadcast %1 : vector<1x32xf32> to vector<16x32xf32>
    %26 = arith.addf %24, %25 : vector<16x32xf32>
    %c0_11 = arith.constant 0 : index
    %c0_12 = arith.constant 0 : index
    %27 = vector.load %arg7[%c0_11, %c0_12] : memref<16x16xf32, #tpu.memory_space<vmem>>, vector<16x16xf32>
    %28 = arith.truncf %26 : vector<16x32xf32> to vector<16x32xbf16>
    %c0_13 = arith.constant 0 : index
    %c0_14 = arith.constant 0 : index
    %c0_15 = arith.constant 0 : index
    %29 = vector.load %arg10[%c0_13, %c0_14, %c0_15] : memref<2x32x96xbf16, #tpu.memory_space<vmem>>, vector<1x32x96xbf16>
    %30 = vector.shape_cast %29 : vector<1x32x96xbf16> to vector<32x96xbf16>
    %cst_16 = arith.constant dense<0.000000e+00> : vector<16x96xf32>
    %31 = tpu.matmul %28, %30, %cst_16 {dimension_numbers = #tpu.dot_dimension_numbers<[1], [0], [0], [1], [0, 0, 1, 1], [], []>} : vector<16x32xbf16>, vector<32x96xbf16>, vector<16x96xf32> -> vector<16x96xf32>
    %c0_17 = arith.constant 0 : index
    %c0_18 = arith.constant 0 : index
    %c0_19 = arith.constant 0 : index
    %32 = vector.load %arg11[%c0_17, %c0_18, %c0_19] : memref<2x1x96xf32, #tpu.memory_space<vmem>>, vector<1x1x96xf32>
    %33 = vector.shape_cast %32 : vector<1x1x96xf32> to vector<1x96xf32>
    %34 = vector.broadcast %33 : vector<1x96xf32> to vector<16x96xf32>
    %35 = arith.addf %31, %34 : vector<16x96xf32>
    %36 = vector.extract_strided_slice %35 {offsets = [0, 0], sizes = [16, 8], strides = [1, 1]} : vector<16x96xf32> to vector<16x8xf32>
    %37 = arith.truncf %36 : vector<16x8xf32> to vector<16x8xbf16>
    %38 = vector.extract_strided_slice %35 {offsets = [0, 32], sizes = [16, 8], strides = [1, 1]} : vector<16x96xf32> to vector<16x8xf32>
    %39 = arith.truncf %38 : vector<16x8xf32> to vector<16x8xbf16>
    %40 = vector.extract_strided_slice %35 {offsets = [0, 64], sizes = [16, 8], strides = [1, 1]} : vector<16x96xf32> to vector<16x8xf32>
    %41 = arith.truncf %40 : vector<16x8xf32> to vector<16x8xbf16>
    %cst_20 = arith.constant dense<0.000000e+00> : vector<16x16xf32>
    %42 = tpu.matmul %37, %39, %cst_20 {dimension_numbers = #tpu.dot_dimension_numbers<[1], [1], [0], [0], [0, 0, 1, 0], [], []>} : vector<16x8xbf16>, vector<16x8xbf16>, vector<16x16xf32> -> vector<16x16xf32>
    %cst_21 = arith.constant 0.353553385 : f32
    %43 = vector.broadcast %cst_21 : f32 to vector<16x16xf32>
    %44 = arith.mulf %42, %43 : vector<16x16xf32>
    %45 = arith.addf %44, %27 : vector<16x16xf32>
    %cst_22 = arith.constant dense<0xFF800000> : vector<16xf32>
    %46 = vector.multi_reduction <maximumf>, %45, %cst_22 [1] : vector<16x16xf32> to vector<16xf32>
    %47 = vector.shape_cast %46 : vector<16xf32> to vector<16x1xf32>
    %48 = vector.broadcast %47 : vector<16x1xf32> to vector<16x16xf32>
    %49 = arith.subf %45, %48 : vector<16x16xf32>
    %50 = math.exp %49 : vector<16x16xf32>
    %cst_23 = arith.constant dense<0.000000e+00> : vector<16xf32>
    %51 = vector.multi_reduction <add>, %50, %cst_23 [1] : vector<16x16xf32> to vector<16xf32>
    %52 = vector.shape_cast %51 : vector<16xf32> to vector<16x1xf32>
    %53 = tpu.reciprocal %52 {approx = true} : vector<16x1xf32> -> vector<16x1xf32>
    %54 = vector.broadcast %53 : vector<16x1xf32> to vector<16x16xf32>
    %55 = arith.mulf %50, %54 : vector<16x16xf32>
    %56 = arith.truncf %55 : vector<16x16xf32> to vector<16x16xbf16>
    %cst_24 = arith.constant dense<0.000000e+00> : vector<16x8xf32>
    %57 = tpu.matmul %56, %41, %cst_24 {dimension_numbers = #tpu.dot_dimension_numbers<[1], [0], [0], [1], [0, 0, 1, 1], [], []>} : vector<16x16xbf16>, vector<16x8xbf16>, vector<16x8xf32> -> vector<16x8xf32>
    %58 = vector.extract_strided_slice %35 {offsets = [0, 8], sizes = [16, 8], strides = [1, 1]} : vector<16x96xf32> to vector<16x8xf32>
    %59 = arith.truncf %58 : vector<16x8xf32> to vector<16x8xbf16>
    %60 = vector.extract_strided_slice %35 {offsets = [0, 40], sizes = [16, 8], strides = [1, 1]} : vector<16x96xf32> to vector<16x8xf32>
    %61 = arith.truncf %60 : vector<16x8xf32> to vector<16x8xbf16>
    %62 = vector.extract_strided_slice %35 {offsets = [0, 72], sizes = [16, 8], strides = [1, 1]} : vector<16x96xf32> to vector<16x8xf32>
    %63 = arith.truncf %62 : vector<16x8xf32> to vector<16x8xbf16>
    %cst_25 = arith.constant dense<0.000000e+00> : vector<16x16xf32>
    %64 = tpu.matmul %59, %61, %cst_25 {dimension_numbers = #tpu.dot_dimension_numbers<[1], [1], [0], [0], [0, 0, 1, 0], [], []>} : vector<16x8xbf16>, vector<16x8xbf16>, vector<16x16xf32> -> vector<16x16xf32>
    %cst_26 = arith.constant 0.353553385 : f32
    %65 = vector.broadcast %cst_26 : f32 to vector<16x16xf32>
    %66 = arith.mulf %64, %65 : vector<16x16xf32>
    %67 = arith.addf %66, %27 : vector<16x16xf32>
    %cst_27 = arith.constant dense<0xFF800000> : vector<16xf32>
    %68 = vector.multi_reduction <maximumf>, %67, %cst_27 [1] : vector<16x16xf32> to vector<16xf32>
    %69 = vector.shape_cast %68 : vector<16xf32> to vector<16x1xf32>
    %70 = vector.broadcast %69 : vector<16x1xf32> to vector<16x16xf32>
    %71 = arith.subf %67, %70 : vector<16x16xf32>
    %72 = math.exp %71 : vector<16x16xf32>
    %cst_28 = arith.constant dense<0.000000e+00> : vector<16xf32>
    %73 = vector.multi_reduction <add>, %72, %cst_28 [1] : vector<16x16xf32> to vector<16xf32>
    %74 = vector.shape_cast %73 : vector<16xf32> to vector<16x1xf32>
    %75 = tpu.reciprocal %74 {approx = true} : vector<16x1xf32> -> vector<16x1xf32>
    %76 = vector.broadcast %75 : vector<16x1xf32> to vector<16x16xf32>
    %77 = arith.mulf %72, %76 : vector<16x16xf32>
    %78 = arith.truncf %77 : vector<16x16xf32> to vector<16x16xbf16>
    %cst_29 = arith.constant dense<0.000000e+00> : vector<16x8xf32>
    %79 = tpu.matmul %78, %63, %cst_29 {dimension_numbers = #tpu.dot_dimension_numbers<[1], [0], [0], [1], [0, 0, 1, 1], [], []>} : vector<16x16xbf16>, vector<16x8xbf16>, vector<16x8xf32> -> vector<16x8xf32>
    %80 = vector.extract_strided_slice %35 {offsets = [0, 16], sizes = [16, 8], strides = [1, 1]} : vector<16x96xf32> to vector<16x8xf32>
    %81 = arith.truncf %80 : vector<16x8xf32> to vector<16x8xbf16>
    %82 = vector.extract_strided_slice %35 {offsets = [0, 48], sizes = [16, 8], strides = [1, 1]} : vector<16x96xf32> to vector<16x8xf32>
    %83 = arith.truncf %82 : vector<16x8xf32> to vector<16x8xbf16>
    %84 = vector.extract_strided_slice %35 {offsets = [0, 80], sizes = [16, 8], strides = [1, 1]} : vector<16x96xf32> to vector<16x8xf32>
    %85 = arith.truncf %84 : vector<16x8xf32> to vector<16x8xbf16>
    %cst_30 = arith.constant dense<0.000000e+00> : vector<16x16xf32>
    %86 = tpu.matmul %81, %83, %cst_30 {dimension_numbers = #tpu.dot_dimension_numbers<[1], [1], [0], [0], [0, 0, 1, 0], [], []>} : vector<16x8xbf16>, vector<16x8xbf16>, vector<16x16xf32> -> vector<16x16xf32>
    %cst_31 = arith.constant 0.353553385 : f32
    %87 = vector.broadcast %cst_31 : f32 to vector<16x16xf32>
    %88 = arith.mulf %86, %87 : vector<16x16xf32>
    %89 = arith.addf %88, %27 : vector<16x16xf32>
    %cst_32 = arith.constant dense<0xFF800000> : vector<16xf32>
    %90 = vector.multi_reduction <maximumf>, %89, %cst_32 [1] : vector<16x16xf32> to vector<16xf32>
    %91 = vector.shape_cast %90 : vector<16xf32> to vector<16x1xf32>
    %92 = vector.broadcast %91 : vector<16x1xf32> to vector<16x16xf32>
    %93 = arith.subf %89, %92 : vector<16x16xf32>
    %94 = math.exp %93 : vector<16x16xf32>
    %cst_33 = arith.constant dense<0.000000e+00> : vector<16xf32>
    %95 = vector.multi_reduction <add>, %94, %cst_33 [1] : vector<16x16xf32> to vector<16xf32>
    %96 = vector.shape_cast %95 : vector<16xf32> to vector<16x1xf32>
    %97 = tpu.reciprocal %96 {approx = true} : vector<16x1xf32> -> vector<16x1xf32>
    %98 = vector.broadcast %97 : vector<16x1xf32> to vector<16x16xf32>
    %99 = arith.mulf %94, %98 : vector<16x16xf32>
    %100 = arith.truncf %99 : vector<16x16xf32> to vector<16x16xbf16>
    %cst_34 = arith.constant dense<0.000000e+00> : vector<16x8xf32>
    %101 = tpu.matmul %100, %85, %cst_34 {dimension_numbers = #tpu.dot_dimension_numbers<[1], [0], [0], [1], [0, 0, 1, 1], [], []>} : vector<16x16xbf16>, vector<16x8xbf16>, vector<16x8xf32> -> vector<16x8xf32>
    %102 = vector.extract_strided_slice %35 {offsets = [0, 24], sizes = [16, 8], strides = [1, 1]} : vector<16x96xf32> to vector<16x8xf32>
    %103 = arith.truncf %102 : vector<16x8xf32> to vector<16x8xbf16>
    %104 = vector.extract_strided_slice %35 {offsets = [0, 56], sizes = [16, 8], strides = [1, 1]} : vector<16x96xf32> to vector<16x8xf32>
    %105 = arith.truncf %104 : vector<16x8xf32> to vector<16x8xbf16>
    %106 = vector.extract_strided_slice %35 {offsets = [0, 88], sizes = [16, 8], strides = [1, 1]} : vector<16x96xf32> to vector<16x8xf32>
    %107 = arith.truncf %106 : vector<16x8xf32> to vector<16x8xbf16>
    %cst_35 = arith.constant dense<0.000000e+00> : vector<16x16xf32>
    %108 = tpu.matmul %103, %105, %cst_35 {dimension_numbers = #tpu.dot_dimension_numbers<[1], [1], [0], [0], [0, 0, 1, 0], [], []>} : vector<16x8xbf16>, vector<16x8xbf16>, vector<16x16xf32> -> vector<16x16xf32>
    %cst_36 = arith.constant 0.353553385 : f32
    %109 = vector.broadcast %cst_36 : f32 to vector<16x16xf32>
    %110 = arith.mulf %108, %109 : vector<16x16xf32>
    %111 = arith.addf %110, %27 : vector<16x16xf32>
    %cst_37 = arith.constant dense<0xFF800000> : vector<16xf32>
    %112 = vector.multi_reduction <maximumf>, %111, %cst_37 [1] : vector<16x16xf32> to vector<16xf32>
    %113 = vector.shape_cast %112 : vector<16xf32> to vector<16x1xf32>
    %114 = vector.broadcast %113 : vector<16x1xf32> to vector<16x16xf32>
    %115 = arith.subf %111, %114 : vector<16x16xf32>
    %116 = math.exp %115 : vector<16x16xf32>
    %cst_38 = arith.constant dense<0.000000e+00> : vector<16xf32>
    %117 = vector.multi_reduction <add>, %116, %cst_38 [1] : vector<16x16xf32> to vector<16xf32>
    %118 = vector.shape_cast %117 : vector<16xf32> to vector<16x1xf32>
    %119 = tpu.reciprocal %118 {approx = true} : vector<16x1xf32> -> vector<16x1xf32>
    %120 = vector.broadcast %119 : vector<16x1xf32> to vector<16x16xf32>
    %121 = arith.mulf %116, %120 : vector<16x16xf32>
    %122 = arith.truncf %121 : vector<16x16xf32> to vector<16x16xbf16>
    %cst_39 = arith.constant dense<0.000000e+00> : vector<16x8xf32>
    %123 = tpu.matmul %122, %107, %cst_39 {dimension_numbers = #tpu.dot_dimension_numbers<[1], [0], [0], [1], [0, 0, 1, 1], [], []>} : vector<16x16xbf16>, vector<16x8xbf16>, vector<16x8xf32> -> vector<16x8xf32>
    %124 = tpu.concatenate %57, %79, %101, %123 in 1 : vector<16x8xf32>, vector<16x8xf32>, vector<16x8xf32>, vector<16x8xf32> -> vector<16x32xf32>
    %125 = arith.truncf %124 : vector<16x32xf32> to vector<16x32xbf16>
    %c0_40 = arith.constant 0 : index
    %c0_41 = arith.constant 0 : index
    %c0_42 = arith.constant 0 : index
    %126 = vector.load %arg12[%c0_40, %c0_41, %c0_42] : memref<2x32x32xbf16, #tpu.memory_space<vmem>>, vector<1x32x32xbf16>
    %127 = vector.shape_cast %126 : vector<1x32x32xbf16> to vector<32x32xbf16>
    %cst_43 = arith.constant dense<0.000000e+00> : vector<16x32xf32>
    %128 = tpu.matmul %125, %127, %cst_43 {dimension_numbers = #tpu.dot_dimension_numbers<[1], [0], [0], [1], [0, 0, 1, 1], [], []>} : vector<16x32xbf16>, vector<32x32xbf16>, vector<16x32xf32> -> vector<16x32xf32>
    %c0_44 = arith.constant 0 : index
    %c0_45 = arith.constant 0 : index
    %c0_46 = arith.constant 0 : index
    %129 = vector.load %arg13[%c0_44, %c0_45, %c0_46] : memref<2x1x32xf32, #tpu.memory_space<vmem>>, vector<1x1x32xf32>
    %130 = vector.shape_cast %129 : vector<1x1x32xf32> to vector<1x32xf32>
    %131 = vector.broadcast %130 : vector<1x32xf32> to vector<16x32xf32>
    %132 = arith.addf %128, %131 : vector<16x32xf32>
    %133 = arith.addf %26, %132 : vector<16x32xf32>
    %c0_47 = arith.constant 0 : index
    %c0_48 = arith.constant 0 : index
    %c0_49 = arith.constant 0 : index
    %134 = vector.load %arg14[%c0_47, %c0_48, %c0_49] : memref<2x1x32xf32, #tpu.memory_space<vmem>>, vector<1x1x32xf32>
    %135 = vector.shape_cast %134 : vector<1x1x32xf32> to vector<1x32xf32>
    %c0_50 = arith.constant 0 : index
    %c0_51 = arith.constant 0 : index
    %c0_52 = arith.constant 0 : index
    %136 = vector.load %arg15[%c0_50, %c0_51, %c0_52] : memref<2x1x32xf32, #tpu.memory_space<vmem>>, vector<1x1x32xf32>
    %137 = vector.shape_cast %136 : vector<1x1x32xf32> to vector<1x32xf32>
    %cst_53 = arith.constant dense<0.000000e+00> : vector<16xf32>
    %138 = vector.multi_reduction <add>, %133, %cst_53 [1] : vector<16x32xf32> to vector<16xf32>
    %139 = vector.shape_cast %138 : vector<16xf32> to vector<16x1xf32>
    %cst_54 = arith.constant 3.200000e+01 : f32
    %140 = vector.broadcast %cst_54 : f32 to vector<16x1xf32>
    %141 = arith.divf %139, %140 : vector<16x1xf32>
    %142 = vector.broadcast %141 : vector<16x1xf32> to vector<16x32xf32>
    %143 = arith.subf %133, %142 : vector<16x32xf32>
    %144 = arith.mulf %143, %143 : vector<16x32xf32>
    %cst_55 = arith.constant dense<0.000000e+00> : vector<16xf32>
    %145 = vector.multi_reduction <add>, %144, %cst_55 [1] : vector<16x32xf32> to vector<16xf32>
    %146 = vector.shape_cast %145 : vector<16xf32> to vector<16x1xf32>
    %cst_56 = arith.constant 3.200000e+01 : f32
    %147 = vector.broadcast %cst_56 : f32 to vector<16x1xf32>
    %148 = arith.divf %146, %147 : vector<16x1xf32>
    %149 = vector.broadcast %141 : vector<16x1xf32> to vector<16x32xf32>
    %150 = arith.subf %133, %149 : vector<16x32xf32>
    %cst_57 = arith.constant 9.99999996E-13 : f32
    %151 = vector.broadcast %cst_57 : f32 to vector<16x1xf32>
    %152 = arith.addf %148, %151 : vector<16x1xf32>
    %153 = math.rsqrt %152 : vector<16x1xf32>
    %154 = vector.broadcast %153 : vector<16x1xf32> to vector<16x32xf32>
    %155 = arith.mulf %150, %154 : vector<16x32xf32>
    %156 = vector.broadcast %135 : vector<1x32xf32> to vector<16x32xf32>
    %157 = arith.mulf %155, %156 : vector<16x32xf32>
    %158 = vector.broadcast %137 : vector<1x32xf32> to vector<16x32xf32>
    %159 = arith.addf %157, %158 : vector<16x32xf32>
    %160 = arith.truncf %159 : vector<16x32xf32> to vector<16x32xbf16>
    %c0_58 = arith.constant 0 : index
    %c0_59 = arith.constant 0 : index
    %c0_60 = arith.constant 0 : index
    %161 = vector.load %arg16[%c0_58, %c0_59, %c0_60] : memref<2x32x64xbf16, #tpu.memory_space<vmem>>, vector<1x32x64xbf16>
    %162 = vector.shape_cast %161 : vector<1x32x64xbf16> to vector<32x64xbf16>
    %cst_61 = arith.constant dense<0.000000e+00> : vector<16x64xf32>
    %163 = tpu.matmul %160, %162, %cst_61 {dimension_numbers = #tpu.dot_dimension_numbers<[1], [0], [0], [1], [0, 0, 1, 1], [], []>} : vector<16x32xbf16>, vector<32x64xbf16>, vector<16x64xf32> -> vector<16x64xf32>
    %c0_62 = arith.constant 0 : index
    %c0_63 = arith.constant 0 : index
    %c0_64 = arith.constant 0 : index
    %164 = vector.load %arg17[%c0_62, %c0_63, %c0_64] : memref<2x1x64xf32, #tpu.memory_space<vmem>>, vector<1x1x64xf32>
    %165 = vector.shape_cast %164 : vector<1x1x64xf32> to vector<1x64xf32>
    %166 = vector.broadcast %165 : vector<1x64xf32> to vector<16x64xf32>
    %167 = arith.addf %163, %166 : vector<16x64xf32>
    %168 = arith.mulf %167, %167 : vector<16x64xf32>
    %169 = arith.mulf %167, %168 : vector<16x64xf32>
    %cst_65 = arith.constant 4.471500e-02 : f32
    %170 = vector.broadcast %cst_65 : f32 to vector<16x64xf32>
    %171 = arith.mulf %170, %169 : vector<16x64xf32>
    %172 = arith.addf %167, %171 : vector<16x64xf32>
    %cst_66 = arith.constant 0.797884583 : f32
    %173 = vector.broadcast %cst_66 : f32 to vector<16x64xf32>
    %174 = arith.mulf %173, %172 : vector<16x64xf32>
    %175 = math.tanh %174 : vector<16x64xf32>
    %cst_67 = arith.constant 1.000000e+00 : f32
    %176 = vector.broadcast %cst_67 : f32 to vector<16x64xf32>
    %177 = arith.addf %176, %175 : vector<16x64xf32>
    %cst_68 = arith.constant 5.000000e-01 : f32
    %178 = vector.broadcast %cst_68 : f32 to vector<16x64xf32>
    %179 = arith.mulf %178, %177 : vector<16x64xf32>
    %180 = arith.mulf %167, %179 : vector<16x64xf32>
    %181 = arith.truncf %180 : vector<16x64xf32> to vector<16x64xbf16>
    %c0_69 = arith.constant 0 : index
    %c0_70 = arith.constant 0 : index
    %c0_71 = arith.constant 0 : index
    %182 = vector.load %arg18[%c0_69, %c0_70, %c0_71] : memref<2x64x32xbf16, #tpu.memory_space<vmem>>, vector<1x64x32xbf16>
    %183 = vector.shape_cast %182 : vector<1x64x32xbf16> to vector<64x32xbf16>
    %cst_72 = arith.constant dense<0.000000e+00> : vector<16x32xf32>
    %184 = tpu.matmul %181, %183, %cst_72 {dimension_numbers = #tpu.dot_dimension_numbers<[1], [0], [0], [1], [0, 0, 1, 1], [], []>} : vector<16x64xbf16>, vector<64x32xbf16>, vector<16x32xf32> -> vector<16x32xf32>
    %c0_73 = arith.constant 0 : index
    %c0_74 = arith.constant 0 : index
    %c0_75 = arith.constant 0 : index
    %185 = vector.load %arg19[%c0_73, %c0_74, %c0_75] : memref<2x1x32xf32, #tpu.memory_space<vmem>>, vector<1x1x32xf32>
    %186 = vector.shape_cast %185 : vector<1x1x32xf32> to vector<1x32xf32>
    %187 = vector.broadcast %186 : vector<1x32xf32> to vector<16x32xf32>
    %188 = arith.addf %184, %187 : vector<16x32xf32>
    %189 = arith.addf %159, %188 : vector<16x32xf32>
    %c0_76 = arith.constant 0 : index
    %c0_77 = arith.constant 0 : index
    %c0_78 = arith.constant 0 : index
    %190 = vector.load %arg20[%c0_76, %c0_77, %c0_78] : memref<2x1x32xf32, #tpu.memory_space<vmem>>, vector<1x1x32xf32>
    %191 = vector.shape_cast %190 : vector<1x1x32xf32> to vector<1x32xf32>
    %c0_79 = arith.constant 0 : index
    %c0_80 = arith.constant 0 : index
    %c0_81 = arith.constant 0 : index
    %192 = vector.load %arg21[%c0_79, %c0_80, %c0_81] : memref<2x1x32xf32, #tpu.memory_space<vmem>>, vector<1x1x32xf32>
    %193 = vector.shape_cast %192 : vector<1x1x32xf32> to vector<1x32xf32>
    %cst_82 = arith.constant dense<0.000000e+00> : vector<16xf32>
    %194 = vector.multi_reduction <add>, %189, %cst_82 [1] : vector<16x32xf32> to vector<16xf32>
    %195 = vector.shape_cast %194 : vector<16xf32> to vector<16x1xf32>
    %cst_83 = arith.constant 3.200000e+01 : f32
    %196 = vector.broadcast %cst_83 : f32 to vector<16x1xf32>
    %197 = arith.divf %195, %196 : vector<16x1xf32>
    %198 = vector.broadcast %197 : vector<16x1xf32> to vector<16x32xf32>
    %199 = arith.subf %189, %198 : vector<16x32xf32>
    %200 = arith.mulf %199, %199 : vector<16x32xf32>
    %cst_84 = arith.constant dense<0.000000e+00> : vector<16xf32>
    %201 = vector.multi_reduction <add>, %200, %cst_84 [1] : vector<16x32xf32> to vector<16xf32>
    %202 = vector.shape_cast %201 : vector<16xf32> to vector<16x1xf32>
    %cst_85 = arith.constant 3.200000e+01 : f32
    %203 = vector.broadcast %cst_85 : f32 to vector<16x1xf32>
    %204 = arith.divf %202, %203 : vector<16x1xf32>
    %205 = vector.broadcast %197 : vector<16x1xf32> to vector<16x32xf32>
    %206 = arith.subf %189, %205 : vector<16x32xf32>
    %cst_86 = arith.constant 9.99999996E-13 : f32
    %207 = vector.broadcast %cst_86 : f32 to vector<16x1xf32>
    %208 = arith.addf %204, %207 : vector<16x1xf32>
    %209 = math.rsqrt %208 : vector<16x1xf32>
    %210 = vector.broadcast %209 : vector<16x1xf32> to vector<16x32xf32>
    %211 = arith.mulf %206, %210 : vector<16x32xf32>
    %212 = vector.broadcast %191 : vector<1x32xf32> to vector<16x32xf32>
    %213 = arith.mulf %211, %212 : vector<16x32xf32>
    %214 = vector.broadcast %193 : vector<1x32xf32> to vector<16x32xf32>
    %215 = arith.addf %213, %214 : vector<16x32xf32>
    %216 = arith.truncf %215 : vector<16x32xf32> to vector<16x32xbf16>
    %c1 = arith.constant 1 : index
    %c0_87 = arith.constant 0 : index
    %c0_88 = arith.constant 0 : index
    %217 = vector.load %arg10[%c1, %c0_87, %c0_88] : memref<2x32x96xbf16, #tpu.memory_space<vmem>>, vector<1x32x96xbf16>
    %218 = vector.shape_cast %217 : vector<1x32x96xbf16> to vector<32x96xbf16>
    %cst_89 = arith.constant dense<0.000000e+00> : vector<16x96xf32>
    %219 = tpu.matmul %216, %218, %cst_89 {dimension_numbers = #tpu.dot_dimension_numbers<[1], [0], [0], [1], [0, 0, 1, 1], [], []>} : vector<16x32xbf16>, vector<32x96xbf16>, vector<16x96xf32> -> vector<16x96xf32>
    %c1_90 = arith.constant 1 : index
    %c0_91 = arith.constant 0 : index
    %c0_92 = arith.constant 0 : index
    %220 = vector.load %arg11[%c1_90, %c0_91, %c0_92] : memref<2x1x96xf32, #tpu.memory_space<vmem>>, vector<1x1x96xf32>
    %221 = vector.shape_cast %220 : vector<1x1x96xf32> to vector<1x96xf32>
    %222 = vector.broadcast %221 : vector<1x96xf32> to vector<16x96xf32>
    %223 = arith.addf %219, %222 : vector<16x96xf32>
    %224 = vector.extract_strided_slice %223 {offsets = [0, 0], sizes = [16, 8], strides = [1, 1]} : vector<16x96xf32> to vector<16x8xf32>
    %225 = arith.truncf %224 : vector<16x8xf32> to vector<16x8xbf16>
    %226 = vector.extract_strided_slice %223 {offsets = [0, 32], sizes = [16, 8], strides = [1, 1]} : vector<16x96xf32> to vector<16x8xf32>
    %227 = arith.truncf %226 : vector<16x8xf32> to vector<16x8xbf16>
    %228 = vector.extract_strided_slice %223 {offsets = [0, 64], sizes = [16, 8], strides = [1, 1]} : vector<16x96xf32> to vector<16x8xf32>
    %229 = arith.truncf %228 : vector<16x8xf32> to vector<16x8xbf16>
    %cst_93 = arith.constant dense<0.000000e+00> : vector<16x16xf32>
    %230 = tpu.matmul %225, %227, %cst_93 {dimension_numbers = #tpu.dot_dimension_numbers<[1], [1], [0], [0], [0, 0, 1, 0], [], []>} : vector<16x8xbf16>, vector<16x8xbf16>, vector<16x16xf32> -> vector<16x16xf32>
    %cst_94 = arith.constant 0.353553385 : f32
    %231 = vector.broadcast %cst_94 : f32 to vector<16x16xf32>
    %232 = arith.mulf %230, %231 : vector<16x16xf32>
    %233 = arith.addf %232, %27 : vector<16x16xf32>
    %cst_95 = arith.constant dense<0xFF800000> : vector<16xf32>
    %234 = vector.multi_reduction <maximumf>, %233, %cst_95 [1] : vector<16x16xf32> to vector<16xf32>
    %235 = vector.shape_cast %234 : vector<16xf32> to vector<16x1xf32>
    %236 = vector.broadcast %235 : vector<16x1xf32> to vector<16x16xf32>
    %237 = arith.subf %233, %236 : vector<16x16xf32>
    %238 = math.exp %237 : vector<16x16xf32>
    %cst_96 = arith.constant dense<0.000000e+00> : vector<16xf32>
    %239 = vector.multi_reduction <add>, %238, %cst_96 [1] : vector<16x16xf32> to vector<16xf32>
    %240 = vector.shape_cast %239 : vector<16xf32> to vector<16x1xf32>
    %241 = tpu.reciprocal %240 {approx = true} : vector<16x1xf32> -> vector<16x1xf32>
    %242 = vector.broadcast %241 : vector<16x1xf32> to vector<16x16xf32>
    %243 = arith.mulf %238, %242 : vector<16x16xf32>
    %244 = arith.truncf %243 : vector<16x16xf32> to vector<16x16xbf16>
    %cst_97 = arith.constant dense<0.000000e+00> : vector<16x8xf32>
    %245 = tpu.matmul %244, %229, %cst_97 {dimension_numbers = #tpu.dot_dimension_numbers<[1], [0], [0], [1], [0, 0, 1, 1], [], []>} : vector<16x16xbf16>, vector<16x8xbf16>, vector<16x8xf32> -> vector<16x8xf32>
    %246 = vector.extract_strided_slice %223 {offsets = [0, 8], sizes = [16, 8], strides = [1, 1]} : vector<16x96xf32> to vector<16x8xf32>
    %247 = arith.truncf %246 : vector<16x8xf32> to vector<16x8xbf16>
    %248 = vector.extract_strided_slice %223 {offsets = [0, 40], sizes = [16, 8], strides = [1, 1]} : vector<16x96xf32> to vector<16x8xf32>
    %249 = arith.truncf %248 : vector<16x8xf32> to vector<16x8xbf16>
    %250 = vector.extract_strided_slice %223 {offsets = [0, 72], sizes = [16, 8], strides = [1, 1]} : vector<16x96xf32> to vector<16x8xf32>
    %251 = arith.truncf %250 : vector<16x8xf32> to vector<16x8xbf16>
    %cst_98 = arith.constant dense<0.000000e+00> : vector<16x16xf32>
    %252 = tpu.matmul %247, %249, %cst_98 {dimension_numbers = #tpu.dot_dimension_numbers<[1], [1], [0], [0], [0, 0, 1, 0], [], []>} : vector<16x8xbf16>, vector<16x8xbf16>, vector<16x16xf32> -> vector<16x16xf32>
    %cst_99 = arith.constant 0.353553385 : f32
    %253 = vector.broadcast %cst_99 : f32 to vector<16x16xf32>
    %254 = arith.mulf %252, %253 : vector<16x16xf32>
    %255 = arith.addf %254, %27 : vector<16x16xf32>
    %cst_100 = arith.constant dense<0xFF800000> : vector<16xf32>
    %256 = vector.multi_reduction <maximumf>, %255, %cst_100 [1] : vector<16x16xf32> to vector<16xf32>
    %257 = vector.shape_cast %256 : vector<16xf32> to vector<16x1xf32>
    %258 = vector.broadcast %257 : vector<16x1xf32> to vector<16x16xf32>
    %259 = arith.subf %255, %258 : vector<16x16xf32>
    %260 = math.exp %259 : vector<16x16xf32>
    %cst_101 = arith.constant dense<0.000000e+00> : vector<16xf32>
    %261 = vector.multi_reduction <add>, %260, %cst_101 [1] : vector<16x16xf32> to vector<16xf32>
    %262 = vector.shape_cast %261 : vector<16xf32> to vector<16x1xf32>
    %263 = tpu.reciprocal %262 {approx = true} : vector<16x1xf32> -> vector<16x1xf32>
    %264 = vector.broadcast %263 : vector<16x1xf32> to vector<16x16xf32>
    %265 = arith.mulf %260, %264 : vector<16x16xf32>
    %266 = arith.truncf %265 : vector<16x16xf32> to vector<16x16xbf16>
    %cst_102 = arith.constant dense<0.000000e+00> : vector<16x8xf32>
    %267 = tpu.matmul %266, %251, %cst_102 {dimension_numbers = #tpu.dot_dimension_numbers<[1], [0], [0], [1], [0, 0, 1, 1], [], []>} : vector<16x16xbf16>, vector<16x8xbf16>, vector<16x8xf32> -> vector<16x8xf32>
    %268 = vector.extract_strided_slice %223 {offsets = [0, 16], sizes = [16, 8], strides = [1, 1]} : vector<16x96xf32> to vector<16x8xf32>
    %269 = arith.truncf %268 : vector<16x8xf32> to vector<16x8xbf16>
    %270 = vector.extract_strided_slice %223 {offsets = [0, 48], sizes = [16, 8], strides = [1, 1]} : vector<16x96xf32> to vector<16x8xf32>
    %271 = arith.truncf %270 : vector<16x8xf32> to vector<16x8xbf16>
    %272 = vector.extract_strided_slice %223 {offsets = [0, 80], sizes = [16, 8], strides = [1, 1]} : vector<16x96xf32> to vector<16x8xf32>
    %273 = arith.truncf %272 : vector<16x8xf32> to vector<16x8xbf16>
    %cst_103 = arith.constant dense<0.000000e+00> : vector<16x16xf32>
    %274 = tpu.matmul %269, %271, %cst_103 {dimension_numbers = #tpu.dot_dimension_numbers<[1], [1], [0], [0], [0, 0, 1, 0], [], []>} : vector<16x8xbf16>, vector<16x8xbf16>, vector<16x16xf32> -> vector<16x16xf32>
    %cst_104 = arith.constant 0.353553385 : f32
    %275 = vector.broadcast %cst_104 : f32 to vector<16x16xf32>
    %276 = arith.mulf %274, %275 : vector<16x16xf32>
    %277 = arith.addf %276, %27 : vector<16x16xf32>
    %cst_105 = arith.constant dense<0xFF800000> : vector<16xf32>
    %278 = vector.multi_reduction <maximumf>, %277, %cst_105 [1] : vector<16x16xf32> to vector<16xf32>
    %279 = vector.shape_cast %278 : vector<16xf32> to vector<16x1xf32>
    %280 = vector.broadcast %279 : vector<16x1xf32> to vector<16x16xf32>
    %281 = arith.subf %277, %280 : vector<16x16xf32>
    %282 = math.exp %281 : vector<16x16xf32>
    %cst_106 = arith.constant dense<0.000000e+00> : vector<16xf32>
    %283 = vector.multi_reduction <add>, %282, %cst_106 [1] : vector<16x16xf32> to vector<16xf32>
    %284 = vector.shape_cast %283 : vector<16xf32> to vector<16x1xf32>
    %285 = tpu.reciprocal %284 {approx = true} : vector<16x1xf32> -> vector<16x1xf32>
    %286 = vector.broadcast %285 : vector<16x1xf32> to vector<16x16xf32>
    %287 = arith.mulf %282, %286 : vector<16x16xf32>
    %288 = arith.truncf %287 : vector<16x16xf32> to vector<16x16xbf16>
    %cst_107 = arith.constant dense<0.000000e+00> : vector<16x8xf32>
    %289 = tpu.matmul %288, %273, %cst_107 {dimension_numbers = #tpu.dot_dimension_numbers<[1], [0], [0], [1], [0, 0, 1, 1], [], []>} : vector<16x16xbf16>, vector<16x8xbf16>, vector<16x8xf32> -> vector<16x8xf32>
    %290 = vector.extract_strided_slice %223 {offsets = [0, 24], sizes = [16, 8], strides = [1, 1]} : vector<16x96xf32> to vector<16x8xf32>
    %291 = arith.truncf %290 : vector<16x8xf32> to vector<16x8xbf16>
    %292 = vector.extract_strided_slice %223 {offsets = [0, 56], sizes = [16, 8], strides = [1, 1]} : vector<16x96xf32> to vector<16x8xf32>
    %293 = arith.truncf %292 : vector<16x8xf32> to vector<16x8xbf16>
    %294 = vector.extract_strided_slice %223 {offsets = [0, 88], sizes = [16, 8], strides = [1, 1]} : vector<16x96xf32> to vector<16x8xf32>
    %295 = arith.truncf %294 : vector<16x8xf32> to vector<16x8xbf16>
    %cst_108 = arith.constant dense<0.000000e+00> : vector<16x16xf32>
    %296 = tpu.matmul %291, %293, %cst_108 {dimension_numbers = #tpu.dot_dimension_numbers<[1], [1], [0], [0], [0, 0, 1, 0], [], []>} : vector<16x8xbf16>, vector<16x8xbf16>, vector<16x16xf32> -> vector<16x16xf32>
    %cst_109 = arith.constant 0.353553385 : f32
    %297 = vector.broadcast %cst_109 : f32 to vector<16x16xf32>
    %298 = arith.mulf %296, %297 : vector<16x16xf32>
    %299 = arith.addf %298, %27 : vector<16x16xf32>
    %cst_110 = arith.constant dense<0xFF800000> : vector<16xf32>
    %300 = vector.multi_reduction <maximumf>, %299, %cst_110 [1] : vector<16x16xf32> to vector<16xf32>
    %301 = vector.shape_cast %300 : vector<16xf32> to vector<16x1xf32>
    %302 = vector.broadcast %301 : vector<16x1xf32> to vector<16x16xf32>
    %303 = arith.subf %299, %302 : vector<16x16xf32>
    %304 = math.exp %303 : vector<16x16xf32>
    %cst_111 = arith.constant dense<0.000000e+00> : vector<16xf32>
    %305 = vector.multi_reduction <add>, %304, %cst_111 [1] : vector<16x16xf32> to vector<16xf32>
    %306 = vector.shape_cast %305 : vector<16xf32> to vector<16x1xf32>
    %307 = tpu.reciprocal %306 {approx = true} : vector<16x1xf32> -> vector<16x1xf32>
    %308 = vector.broadcast %307 : vector<16x1xf32> to vector<16x16xf32>
    %309 = arith.mulf %304, %308 : vector<16x16xf32>
    %310 = arith.truncf %309 : vector<16x16xf32> to vector<16x16xbf16>
    %cst_112 = arith.constant dense<0.000000e+00> : vector<16x8xf32>
    %311 = tpu.matmul %310, %295, %cst_112 {dimension_numbers = #tpu.dot_dimension_numbers<[1], [0], [0], [1], [0, 0, 1, 1], [], []>} : vector<16x16xbf16>, vector<16x8xbf16>, vector<16x8xf32> -> vector<16x8xf32>
    %312 = tpu.concatenate %245, %267, %289, %311 in 1 : vector<16x8xf32>, vector<16x8xf32>, vector<16x8xf32>, vector<16x8xf32> -> vector<16x32xf32>
    %313 = arith.truncf %312 : vector<16x32xf32> to vector<16x32xbf16>
    %c1_113 = arith.constant 1 : index
    %c0_114 = arith.constant 0 : index
    %c0_115 = arith.constant 0 : index
    %314 = vector.load %arg12[%c1_113, %c0_114, %c0_115] : memref<2x32x32xbf16, #tpu.memory_space<vmem>>, vector<1x32x32xbf16>
    %315 = vector.shape_cast %314 : vector<1x32x32xbf16> to vector<32x32xbf16>
    %cst_116 = arith.constant dense<0.000000e+00> : vector<16x32xf32>
    %316 = tpu.matmul %313, %315, %cst_116 {dimension_numbers = #tpu.dot_dimension_numbers<[1], [0], [0], [1], [0, 0, 1, 1], [], []>} : vector<16x32xbf16>, vector<32x32xbf16>, vector<16x32xf32> -> vector<16x32xf32>
    %c1_117 = arith.constant 1 : index
    %c0_118 = arith.constant 0 : index
    %c0_119 = arith.constant 0 : index
    %317 = vector.load %arg13[%c1_117, %c0_118, %c0_119] : memref<2x1x32xf32, #tpu.memory_space<vmem>>, vector<1x1x32xf32>
    %318 = vector.shape_cast %317 : vector<1x1x32xf32> to vector<1x32xf32>
    %319 = vector.broadcast %318 : vector<1x32xf32> to vector<16x32xf32>
    %320 = arith.addf %316, %319 : vector<16x32xf32>
    %321 = arith.addf %215, %320 : vector<16x32xf32>
    %c1_120 = arith.constant 1 : index
    %c0_121 = arith.constant 0 : index
    %c0_122 = arith.constant 0 : index
    %322 = vector.load %arg14[%c1_120, %c0_121, %c0_122] : memref<2x1x32xf32, #tpu.memory_space<vmem>>, vector<1x1x32xf32>
    %323 = vector.shape_cast %322 : vector<1x1x32xf32> to vector<1x32xf32>
    %c1_123 = arith.constant 1 : index
    %c0_124 = arith.constant 0 : index
    %c0_125 = arith.constant 0 : index
    %324 = vector.load %arg15[%c1_123, %c0_124, %c0_125] : memref<2x1x32xf32, #tpu.memory_space<vmem>>, vector<1x1x32xf32>
    %325 = vector.shape_cast %324 : vector<1x1x32xf32> to vector<1x32xf32>
    %cst_126 = arith.constant dense<0.000000e+00> : vector<16xf32>
    %326 = vector.multi_reduction <add>, %321, %cst_126 [1] : vector<16x32xf32> to vector<16xf32>
    %327 = vector.shape_cast %326 : vector<16xf32> to vector<16x1xf32>
    %cst_127 = arith.constant 3.200000e+01 : f32
    %328 = vector.broadcast %cst_127 : f32 to vector<16x1xf32>
    %329 = arith.divf %327, %328 : vector<16x1xf32>
    %330 = vector.broadcast %329 : vector<16x1xf32> to vector<16x32xf32>
    %331 = arith.subf %321, %330 : vector<16x32xf32>
    %332 = arith.mulf %331, %331 : vector<16x32xf32>
    %cst_128 = arith.constant dense<0.000000e+00> : vector<16xf32>
    %333 = vector.multi_reduction <add>, %332, %cst_128 [1] : vector<16x32xf32> to vector<16xf32>
    %334 = vector.shape_cast %333 : vector<16xf32> to vector<16x1xf32>
    %cst_129 = arith.constant 3.200000e+01 : f32
    %335 = vector.broadcast %cst_129 : f32 to vector<16x1xf32>
    %336 = arith.divf %334, %335 : vector<16x1xf32>
    %337 = vector.broadcast %329 : vector<16x1xf32> to vector<16x32xf32>
    %338 = arith.subf %321, %337 : vector<16x32xf32>
    %cst_130 = arith.constant 9.99999996E-13 : f32
    %339 = vector.broadcast %cst_130 : f32 to vector<16x1xf32>
    %340 = arith.addf %336, %339 : vector<16x1xf32>
    %341 = math.rsqrt %340 : vector<16x1xf32>
    %342 = vector.broadcast %341 : vector<16x1xf32> to vector<16x32xf32>
    %343 = arith.mulf %338, %342 : vector<16x32xf32>
    %344 = vector.broadcast %323 : vector<1x32xf32> to vector<16x32xf32>
    %345 = arith.mulf %343, %344 : vector<16x32xf32>
    %346 = vector.broadcast %325 : vector<1x32xf32> to vector<16x32xf32>
    %347 = arith.addf %345, %346 : vector<16x32xf32>
    %348 = arith.truncf %347 : vector<16x32xf32> to vector<16x32xbf16>
    %c1_131 = arith.constant 1 : index
    %c0_132 = arith.constant 0 : index
    %c0_133 = arith.constant 0 : index
    %349 = vector.load %arg16[%c1_131, %c0_132, %c0_133] : memref<2x32x64xbf16, #tpu.memory_space<vmem>>, vector<1x32x64xbf16>
    %350 = vector.shape_cast %349 : vector<1x32x64xbf16> to vector<32x64xbf16>
    %cst_134 = arith.constant dense<0.000000e+00> : vector<16x64xf32>
    %351 = tpu.matmul %348, %350, %cst_134 {dimension_numbers = #tpu.dot_dimension_numbers<[1], [0], [0], [1], [0, 0, 1, 1], [], []>} : vector<16x32xbf16>, vector<32x64xbf16>, vector<16x64xf32> -> vector<16x64xf32>
    %c1_135 = arith.constant 1 : index
    %c0_136 = arith.constant 0 : index
    %c0_137 = arith.constant 0 : index
    %352 = vector.load %arg17[%c1_135, %c0_136, %c0_137] : memref<2x1x64xf32, #tpu.memory_space<vmem>>, vector<1x1x64xf32>
    %353 = vector.shape_cast %352 : vector<1x1x64xf32> to vector<1x64xf32>
    %354 = vector.broadcast %353 : vector<1x64xf32> to vector<16x64xf32>
    %355 = arith.addf %351, %354 : vector<16x64xf32>
    %356 = arith.mulf %355, %355 : vector<16x64xf32>
    %357 = arith.mulf %355, %356 : vector<16x64xf32>
    %cst_138 = arith.constant 4.471500e-02 : f32
    %358 = vector.broadcast %cst_138 : f32 to vector<16x64xf32>
    %359 = arith.mulf %358, %357 : vector<16x64xf32>
    %360 = arith.addf %355, %359 : vector<16x64xf32>
    %cst_139 = arith.constant 0.797884583 : f32
    %361 = vector.broadcast %cst_139 : f32 to vector<16x64xf32>
    %362 = arith.mulf %361, %360 : vector<16x64xf32>
    %363 = math.tanh %362 : vector<16x64xf32>
    %cst_140 = arith.constant 1.000000e+00 : f32
    %364 = vector.broadcast %cst_140 : f32 to vector<16x64xf32>
    %365 = arith.addf %364, %363 : vector<16x64xf32>
    %cst_141 = arith.constant 5.000000e-01 : f32
    %366 = vector.broadcast %cst_141 : f32 to vector<16x64xf32>
    %367 = arith.mulf %366, %365 : vector<16x64xf32>
    %368 = arith.mulf %355, %367 : vector<16x64xf32>
    %369 = arith.truncf %368 : vector<16x64xf32> to vector<16x64xbf16>
    %c1_142 = arith.constant 1 : index
    %c0_143 = arith.constant 0 : index
    %c0_144 = arith.constant 0 : index
    %370 = vector.load %arg18[%c1_142, %c0_143, %c0_144] : memref<2x64x32xbf16, #tpu.memory_space<vmem>>, vector<1x64x32xbf16>
    %371 = vector.shape_cast %370 : vector<1x64x32xbf16> to vector<64x32xbf16>
    %cst_145 = arith.constant dense<0.000000e+00> : vector<16x32xf32>
    %372 = tpu.matmul %369, %371, %cst_145 {dimension_numbers = #tpu.dot_dimension_numbers<[1], [0], [0], [1], [0, 0, 1, 1], [], []>} : vector<16x64xbf16>, vector<64x32xbf16>, vector<16x32xf32> -> vector<16x32xf32>
    %c1_146 = arith.constant 1 : index
    %c0_147 = arith.constant 0 : index
    %c0_148 = arith.constant 0 : index
    %373 = vector.load %arg19[%c1_146, %c0_147, %c0_148] : memref<2x1x32xf32, #tpu.memory_space<vmem>>, vector<1x1x32xf32>
    %374 = vector.shape_cast %373 : vector<1x1x32xf32> to vector<1x32xf32>
    %375 = vector.broadcast %374 : vector<1x32xf32> to vector<16x32xf32>
    %376 = arith.addf %372, %375 : vector<16x32xf32>
    %377 = arith.addf %347, %376 : vector<16x32xf32>
    %c1_149 = arith.constant 1 : index
    %c0_150 = arith.constant 0 : index
    %c0_151 = arith.constant 0 : index
    %378 = vector.load %arg20[%c1_149, %c0_150, %c0_151] : memref<2x1x32xf32, #tpu.memory_space<vmem>>, vector<1x1x32xf32>
    %379 = vector.shape_cast %378 : vector<1x1x32xf32> to vector<1x32xf32>
    %c1_152 = arith.constant 1 : index
    %c0_153 = arith.constant 0 : index
    %c0_154 = arith.constant 0 : index
    %380 = vector.load %arg21[%c1_152, %c0_153, %c0_154] : memref<2x1x32xf32, #tpu.memory_space<vmem>>, vector<1x1x32xf32>
    %381 = vector.shape_cast %380 : vector<1x1x32xf32> to vector<1x32xf32>
    %cst_155 = arith.constant dense<0.000000e+00> : vector<16xf32>
    %382 = vector.multi_reduction <add>, %377, %cst_155 [1] : vector<16x32xf32> to vector<16xf32>
    %383 = vector.shape_cast %382 : vector<16xf32> to vector<16x1xf32>
    %cst_156 = arith.constant 3.200000e+01 : f32
    %384 = vector.broadcast %cst_156 : f32 to vector<16x1xf32>
    %385 = arith.divf %383, %384 : vector<16x1xf32>
    %386 = vector.broadcast %385 : vector<16x1xf32> to vector<16x32xf32>
    %387 = arith.subf %377, %386 : vector<16x32xf32>
    %388 = arith.mulf %387, %387 : vector<16x32xf32>
    %cst_157 = arith.constant dense<0.000000e+00> : vector<16xf32>
    %389 = vector.multi_reduction <add>, %388, %cst_157 [1] : vector<16x32xf32> to vector<16xf32>
    %390 = vector.shape_cast %389 : vector<16xf32> to vector<16x1xf32>
    %cst_158 = arith.constant 3.200000e+01 : f32
    %391 = vector.broadcast %cst_158 : f32 to vector<16x1xf32>
    %392 = arith.divf %390, %391 : vector<16x1xf32>
    %393 = vector.broadcast %385 : vector<16x1xf32> to vector<16x32xf32>
    %394 = arith.subf %377, %393 : vector<16x32xf32>
    %cst_159 = arith.constant 9.99999996E-13 : f32
    %395 = vector.broadcast %cst_159 : f32 to vector<16x1xf32>
    %396 = arith.addf %392, %395 : vector<16x1xf32>
    %397 = math.rsqrt %396 : vector<16x1xf32>
    %398 = vector.broadcast %397 : vector<16x1xf32> to vector<16x32xf32>
    %399 = arith.mulf %394, %398 : vector<16x32xf32>
    %400 = vector.broadcast %379 : vector<1x32xf32> to vector<16x32xf32>
    %401 = arith.mulf %399, %400 : vector<16x32xf32>
    %402 = vector.broadcast %381 : vector<1x32xf32> to vector<16x32xf32>
    %403 = arith.addf %401, %402 : vector<16x32xf32>
    %404 = arith.truncf %403 : vector<16x32xf32> to vector<16x32xbf16>
    %c0_160 = arith.constant 0 : index
    %c0_161 = arith.constant 0 : index
    %405 = vector.load %arg22[%c0_160, %c0_161] : memref<32x2xbf16, #tpu.memory_space<vmem>>, vector<32x2xbf16>
    %cst_162 = arith.constant dense<0.000000e+00> : vector<16x2xf32>
    %406 = tpu.matmul %404, %405, %cst_162 {dimension_numbers = #tpu.dot_dimension_numbers<[1], [0], [0], [1], [0, 0, 1, 1], [], []>} : vector<16x32xbf16>, vector<32x2xbf16>, vector<16x2xf32> -> vector<16x2xf32>
    %c0_163 = arith.constant 0 : index
    %c0_164 = arith.constant 0 : index
    %407 = vector.load %arg23[%c0_163, %c0_164] : memref<1x2xf32, #tpu.memory_space<vmem>>, vector<1x2xf32>
    %408 = vector.broadcast %407 : vector<1x2xf32> to vector<16x2xf32>
    %409 = arith.addf %406, %408 : vector<16x2xf32>
    %410 = vector.extract_strided_slice %409 {offsets = [0, 1], sizes = [16, 1], strides = [1, 1]} : vector<16x2xf32> to vector<16x1xf32>
    %411 = vector.extract_strided_slice %409 {offsets = [0, 0], sizes = [16, 1], strides = [1, 1]} : vector<16x2xf32> to vector<16x1xf32>
    %412 = arith.cmpf ogt, %410, %411 : vector<16x1xf32>
    %413 = arith.extui %412 : vector<16x1xi1> to vector<16x1xi32>
    %414 = arith.sitofp %413 : vector<16x1xi32> to vector<16x1xf32>
    %c0_165 = arith.constant 0 : index
    %c0_166 = arith.constant 0 : index
    %415 = vector.load %arg5[%c0_165, %c0_166] : memref<16x1xf32, #tpu.memory_space<vmem>>, vector<16x1xf32>
    %416 = arith.mulf %414, %415 : vector<16x1xf32>
    %cst_167 = arith.constant 1.000000e+00 : f32
    %417 = vector.broadcast %cst_167 : f32 to vector<16x1xf32>
    %418 = arith.subf %417, %416 : vector<16x1xf32>
    %c0_168 = arith.constant 0 : index
    %c0_169 = arith.constant 0 : index
    %419 = vector.load %arg6[%c0_168, %c0_169] : memref<16x1xf32, #tpu.memory_space<vmem>>, vector<16x1xf32>
    %cst_170 = arith.constant 1.000000e+00 : f32
    %420 = vector.broadcast %cst_170 : f32 to vector<16x1xf32>
    %421 = arith.subf %420, %419 : vector<16x1xf32>
    %422 = arith.mulf %418, %421 : vector<16x1xf32>
    %cst_171 = arith.constant 1.000000e+00 : f32
    %423 = vector.broadcast %cst_171 : f32 to vector<16x1xf32>
    %424 = arith.subf %423, %422 : vector<16x1xf32>
    %c0_172 = arith.constant 0 : index
    %c0_173 = arith.constant 0 : index
    %425 = vector.load %arg30[%c0_172, %c0_173] : memref<16x1xf32, #tpu.memory_space<vmem>>, vector<16x1xf32>
    tpu.vector_store %arg30[%c0_172, %c0_173], %414 {strides = array<i32>} : memref<16x1xf32, #tpu.memory_space<vmem>>, vector<16x1xf32>,
    %c0_174 = arith.constant 0 : index
    %c0_175 = arith.constant 0 : index
    %426 = vector.load %arg31[%c0_174, %c0_175] : memref<16x1xf32, #tpu.memory_space<vmem>>, vector<16x1xf32>
    tpu.vector_store %arg31[%c0_174, %c0_175], %424 {strides = array<i32>} : memref<16x1xf32, #tpu.memory_space<vmem>>, vector<16x1xf32>,
    %c0_176 = arith.constant 0 : index
    %c0_177 = arith.constant 0 : index
    %427 = vector.load %arg2[%c0_176, %c0_177] : memref<1x32xf32, #tpu.memory_space<vmem>>, vector<1x32xf32>
    %428 = vector.broadcast %424 : vector<16x1xf32> to vector<16x32xf32>
    %429 = arith.mulf %2, %428 : vector<16x32xf32>
    %cst_178 = arith.constant 1.000000e+00 : f32
    %430 = vector.broadcast %cst_178 : f32 to vector<16x1xf32>
    %431 = arith.subf %430, %424 : vector<16x1xf32>
    %432 = vector.broadcast %427 : vector<1x32xf32> to vector<16x32xf32>
    %433 = vector.broadcast %431 : vector<16x1xf32> to vector<16x32xf32>
    %434 = arith.mulf %432, %433 : vector<16x32xf32>
    %435 = arith.addf %429, %434 : vector<16x32xf32>
    %436 = vector.broadcast %427 : vector<1x32xf32> to vector<16x32xf32>
    %437 = vector.broadcast %424 : vector<16x1xf32> to vector<16x32xf32>
    %438 = arith.mulf %436, %437 : vector<16x32xf32>
    %cst_179 = arith.constant 1.000000e+00 : f32
    %439 = vector.broadcast %cst_179 : f32 to vector<16x1xf32>
    %440 = arith.subf %439, %424 : vector<16x1xf32>
    %441 = vector.broadcast %440 : vector<16x1xf32> to vector<16x32xf32>
    %442 = arith.mulf %2, %441 : vector<16x32xf32>
    %443 = arith.addf %438, %442 : vector<16x32xf32>
    %444 = arith.addf %435, %3 : vector<16x32xf32>
    %cst_180 = arith.constant dense<0.000000e+00> : vector<16xf32>
    %445 = vector.multi_reduction <add>, %444, %cst_180 [1] : vector<16x32xf32> to vector<16xf32>
    %446 = vector.shape_cast %445 : vector<16xf32> to vector<16x1xf32>
    %cst_181 = arith.constant 3.200000e+01 : f32
    %447 = vector.broadcast %cst_181 : f32 to vector<16x1xf32>
    %448 = arith.divf %446, %447 : vector<16x1xf32>
    %449 = vector.broadcast %448 : vector<16x1xf32> to vector<16x32xf32>
    %450 = arith.subf %444, %449 : vector<16x32xf32>
    %451 = arith.mulf %450, %450 : vector<16x32xf32>
    %cst_182 = arith.constant dense<0.000000e+00> : vector<16xf32>
    %452 = vector.multi_reduction <add>, %451, %cst_182 [1] : vector<16x32xf32> to vector<16xf32>
    %453 = vector.shape_cast %452 : vector<16xf32> to vector<16x1xf32>
    %cst_183 = arith.constant 3.200000e+01 : f32
    %454 = vector.broadcast %cst_183 : f32 to vector<16x1xf32>
    %455 = arith.divf %453, %454 : vector<16x1xf32>
    %456 = vector.broadcast %448 : vector<16x1xf32> to vector<16x32xf32>
    %457 = arith.subf %444, %456 : vector<16x32xf32>
    %cst_184 = arith.constant 9.99999996E-13 : f32
    %458 = vector.broadcast %cst_184 : f32 to vector<16x1xf32>
    %459 = arith.addf %455, %458 : vector<16x1xf32>
    %460 = math.rsqrt %459 : vector<16x1xf32>
    %461 = vector.broadcast %460 : vector<16x1xf32> to vector<16x32xf32>
    %462 = arith.mulf %457, %461 : vector<16x32xf32>
    %463 = vector.broadcast %0 : vector<1x32xf32> to vector<16x32xf32>
    %464 = arith.mulf %462, %463 : vector<16x32xf32>
    %465 = vector.broadcast %1 : vector<1x32xf32> to vector<16x32xf32>
    %466 = arith.addf %464, %465 : vector<16x32xf32>
    %467 = arith.addf %443, %3 : vector<16x32xf32>
    %cst_185 = arith.constant dense<0.000000e+00> : vector<16xf32>
    %468 = vector.multi_reduction <add>, %467, %cst_185 [1] : vector<16x32xf32> to vector<16xf32>
    %469 = vector.shape_cast %468 : vector<16xf32> to vector<16x1xf32>
    %cst_186 = arith.constant 3.200000e+01 : f32
    %470 = vector.broadcast %cst_186 : f32 to vector<16x1xf32>
    %471 = arith.divf %469, %470 : vector<16x1xf32>
    %472 = vector.broadcast %471 : vector<16x1xf32> to vector<16x32xf32>
    %473 = arith.subf %467, %472 : vector<16x32xf32>
    %474 = arith.mulf %473, %473 : vector<16x32xf32>
    %cst_187 = arith.constant dense<0.000000e+00> : vector<16xf32>
    %475 = vector.multi_reduction <add>, %474, %cst_187 [1] : vector<16x32xf32> to vector<16xf32>
    %476 = vector.shape_cast %475 : vector<16xf32> to vector<16x1xf32>
    %cst_188 = arith.constant 3.200000e+01 : f32
    %477 = vector.broadcast %cst_188 : f32 to vector<16x1xf32>
    %478 = arith.divf %476, %477 : vector<16x1xf32>
    %479 = vector.broadcast %471 : vector<16x1xf32> to vector<16x32xf32>
    %480 = arith.subf %467, %479 : vector<16x32xf32>
    %cst_189 = arith.constant 9.99999996E-13 : f32
    %481 = vector.broadcast %cst_189 : f32 to vector<16x1xf32>
    %482 = arith.addf %478, %481 : vector<16x1xf32>
    %483 = math.rsqrt %482 : vector<16x1xf32>
    %484 = vector.broadcast %483 : vector<16x1xf32> to vector<16x32xf32>
    %485 = arith.mulf %480, %484 : vector<16x32xf32>
    %486 = vector.broadcast %0 : vector<1x32xf32> to vector<16x32xf32>
    %487 = arith.mulf %485, %486 : vector<16x32xf32>
    %488 = vector.broadcast %1 : vector<1x32xf32> to vector<16x32xf32>
    %489 = arith.addf %487, %488 : vector<16x32xf32>
    %490 = tpu.concatenate %466, %489 in 0 : vector<16x32xf32>, vector<16x32xf32> -> vector<32x32xf32>
    %c0_190 = arith.constant 0 : index
    %c0_191 = arith.constant 0 : index
    %491 = vector.load %arg8[%c0_190, %c0_191] : memref<32x32xf32, #tpu.memory_space<vmem>>, vector<32x32xf32>
    %492 = arith.truncf %490 : vector<32x32xf32> to vector<32x32xbf16>
    %c0_192 = arith.constant 0 : index
    %c0_193 = arith.constant 0 : index
    %c0_194 = arith.constant 0 : index
    %493 = vector.load %arg10[%c0_192, %c0_193, %c0_194] : memref<2x32x96xbf16, #tpu.memory_space<vmem>>, vector<1x32x96xbf16>
    %494 = vector.shape_cast %493 : vector<1x32x96xbf16> to vector<32x96xbf16>
    %cst_195 = arith.constant dense<0.000000e+00> : vector<32x96xf32>
    %495 = tpu.matmul %492, %494, %cst_195 {dimension_numbers = #tpu.dot_dimension_numbers<[1], [0], [0], [1], [0, 0, 1, 1], [], []>} : vector<32x32xbf16>, vector<32x96xbf16>, vector<32x96xf32> -> vector<32x96xf32>
    %c0_196 = arith.constant 0 : index
    %c0_197 = arith.constant 0 : index
    %c0_198 = arith.constant 0 : index
    %496 = vector.load %arg11[%c0_196, %c0_197, %c0_198] : memref<2x1x96xf32, #tpu.memory_space<vmem>>, vector<1x1x96xf32>
    %497 = vector.shape_cast %496 : vector<1x1x96xf32> to vector<1x96xf32>
    %498 = vector.broadcast %497 : vector<1x96xf32> to vector<32x96xf32>
    %499 = arith.addf %495, %498 : vector<32x96xf32>
    %500 = vector.extract_strided_slice %499 {offsets = [0, 0], sizes = [32, 8], strides = [1, 1]} : vector<32x96xf32> to vector<32x8xf32>
    %501 = arith.truncf %500 : vector<32x8xf32> to vector<32x8xbf16>
    %502 = vector.extract_strided_slice %499 {offsets = [0, 32], sizes = [32, 8], strides = [1, 1]} : vector<32x96xf32> to vector<32x8xf32>
    %503 = arith.truncf %502 : vector<32x8xf32> to vector<32x8xbf16>
    %504 = vector.extract_strided_slice %499 {offsets = [0, 64], sizes = [32, 8], strides = [1, 1]} : vector<32x96xf32> to vector<32x8xf32>
    %505 = arith.truncf %504 : vector<32x8xf32> to vector<32x8xbf16>
    %cst_199 = arith.constant dense<0.000000e+00> : vector<32x32xf32>
    %506 = tpu.matmul %501, %503, %cst_199 {dimension_numbers = #tpu.dot_dimension_numbers<[1], [1], [0], [0], [0, 0, 1, 0], [], []>} : vector<32x8xbf16>, vector<32x8xbf16>, vector<32x32xf32> -> vector<32x32xf32>
    %cst_200 = arith.constant 0.353553385 : f32
    %507 = vector.broadcast %cst_200 : f32 to vector<32x32xf32>
    %508 = arith.mulf %506, %507 : vector<32x32xf32>
    %509 = arith.addf %508, %491 : vector<32x32xf32>
    %cst_201 = arith.constant dense<0xFF800000> : vector<32xf32>
    %510 = vector.multi_reduction <maximumf>, %509, %cst_201 [1] : vector<32x32xf32> to vector<32xf32>
    %511 = vector.shape_cast %510 : vector<32xf32> to vector<32x1xf32>
    %512 = vector.broadcast %511 : vector<32x1xf32> to vector<32x32xf32>
    %513 = arith.subf %509, %512 : vector<32x32xf32>
    %514 = math.exp %513 : vector<32x32xf32>
    %cst_202 = arith.constant dense<0.000000e+00> : vector<32xf32>
    %515 = vector.multi_reduction <add>, %514, %cst_202 [1] : vector<32x32xf32> to vector<32xf32>
    %516 = vector.shape_cast %515 : vector<32xf32> to vector<32x1xf32>
    %517 = tpu.reciprocal %516 {approx = true} : vector<32x1xf32> -> vector<32x1xf32>
    %518 = vector.broadcast %517 : vector<32x1xf32> to vector<32x32xf32>
    %519 = arith.mulf %514, %518 : vector<32x32xf32>
    %520 = arith.truncf %519 : vector<32x32xf32> to vector<32x32xbf16>
    %cst_203 = arith.constant dense<0.000000e+00> : vector<32x8xf32>
    %521 = tpu.matmul %520, %505, %cst_203 {dimension_numbers = #tpu.dot_dimension_numbers<[1], [0], [0], [1], [0, 0, 1, 1], [], []>} : vector<32x32xbf16>, vector<32x8xbf16>, vector<32x8xf32> -> vector<32x8xf32>
    %522 = vector.extract_strided_slice %499 {offsets = [0, 8], sizes = [32, 8], strides = [1, 1]} : vector<32x96xf32> to vector<32x8xf32>
    %523 = arith.truncf %522 : vector<32x8xf32> to vector<32x8xbf16>
    %524 = vector.extract_strided_slice %499 {offsets = [0, 40], sizes = [32, 8], strides = [1, 1]} : vector<32x96xf32> to vector<32x8xf32>
    %525 = arith.truncf %524 : vector<32x8xf32> to vector<32x8xbf16>
    %526 = vector.extract_strided_slice %499 {offsets = [0, 72], sizes = [32, 8], strides = [1, 1]} : vector<32x96xf32> to vector<32x8xf32>
    %527 = arith.truncf %526 : vector<32x8xf32> to vector<32x8xbf16>
    %cst_204 = arith.constant dense<0.000000e+00> : vector<32x32xf32>
    %528 = tpu.matmul %523, %525, %cst_204 {dimension_numbers = #tpu.dot_dimension_numbers<[1], [1], [0], [0], [0, 0, 1, 0], [], []>} : vector<32x8xbf16>, vector<32x8xbf16>, vector<32x32xf32> -> vector<32x32xf32>
    %cst_205 = arith.constant 0.353553385 : f32
    %529 = vector.broadcast %cst_205 : f32 to vector<32x32xf32>
    %530 = arith.mulf %528, %529 : vector<32x32xf32>
    %531 = arith.addf %530, %491 : vector<32x32xf32>
    %cst_206 = arith.constant dense<0xFF800000> : vector<32xf32>
    %532 = vector.multi_reduction <maximumf>, %531, %cst_206 [1] : vector<32x32xf32> to vector<32xf32>
    %533 = vector.shape_cast %532 : vector<32xf32> to vector<32x1xf32>
    %534 = vector.broadcast %533 : vector<32x1xf32> to vector<32x32xf32>
    %535 = arith.subf %531, %534 : vector<32x32xf32>
    %536 = math.exp %535 : vector<32x32xf32>
    %cst_207 = arith.constant dense<0.000000e+00> : vector<32xf32>
    %537 = vector.multi_reduction <add>, %536, %cst_207 [1] : vector<32x32xf32> to vector<32xf32>
    %538 = vector.shape_cast %537 : vector<32xf32> to vector<32x1xf32>
    %539 = tpu.reciprocal %538 {approx = true} : vector<32x1xf32> -> vector<32x1xf32>
    %540 = vector.broadcast %539 : vector<32x1xf32> to vector<32x32xf32>
    %541 = arith.mulf %536, %540 : vector<32x32xf32>
    %542 = arith.truncf %541 : vector<32x32xf32> to vector<32x32xbf16>
    %cst_208 = arith.constant dense<0.000000e+00> : vector<32x8xf32>
    %543 = tpu.matmul %542, %527, %cst_208 {dimension_numbers = #tpu.dot_dimension_numbers<[1], [0], [0], [1], [0, 0, 1, 1], [], []>} : vector<32x32xbf16>, vector<32x8xbf16>, vector<32x8xf32> -> vector<32x8xf32>
    %544 = vector.extract_strided_slice %499 {offsets = [0, 16], sizes = [32, 8], strides = [1, 1]} : vector<32x96xf32> to vector<32x8xf32>
    %545 = arith.truncf %544 : vector<32x8xf32> to vector<32x8xbf16>
    %546 = vector.extract_strided_slice %499 {offsets = [0, 48], sizes = [32, 8], strides = [1, 1]} : vector<32x96xf32> to vector<32x8xf32>
    %547 = arith.truncf %546 : vector<32x8xf32> to vector<32x8xbf16>
    %548 = vector.extract_strided_slice %499 {offsets = [0, 80], sizes = [32, 8], strides = [1, 1]} : vector<32x96xf32> to vector<32x8xf32>
    %549 = arith.truncf %548 : vector<32x8xf32> to vector<32x8xbf16>
    %cst_209 = arith.constant dense<0.000000e+00> : vector<32x32xf32>
    %550 = tpu.matmul %545, %547, %cst_209 {dimension_numbers = #tpu.dot_dimension_numbers<[1], [1], [0], [0], [0, 0, 1, 0], [], []>} : vector<32x8xbf16>, vector<32x8xbf16>, vector<32x32xf32> -> vector<32x32xf32>
    %cst_210 = arith.constant 0.353553385 : f32
    %551 = vector.broadcast %cst_210 : f32 to vector<32x32xf32>
    %552 = arith.mulf %550, %551 : vector<32x32xf32>
    %553 = arith.addf %552, %491 : vector<32x32xf32>
    %cst_211 = arith.constant dense<0xFF800000> : vector<32xf32>
    %554 = vector.multi_reduction <maximumf>, %553, %cst_211 [1] : vector<32x32xf32> to vector<32xf32>
    %555 = vector.shape_cast %554 : vector<32xf32> to vector<32x1xf32>
    %556 = vector.broadcast %555 : vector<32x1xf32> to vector<32x32xf32>
    %557 = arith.subf %553, %556 : vector<32x32xf32>
    %558 = math.exp %557 : vector<32x32xf32>
    %cst_212 = arith.constant dense<0.000000e+00> : vector<32xf32>
    %559 = vector.multi_reduction <add>, %558, %cst_212 [1] : vector<32x32xf32> to vector<32xf32>
    %560 = vector.shape_cast %559 : vector<32xf32> to vector<32x1xf32>
    %561 = tpu.reciprocal %560 {approx = true} : vector<32x1xf32> -> vector<32x1xf32>
    %562 = vector.broadcast %561 : vector<32x1xf32> to vector<32x32xf32>
    %563 = arith.mulf %558, %562 : vector<32x32xf32>
    %564 = arith.truncf %563 : vector<32x32xf32> to vector<32x32xbf16>
    %cst_213 = arith.constant dense<0.000000e+00> : vector<32x8xf32>
    %565 = tpu.matmul %564, %549, %cst_213 {dimension_numbers = #tpu.dot_dimension_numbers<[1], [0], [0], [1], [0, 0, 1, 1], [], []>} : vector<32x32xbf16>, vector<32x8xbf16>, vector<32x8xf32> -> vector<32x8xf32>
    %566 = vector.extract_strided_slice %499 {offsets = [0, 24], sizes = [32, 8], strides = [1, 1]} : vector<32x96xf32> to vector<32x8xf32>
    %567 = arith.truncf %566 : vector<32x8xf32> to vector<32x8xbf16>
    %568 = vector.extract_strided_slice %499 {offsets = [0, 56], sizes = [32, 8], strides = [1, 1]} : vector<32x96xf32> to vector<32x8xf32>
    %569 = arith.truncf %568 : vector<32x8xf32> to vector<32x8xbf16>
    %570 = vector.extract_strided_slice %499 {offsets = [0, 88], sizes = [32, 8], strides = [1, 1]} : vector<32x96xf32> to vector<32x8xf32>
    %571 = arith.truncf %570 : vector<32x8xf32> to vector<32x8xbf16>
    %cst_214 = arith.constant dense<0.000000e+00> : vector<32x32xf32>
    %572 = tpu.matmul %567, %569, %cst_214 {dimension_numbers = #tpu.dot_dimension_numbers<[1], [1], [0], [0], [0, 0, 1, 0], [], []>} : vector<32x8xbf16>, vector<32x8xbf16>, vector<32x32xf32> -> vector<32x32xf32>
    %cst_215 = arith.constant 0.353553385 : f32
    %573 = vector.broadcast %cst_215 : f32 to vector<32x32xf32>
    %574 = arith.mulf %572, %573 : vector<32x32xf32>
    %575 = arith.addf %574, %491 : vector<32x32xf32>
    %cst_216 = arith.constant dense<0xFF800000> : vector<32xf32>
    %576 = vector.multi_reduction <maximumf>, %575, %cst_216 [1] : vector<32x32xf32> to vector<32xf32>
    %577 = vector.shape_cast %576 : vector<32xf32> to vector<32x1xf32>
    %578 = vector.broadcast %577 : vector<32x1xf32> to vector<32x32xf32>
    %579 = arith.subf %575, %578 : vector<32x32xf32>
    %580 = math.exp %579 : vector<32x32xf32>
    %cst_217 = arith.constant dense<0.000000e+00> : vector<32xf32>
    %581 = vector.multi_reduction <add>, %580, %cst_217 [1] : vector<32x32xf32> to vector<32xf32>
    %582 = vector.shape_cast %581 : vector<32xf32> to vector<32x1xf32>
    %583 = tpu.reciprocal %582 {approx = true} : vector<32x1xf32> -> vector<32x1xf32>
    %584 = vector.broadcast %583 : vector<32x1xf32> to vector<32x32xf32>
    %585 = arith.mulf %580, %584 : vector<32x32xf32>
    %586 = arith.truncf %585 : vector<32x32xf32> to vector<32x32xbf16>
    %cst_218 = arith.constant dense<0.000000e+00> : vector<32x8xf32>
    %587 = tpu.matmul %586, %571, %cst_218 {dimension_numbers = #tpu.dot_dimension_numbers<[1], [0], [0], [1], [0, 0, 1, 1], [], []>} : vector<32x32xbf16>, vector<32x8xbf16>, vector<32x8xf32> -> vector<32x8xf32>
    %588 = tpu.concatenate %521, %543, %565, %587 in 1 : vector<32x8xf32>, vector<32x8xf32>, vector<32x8xf32>, vector<32x8xf32> -> vector<32x32xf32>
    %589 = arith.truncf %588 : vector<32x32xf32> to vector<32x32xbf16>
    %c0_219 = arith.constant 0 : index
    %c0_220 = arith.constant 0 : index
    %c0_221 = arith.constant 0 : index
    %590 = vector.load %arg12[%c0_219, %c0_220, %c0_221] : memref<2x32x32xbf16, #tpu.memory_space<vmem>>, vector<1x32x32xbf16>
    %591 = vector.shape_cast %590 : vector<1x32x32xbf16> to vector<32x32xbf16>
    %cst_222 = arith.constant dense<0.000000e+00> : vector<32x32xf32>
    %592 = tpu.matmul %589, %591, %cst_222 {dimension_numbers = #tpu.dot_dimension_numbers<[1], [0], [0], [1], [0, 0, 1, 1], [], []>} : vector<32x32xbf16>, vector<32x32xbf16>, vector<32x32xf32> -> vector<32x32xf32>
    %c0_223 = arith.constant 0 : index
    %c0_224 = arith.constant 0 : index
    %c0_225 = arith.constant 0 : index
    %593 = vector.load %arg13[%c0_223, %c0_224, %c0_225] : memref<2x1x32xf32, #tpu.memory_space<vmem>>, vector<1x1x32xf32>
    %594 = vector.shape_cast %593 : vector<1x1x32xf32> to vector<1x32xf32>
    %595 = vector.broadcast %594 : vector<1x32xf32> to vector<32x32xf32>
    %596 = arith.addf %592, %595 : vector<32x32xf32>
    %597 = arith.addf %490, %596 : vector<32x32xf32>
    %c0_226 = arith.constant 0 : index
    %c0_227 = arith.constant 0 : index
    %c0_228 = arith.constant 0 : index
    %598 = vector.load %arg14[%c0_226, %c0_227, %c0_228] : memref<2x1x32xf32, #tpu.memory_space<vmem>>, vector<1x1x32xf32>
    %599 = vector.shape_cast %598 : vector<1x1x32xf32> to vector<1x32xf32>
    %c0_229 = arith.constant 0 : index
    %c0_230 = arith.constant 0 : index
    %c0_231 = arith.constant 0 : index
    %600 = vector.load %arg15[%c0_229, %c0_230, %c0_231] : memref<2x1x32xf32, #tpu.memory_space<vmem>>, vector<1x1x32xf32>
    %601 = vector.shape_cast %600 : vector<1x1x32xf32> to vector<1x32xf32>
    %cst_232 = arith.constant dense<0.000000e+00> : vector<32xf32>
    %602 = vector.multi_reduction <add>, %597, %cst_232 [1] : vector<32x32xf32> to vector<32xf32>
    %603 = vector.shape_cast %602 : vector<32xf32> to vector<32x1xf32>
    %cst_233 = arith.constant 3.200000e+01 : f32
    %604 = vector.broadcast %cst_233 : f32 to vector<32x1xf32>
    %605 = arith.divf %603, %604 : vector<32x1xf32>
    %606 = vector.broadcast %605 : vector<32x1xf32> to vector<32x32xf32>
    %607 = arith.subf %597, %606 : vector<32x32xf32>
    %608 = arith.mulf %607, %607 : vector<32x32xf32>
    %cst_234 = arith.constant dense<0.000000e+00> : vector<32xf32>
    %609 = vector.multi_reduction <add>, %608, %cst_234 [1] : vector<32x32xf32> to vector<32xf32>
    %610 = vector.shape_cast %609 : vector<32xf32> to vector<32x1xf32>
    %cst_235 = arith.constant 3.200000e+01 : f32
    %611 = vector.broadcast %cst_235 : f32 to vector<32x1xf32>
    %612 = arith.divf %610, %611 : vector<32x1xf32>
    %613 = vector.broadcast %605 : vector<32x1xf32> to vector<32x32xf32>
    %614 = arith.subf %597, %613 : vector<32x32xf32>
    %cst_236 = arith.constant 9.99999996E-13 : f32
    %615 = vector.broadcast %cst_236 : f32 to vector<32x1xf32>
    %616 = arith.addf %612, %615 : vector<32x1xf32>
    %617 = math.rsqrt %616 : vector<32x1xf32>
    %618 = vector.broadcast %617 : vector<32x1xf32> to vector<32x32xf32>
    %619 = arith.mulf %614, %618 : vector<32x32xf32>
    %620 = vector.broadcast %599 : vector<1x32xf32> to vector<32x32xf32>
    %621 = arith.mulf %619, %620 : vector<32x32xf32>
    %622 = vector.broadcast %601 : vector<1x32xf32> to vector<32x32xf32>
    %623 = arith.addf %621, %622 : vector<32x32xf32>
    %624 = arith.truncf %623 : vector<32x32xf32> to vector<32x32xbf16>
    %c0_237 = arith.constant 0 : index
    %c0_238 = arith.constant 0 : index
    %c0_239 = arith.constant 0 : index
    %625 = vector.load %arg16[%c0_237, %c0_238, %c0_239] : memref<2x32x64xbf16, #tpu.memory_space<vmem>>, vector<1x32x64xbf16>
    %626 = vector.shape_cast %625 : vector<1x32x64xbf16> to vector<32x64xbf16>
    %cst_240 = arith.constant dense<0.000000e+00> : vector<32x64xf32>
    %627 = tpu.matmul %624, %626, %cst_240 {dimension_numbers = #tpu.dot_dimension_numbers<[1], [0], [0], [1], [0, 0, 1, 1], [], []>} : vector<32x32xbf16>, vector<32x64xbf16>, vector<32x64xf32> -> vector<32x64xf32>
    %c0_241 = arith.constant 0 : index
    %c0_242 = arith.constant 0 : index
    %c0_243 = arith.constant 0 : index
    %628 = vector.load %arg17[%c0_241, %c0_242, %c0_243] : memref<2x1x64xf32, #tpu.memory_space<vmem>>, vector<1x1x64xf32>
    %629 = vector.shape_cast %628 : vector<1x1x64xf32> to vector<1x64xf32>
    %630 = vector.broadcast %629 : vector<1x64xf32> to vector<32x64xf32>
    %631 = arith.addf %627, %630 : vector<32x64xf32>
    %632 = arith.mulf %631, %631 : vector<32x64xf32>
    %633 = arith.mulf %631, %632 : vector<32x64xf32>
    %cst_244 = arith.constant 4.471500e-02 : f32
    %634 = vector.broadcast %cst_244 : f32 to vector<32x64xf32>
    %635 = arith.mulf %634, %633 : vector<32x64xf32>
    %636 = arith.addf %631, %635 : vector<32x64xf32>
    %cst_245 = arith.constant 0.797884583 : f32
    %637 = vector.broadcast %cst_245 : f32 to vector<32x64xf32>
    %638 = arith.mulf %637, %636 : vector<32x64xf32>
    %639 = math.tanh %638 : vector<32x64xf32>
    %cst_246 = arith.constant 1.000000e+00 : f32
    %640 = vector.broadcast %cst_246 : f32 to vector<32x64xf32>
    %641 = arith.addf %640, %639 : vector<32x64xf32>
    %cst_247 = arith.constant 5.000000e-01 : f32
    %642 = vector.broadcast %cst_247 : f32 to vector<32x64xf32>
    %643 = arith.mulf %642, %641 : vector<32x64xf32>
    %644 = arith.mulf %631, %643 : vector<32x64xf32>
    %645 = arith.truncf %644 : vector<32x64xf32> to vector<32x64xbf16>
    %c0_248 = arith.constant 0 : index
    %c0_249 = arith.constant 0 : index
    %c0_250 = arith.constant 0 : index
    %646 = vector.load %arg18[%c0_248, %c0_249, %c0_250] : memref<2x64x32xbf16, #tpu.memory_space<vmem>>, vector<1x64x32xbf16>
    %647 = vector.shape_cast %646 : vector<1x64x32xbf16> to vector<64x32xbf16>
    %cst_251 = arith.constant dense<0.000000e+00> : vector<32x32xf32>
    %648 = tpu.matmul %645, %647, %cst_251 {dimension_numbers = #tpu.dot_dimension_numbers<[1], [0], [0], [1], [0, 0, 1, 1], [], []>} : vector<32x64xbf16>, vector<64x32xbf16>, vector<32x32xf32> -> vector<32x32xf32>
    %c0_252 = arith.constant 0 : index
    %c0_253 = arith.constant 0 : index
    %c0_254 = arith.constant 0 : index
    %649 = vector.load %arg19[%c0_252, %c0_253, %c0_254] : memref<2x1x32xf32, #tpu.memory_space<vmem>>, vector<1x1x32xf32>
    %650 = vector.shape_cast %649 : vector<1x1x32xf32> to vector<1x32xf32>
    %651 = vector.broadcast %650 : vector<1x32xf32> to vector<32x32xf32>
    %652 = arith.addf %648, %651 : vector<32x32xf32>
    %653 = arith.addf %623, %652 : vector<32x32xf32>
    %c0_255 = arith.constant 0 : index
    %c0_256 = arith.constant 0 : index
    %c0_257 = arith.constant 0 : index
    %654 = vector.load %arg20[%c0_255, %c0_256, %c0_257] : memref<2x1x32xf32, #tpu.memory_space<vmem>>, vector<1x1x32xf32>
    %655 = vector.shape_cast %654 : vector<1x1x32xf32> to vector<1x32xf32>
    %c0_258 = arith.constant 0 : index
    %c0_259 = arith.constant 0 : index
    %c0_260 = arith.constant 0 : index
    %656 = vector.load %arg21[%c0_258, %c0_259, %c0_260] : memref<2x1x32xf32, #tpu.memory_space<vmem>>, vector<1x1x32xf32>
    %657 = vector.shape_cast %656 : vector<1x1x32xf32> to vector<1x32xf32>
    %cst_261 = arith.constant dense<0.000000e+00> : vector<32xf32>
    %658 = vector.multi_reduction <add>, %653, %cst_261 [1] : vector<32x32xf32> to vector<32xf32>
    %659 = vector.shape_cast %658 : vector<32xf32> to vector<32x1xf32>
    %cst_262 = arith.constant 3.200000e+01 : f32
    %660 = vector.broadcast %cst_262 : f32 to vector<32x1xf32>
    %661 = arith.divf %659, %660 : vector<32x1xf32>
    %662 = vector.broadcast %661 : vector<32x1xf32> to vector<32x32xf32>
    %663 = arith.subf %653, %662 : vector<32x32xf32>
    %664 = arith.mulf %663, %663 : vector<32x32xf32>
    %cst_263 = arith.constant dense<0.000000e+00> : vector<32xf32>
    %665 = vector.multi_reduction <add>, %664, %cst_263 [1] : vector<32x32xf32> to vector<32xf32>
    %666 = vector.shape_cast %665 : vector<32xf32> to vector<32x1xf32>
    %cst_264 = arith.constant 3.200000e+01 : f32
    %667 = vector.broadcast %cst_264 : f32 to vector<32x1xf32>
    %668 = arith.divf %666, %667 : vector<32x1xf32>
    %669 = vector.broadcast %661 : vector<32x1xf32> to vector<32x32xf32>
    %670 = arith.subf %653, %669 : vector<32x32xf32>
    %cst_265 = arith.constant 9.99999996E-13 : f32
    %671 = vector.broadcast %cst_265 : f32 to vector<32x1xf32>
    %672 = arith.addf %668, %671 : vector<32x1xf32>
    %673 = math.rsqrt %672 : vector<32x1xf32>
    %674 = vector.broadcast %673 : vector<32x1xf32> to vector<32x32xf32>
    %675 = arith.mulf %670, %674 : vector<32x32xf32>
    %676 = vector.broadcast %655 : vector<1x32xf32> to vector<32x32xf32>
    %677 = arith.mulf %675, %676 : vector<32x32xf32>
    %678 = vector.broadcast %657 : vector<1x32xf32> to vector<32x32xf32>
    %679 = arith.addf %677, %678 : vector<32x32xf32>
    %680 = arith.truncf %679 : vector<32x32xf32> to vector<32x32xbf16>
    %c1_266 = arith.constant 1 : index
    %c0_267 = arith.constant 0 : index
    %c0_268 = arith.constant 0 : index
    %681 = vector.load %arg10[%c1_266, %c0_267, %c0_268] : memref<2x32x96xbf16, #tpu.memory_space<vmem>>, vector<1x32x96xbf16>
    %682 = vector.shape_cast %681 : vector<1x32x96xbf16> to vector<32x96xbf16>
    %cst_269 = arith.constant dense<0.000000e+00> : vector<32x96xf32>
    %683 = tpu.matmul %680, %682, %cst_269 {dimension_numbers = #tpu.dot_dimension_numbers<[1], [0], [0], [1], [0, 0, 1, 1], [], []>} : vector<32x32xbf16>, vector<32x96xbf16>, vector<32x96xf32> -> vector<32x96xf32>
    %c1_270 = arith.constant 1 : index
    %c0_271 = arith.constant 0 : index
    %c0_272 = arith.constant 0 : index
    %684 = vector.load %arg11[%c1_270, %c0_271, %c0_272] : memref<2x1x96xf32, #tpu.memory_space<vmem>>, vector<1x1x96xf32>
    %685 = vector.shape_cast %684 : vector<1x1x96xf32> to vector<1x96xf32>
    %686 = vector.broadcast %685 : vector<1x96xf32> to vector<32x96xf32>
    %687 = arith.addf %683, %686 : vector<32x96xf32>
    %688 = vector.extract_strided_slice %687 {offsets = [0, 0], sizes = [32, 8], strides = [1, 1]} : vector<32x96xf32> to vector<32x8xf32>
    %689 = arith.truncf %688 : vector<32x8xf32> to vector<32x8xbf16>
    %690 = vector.extract_strided_slice %687 {offsets = [0, 32], sizes = [32, 8], strides = [1, 1]} : vector<32x96xf32> to vector<32x8xf32>
    %691 = arith.truncf %690 : vector<32x8xf32> to vector<32x8xbf16>
    %692 = vector.extract_strided_slice %687 {offsets = [0, 64], sizes = [32, 8], strides = [1, 1]} : vector<32x96xf32> to vector<32x8xf32>
    %693 = arith.truncf %692 : vector<32x8xf32> to vector<32x8xbf16>
    %cst_273 = arith.constant dense<0.000000e+00> : vector<32x32xf32>
    %694 = tpu.matmul %689, %691, %cst_273 {dimension_numbers = #tpu.dot_dimension_numbers<[1], [1], [0], [0], [0, 0, 1, 0], [], []>} : vector<32x8xbf16>, vector<32x8xbf16>, vector<32x32xf32> -> vector<32x32xf32>
    %cst_274 = arith.constant 0.353553385 : f32
    %695 = vector.broadcast %cst_274 : f32 to vector<32x32xf32>
    %696 = arith.mulf %694, %695 : vector<32x32xf32>
    %697 = arith.addf %696, %491 : vector<32x32xf32>
    %cst_275 = arith.constant dense<0xFF800000> : vector<32xf32>
    %698 = vector.multi_reduction <maximumf>, %697, %cst_275 [1] : vector<32x32xf32> to vector<32xf32>
    %699 = vector.shape_cast %698 : vector<32xf32> to vector<32x1xf32>
    %700 = vector.broadcast %699 : vector<32x1xf32> to vector<32x32xf32>
    %701 = arith.subf %697, %700 : vector<32x32xf32>
    %702 = math.exp %701 : vector<32x32xf32>
    %cst_276 = arith.constant dense<0.000000e+00> : vector<32xf32>
    %703 = vector.multi_reduction <add>, %702, %cst_276 [1] : vector<32x32xf32> to vector<32xf32>
    %704 = vector.shape_cast %703 : vector<32xf32> to vector<32x1xf32>
    %705 = tpu.reciprocal %704 {approx = true} : vector<32x1xf32> -> vector<32x1xf32>
    %706 = vector.broadcast %705 : vector<32x1xf32> to vector<32x32xf32>
    %707 = arith.mulf %702, %706 : vector<32x32xf32>
    %708 = arith.truncf %707 : vector<32x32xf32> to vector<32x32xbf16>
    %cst_277 = arith.constant dense<0.000000e+00> : vector<32x8xf32>
    %709 = tpu.matmul %708, %693, %cst_277 {dimension_numbers = #tpu.dot_dimension_numbers<[1], [0], [0], [1], [0, 0, 1, 1], [], []>} : vector<32x32xbf16>, vector<32x8xbf16>, vector<32x8xf32> -> vector<32x8xf32>
    %710 = vector.extract_strided_slice %687 {offsets = [0, 8], sizes = [32, 8], strides = [1, 1]} : vector<32x96xf32> to vector<32x8xf32>
    %711 = arith.truncf %710 : vector<32x8xf32> to vector<32x8xbf16>
    %712 = vector.extract_strided_slice %687 {offsets = [0, 40], sizes = [32, 8], strides = [1, 1]} : vector<32x96xf32> to vector<32x8xf32>
    %713 = arith.truncf %712 : vector<32x8xf32> to vector<32x8xbf16>
    %714 = vector.extract_strided_slice %687 {offsets = [0, 72], sizes = [32, 8], strides = [1, 1]} : vector<32x96xf32> to vector<32x8xf32>
    %715 = arith.truncf %714 : vector<32x8xf32> to vector<32x8xbf16>
    %cst_278 = arith.constant dense<0.000000e+00> : vector<32x32xf32>
    %716 = tpu.matmul %711, %713, %cst_278 {dimension_numbers = #tpu.dot_dimension_numbers<[1], [1], [0], [0], [0, 0, 1, 0], [], []>} : vector<32x8xbf16>, vector<32x8xbf16>, vector<32x32xf32> -> vector<32x32xf32>
    %cst_279 = arith.constant 0.353553385 : f32
    %717 = vector.broadcast %cst_279 : f32 to vector<32x32xf32>
    %718 = arith.mulf %716, %717 : vector<32x32xf32>
    %719 = arith.addf %718, %491 : vector<32x32xf32>
    %cst_280 = arith.constant dense<0xFF800000> : vector<32xf32>
    %720 = vector.multi_reduction <maximumf>, %719, %cst_280 [1] : vector<32x32xf32> to vector<32xf32>
    %721 = vector.shape_cast %720 : vector<32xf32> to vector<32x1xf32>
    %722 = vector.broadcast %721 : vector<32x1xf32> to vector<32x32xf32>
    %723 = arith.subf %719, %722 : vector<32x32xf32>
    %724 = math.exp %723 : vector<32x32xf32>
    %cst_281 = arith.constant dense<0.000000e+00> : vector<32xf32>
    %725 = vector.multi_reduction <add>, %724, %cst_281 [1] : vector<32x32xf32> to vector<32xf32>
    %726 = vector.shape_cast %725 : vector<32xf32> to vector<32x1xf32>
    %727 = tpu.reciprocal %726 {approx = true} : vector<32x1xf32> -> vector<32x1xf32>
    %728 = vector.broadcast %727 : vector<32x1xf32> to vector<32x32xf32>
    %729 = arith.mulf %724, %728 : vector<32x32xf32>
    %730 = arith.truncf %729 : vector<32x32xf32> to vector<32x32xbf16>
    %cst_282 = arith.constant dense<0.000000e+00> : vector<32x8xf32>
    %731 = tpu.matmul %730, %715, %cst_282 {dimension_numbers = #tpu.dot_dimension_numbers<[1], [0], [0], [1], [0, 0, 1, 1], [], []>} : vector<32x32xbf16>, vector<32x8xbf16>, vector<32x8xf32> -> vector<32x8xf32>
    %732 = vector.extract_strided_slice %687 {offsets = [0, 16], sizes = [32, 8], strides = [1, 1]} : vector<32x96xf32> to vector<32x8xf32>
    %733 = arith.truncf %732 : vector<32x8xf32> to vector<32x8xbf16>
    %734 = vector.extract_strided_slice %687 {offsets = [0, 48], sizes = [32, 8], strides = [1, 1]} : vector<32x96xf32> to vector<32x8xf32>
    %735 = arith.truncf %734 : vector<32x8xf32> to vector<32x8xbf16>
    %736 = vector.extract_strided_slice %687 {offsets = [0, 80], sizes = [32, 8], strides = [1, 1]} : vector<32x96xf32> to vector<32x8xf32>
    %737 = arith.truncf %736 : vector<32x8xf32> to vector<32x8xbf16>
    %cst_283 = arith.constant dense<0.000000e+00> : vector<32x32xf32>
    %738 = tpu.matmul %733, %735, %cst_283 {dimension_numbers = #tpu.dot_dimension_numbers<[1], [1], [0], [0], [0, 0, 1, 0], [], []>} : vector<32x8xbf16>, vector<32x8xbf16>, vector<32x32xf32> -> vector<32x32xf32>
    %cst_284 = arith.constant 0.353553385 : f32
    %739 = vector.broadcast %cst_284 : f32 to vector<32x32xf32>
    %740 = arith.mulf %738, %739 : vector<32x32xf32>
    %741 = arith.addf %740, %491 : vector<32x32xf32>
    %cst_285 = arith.constant dense<0xFF800000> : vector<32xf32>
    %742 = vector.multi_reduction <maximumf>, %741, %cst_285 [1] : vector<32x32xf32> to vector<32xf32>
    %743 = vector.shape_cast %742 : vector<32xf32> to vector<32x1xf32>
    %744 = vector.broadcast %743 : vector<32x1xf32> to vector<32x32xf32>
    %745 = arith.subf %741, %744 : vector<32x32xf32>
    %746 = math.exp %745 : vector<32x32xf32>
    %cst_286 = arith.constant dense<0.000000e+00> : vector<32xf32>
    %747 = vector.multi_reduction <add>, %746, %cst_286 [1] : vector<32x32xf32> to vector<32xf32>
    %748 = vector.shape_cast %747 : vector<32xf32> to vector<32x1xf32>
    %749 = tpu.reciprocal %748 {approx = true} : vector<32x1xf32> -> vector<32x1xf32>
    %750 = vector.broadcast %749 : vector<32x1xf32> to vector<32x32xf32>
    %751 = arith.mulf %746, %750 : vector<32x32xf32>
    %752 = arith.truncf %751 : vector<32x32xf32> to vector<32x32xbf16>
    %cst_287 = arith.constant dense<0.000000e+00> : vector<32x8xf32>
    %753 = tpu.matmul %752, %737, %cst_287 {dimension_numbers = #tpu.dot_dimension_numbers<[1], [0], [0], [1], [0, 0, 1, 1], [], []>} : vector<32x32xbf16>, vector<32x8xbf16>, vector<32x8xf32> -> vector<32x8xf32>
    %754 = vector.extract_strided_slice %687 {offsets = [0, 24], sizes = [32, 8], strides = [1, 1]} : vector<32x96xf32> to vector<32x8xf32>
    %755 = arith.truncf %754 : vector<32x8xf32> to vector<32x8xbf16>
    %756 = vector.extract_strided_slice %687 {offsets = [0, 56], sizes = [32, 8], strides = [1, 1]} : vector<32x96xf32> to vector<32x8xf32>
    %757 = arith.truncf %756 : vector<32x8xf32> to vector<32x8xbf16>
    %758 = vector.extract_strided_slice %687 {offsets = [0, 88], sizes = [32, 8], strides = [1, 1]} : vector<32x96xf32> to vector<32x8xf32>
    %759 = arith.truncf %758 : vector<32x8xf32> to vector<32x8xbf16>
    %cst_288 = arith.constant dense<0.000000e+00> : vector<32x32xf32>
    %760 = tpu.matmul %755, %757, %cst_288 {dimension_numbers = #tpu.dot_dimension_numbers<[1], [1], [0], [0], [0, 0, 1, 0], [], []>} : vector<32x8xbf16>, vector<32x8xbf16>, vector<32x32xf32> -> vector<32x32xf32>
    %cst_289 = arith.constant 0.353553385 : f32
    %761 = vector.broadcast %cst_289 : f32 to vector<32x32xf32>
    %762 = arith.mulf %760, %761 : vector<32x32xf32>
    %763 = arith.addf %762, %491 : vector<32x32xf32>
    %cst_290 = arith.constant dense<0xFF800000> : vector<32xf32>
    %764 = vector.multi_reduction <maximumf>, %763, %cst_290 [1] : vector<32x32xf32> to vector<32xf32>
    %765 = vector.shape_cast %764 : vector<32xf32> to vector<32x1xf32>
    %766 = vector.broadcast %765 : vector<32x1xf32> to vector<32x32xf32>
    %767 = arith.subf %763, %766 : vector<32x32xf32>
    %768 = math.exp %767 : vector<32x32xf32>
    %cst_291 = arith.constant dense<0.000000e+00> : vector<32xf32>
    %769 = vector.multi_reduction <add>, %768, %cst_291 [1] : vector<32x32xf32> to vector<32xf32>
    %770 = vector.shape_cast %769 : vector<32xf32> to vector<32x1xf32>
    %771 = tpu.reciprocal %770 {approx = true} : vector<32x1xf32> -> vector<32x1xf32>
    %772 = vector.broadcast %771 : vector<32x1xf32> to vector<32x32xf32>
    %773 = arith.mulf %768, %772 : vector<32x32xf32>
    %774 = arith.truncf %773 : vector<32x32xf32> to vector<32x32xbf16>
    %cst_292 = arith.constant dense<0.000000e+00> : vector<32x8xf32>
    %775 = tpu.matmul %774, %759, %cst_292 {dimension_numbers = #tpu.dot_dimension_numbers<[1], [0], [0], [1], [0, 0, 1, 1], [], []>} : vector<32x32xbf16>, vector<32x8xbf16>, vector<32x8xf32> -> vector<32x8xf32>
    %776 = tpu.concatenate %709, %731, %753, %775 in 1 : vector<32x8xf32>, vector<32x8xf32>, vector<32x8xf32>, vector<32x8xf32> -> vector<32x32xf32>
    %777 = arith.truncf %776 : vector<32x32xf32> to vector<32x32xbf16>
    %c1_293 = arith.constant 1 : index
    %c0_294 = arith.constant 0 : index
    %c0_295 = arith.constant 0 : index
    %778 = vector.load %arg12[%c1_293, %c0_294, %c0_295] : memref<2x32x32xbf16, #tpu.memory_space<vmem>>, vector<1x32x32xbf16>
    %779 = vector.shape_cast %778 : vector<1x32x32xbf16> to vector<32x32xbf16>
    %cst_296 = arith.constant dense<0.000000e+00> : vector<32x32xf32>
    %780 = tpu.matmul %777, %779, %cst_296 {dimension_numbers = #tpu.dot_dimension_numbers<[1], [0], [0], [1], [0, 0, 1, 1], [], []>} : vector<32x32xbf16>, vector<32x32xbf16>, vector<32x32xf32> -> vector<32x32xf32>
    %c1_297 = arith.constant 1 : index
    %c0_298 = arith.constant 0 : index
    %c0_299 = arith.constant 0 : index
    %781 = vector.load %arg13[%c1_297, %c0_298, %c0_299] : memref<2x1x32xf32, #tpu.memory_space<vmem>>, vector<1x1x32xf32>
    %782 = vector.shape_cast %781 : vector<1x1x32xf32> to vector<1x32xf32>
    %783 = vector.broadcast %782 : vector<1x32xf32> to vector<32x32xf32>
    %784 = arith.addf %780, %783 : vector<32x32xf32>
    %785 = arith.addf %679, %784 : vector<32x32xf32>
    %c1_300 = arith.constant 1 : index
    %c0_301 = arith.constant 0 : index
    %c0_302 = arith.constant 0 : index
    %786 = vector.load %arg14[%c1_300, %c0_301, %c0_302] : memref<2x1x32xf32, #tpu.memory_space<vmem>>, vector<1x1x32xf32>
    %787 = vector.shape_cast %786 : vector<1x1x32xf32> to vector<1x32xf32>
    %c1_303 = arith.constant 1 : index
    %c0_304 = arith.constant 0 : index
    %c0_305 = arith.constant 0 : index
    %788 = vector.load %arg15[%c1_303, %c0_304, %c0_305] : memref<2x1x32xf32, #tpu.memory_space<vmem>>, vector<1x1x32xf32>
    %789 = vector.shape_cast %788 : vector<1x1x32xf32> to vector<1x32xf32>
    %cst_306 = arith.constant dense<0.000000e+00> : vector<32xf32>
    %790 = vector.multi_reduction <add>, %785, %cst_306 [1] : vector<32x32xf32> to vector<32xf32>
    %791 = vector.shape_cast %790 : vector<32xf32> to vector<32x1xf32>
    %cst_307 = arith.constant 3.200000e+01 : f32
    %792 = vector.broadcast %cst_307 : f32 to vector<32x1xf32>
    %793 = arith.divf %791, %792 : vector<32x1xf32>
    %794 = vector.broadcast %793 : vector<32x1xf32> to vector<32x32xf32>
    %795 = arith.subf %785, %794 : vector<32x32xf32>
    %796 = arith.mulf %795, %795 : vector<32x32xf32>
    %cst_308 = arith.constant dense<0.000000e+00> : vector<32xf32>
    %797 = vector.multi_reduction <add>, %796, %cst_308 [1] : vector<32x32xf32> to vector<32xf32>
    %798 = vector.shape_cast %797 : vector<32xf32> to vector<32x1xf32>
    %cst_309 = arith.constant 3.200000e+01 : f32
    %799 = vector.broadcast %cst_309 : f32 to vector<32x1xf32>
    %800 = arith.divf %798, %799 : vector<32x1xf32>
    %801 = vector.broadcast %793 : vector<32x1xf32> to vector<32x32xf32>
    %802 = arith.subf %785, %801 : vector<32x32xf32>
    %cst_310 = arith.constant 9.99999996E-13 : f32
    %803 = vector.broadcast %cst_310 : f32 to vector<32x1xf32>
    %804 = arith.addf %800, %803 : vector<32x1xf32>
    %805 = math.rsqrt %804 : vector<32x1xf32>
    %806 = vector.broadcast %805 : vector<32x1xf32> to vector<32x32xf32>
    %807 = arith.mulf %802, %806 : vector<32x32xf32>
    %808 = vector.broadcast %787 : vector<1x32xf32> to vector<32x32xf32>
    %809 = arith.mulf %807, %808 : vector<32x32xf32>
    %810 = vector.broadcast %789 : vector<1x32xf32> to vector<32x32xf32>
    %811 = arith.addf %809, %810 : vector<32x32xf32>
    %812 = arith.truncf %811 : vector<32x32xf32> to vector<32x32xbf16>
    %c1_311 = arith.constant 1 : index
    %c0_312 = arith.constant 0 : index
    %c0_313 = arith.constant 0 : index
    %813 = vector.load %arg16[%c1_311, %c0_312, %c0_313] : memref<2x32x64xbf16, #tpu.memory_space<vmem>>, vector<1x32x64xbf16>
    %814 = vector.shape_cast %813 : vector<1x32x64xbf16> to vector<32x64xbf16>
    %cst_314 = arith.constant dense<0.000000e+00> : vector<32x64xf32>
    %815 = tpu.matmul %812, %814, %cst_314 {dimension_numbers = #tpu.dot_dimension_numbers<[1], [0], [0], [1], [0, 0, 1, 1], [], []>} : vector<32x32xbf16>, vector<32x64xbf16>, vector<32x64xf32> -> vector<32x64xf32>
    %c1_315 = arith.constant 1 : index
    %c0_316 = arith.constant 0 : index
    %c0_317 = arith.constant 0 : index
    %816 = vector.load %arg17[%c1_315, %c0_316, %c0_317] : memref<2x1x64xf32, #tpu.memory_space<vmem>>, vector<1x1x64xf32>
    %817 = vector.shape_cast %816 : vector<1x1x64xf32> to vector<1x64xf32>
    %818 = vector.broadcast %817 : vector<1x64xf32> to vector<32x64xf32>
    %819 = arith.addf %815, %818 : vector<32x64xf32>
    %820 = arith.mulf %819, %819 : vector<32x64xf32>
    %821 = arith.mulf %819, %820 : vector<32x64xf32>
    %cst_318 = arith.constant 4.471500e-02 : f32
    %822 = vector.broadcast %cst_318 : f32 to vector<32x64xf32>
    %823 = arith.mulf %822, %821 : vector<32x64xf32>
    %824 = arith.addf %819, %823 : vector<32x64xf32>
    %cst_319 = arith.constant 0.797884583 : f32
    %825 = vector.broadcast %cst_319 : f32 to vector<32x64xf32>
    %826 = arith.mulf %825, %824 : vector<32x64xf32>
    %827 = math.tanh %826 : vector<32x64xf32>
    %cst_320 = arith.constant 1.000000e+00 : f32
    %828 = vector.broadcast %cst_320 : f32 to vector<32x64xf32>
    %829 = arith.addf %828, %827 : vector<32x64xf32>
    %cst_321 = arith.constant 5.000000e-01 : f32
    %830 = vector.broadcast %cst_321 : f32 to vector<32x64xf32>
    %831 = arith.mulf %830, %829 : vector<32x64xf32>
    %832 = arith.mulf %819, %831 : vector<32x64xf32>
    %833 = arith.truncf %832 : vector<32x64xf32> to vector<32x64xbf16>
    %c1_322 = arith.constant 1 : index
    %c0_323 = arith.constant 0 : index
    %c0_324 = arith.constant 0 : index
    %834 = vector.load %arg18[%c1_322, %c0_323, %c0_324] : memref<2x64x32xbf16, #tpu.memory_space<vmem>>, vector<1x64x32xbf16>
    %835 = vector.shape_cast %834 : vector<1x64x32xbf16> to vector<64x32xbf16>
    %cst_325 = arith.constant dense<0.000000e+00> : vector<32x32xf32>
    %836 = tpu.matmul %833, %835, %cst_325 {dimension_numbers = #tpu.dot_dimension_numbers<[1], [0], [0], [1], [0, 0, 1, 1], [], []>} : vector<32x64xbf16>, vector<64x32xbf16>, vector<32x32xf32> -> vector<32x32xf32>
    %c1_326 = arith.constant 1 : index
    %c0_327 = arith.constant 0 : index
    %c0_328 = arith.constant 0 : index
    %837 = vector.load %arg19[%c1_326, %c0_327, %c0_328] : memref<2x1x32xf32, #tpu.memory_space<vmem>>, vector<1x1x32xf32>
    %838 = vector.shape_cast %837 : vector<1x1x32xf32> to vector<1x32xf32>
    %839 = vector.broadcast %838 : vector<1x32xf32> to vector<32x32xf32>
    %840 = arith.addf %836, %839 : vector<32x32xf32>
    %841 = arith.addf %811, %840 : vector<32x32xf32>
    %c1_329 = arith.constant 1 : index
    %c0_330 = arith.constant 0 : index
    %c0_331 = arith.constant 0 : index
    %842 = vector.load %arg20[%c1_329, %c0_330, %c0_331] : memref<2x1x32xf32, #tpu.memory_space<vmem>>, vector<1x1x32xf32>
    %843 = vector.shape_cast %842 : vector<1x1x32xf32> to vector<1x32xf32>
    %c1_332 = arith.constant 1 : index
    %c0_333 = arith.constant 0 : index
    %c0_334 = arith.constant 0 : index
    %844 = vector.load %arg21[%c1_332, %c0_333, %c0_334] : memref<2x1x32xf32, #tpu.memory_space<vmem>>, vector<1x1x32xf32>
    %845 = vector.shape_cast %844 : vector<1x1x32xf32> to vector<1x32xf32>
    %cst_335 = arith.constant dense<0.000000e+00> : vector<32xf32>
    %846 = vector.multi_reduction <add>, %841, %cst_335 [1] : vector<32x32xf32> to vector<32xf32>
    %847 = vector.shape_cast %846 : vector<32xf32> to vector<32x1xf32>
    %cst_336 = arith.constant 3.200000e+01 : f32
    %848 = vector.broadcast %cst_336 : f32 to vector<32x1xf32>
    %849 = arith.divf %847, %848 : vector<32x1xf32>
    %850 = vector.broadcast %849 : vector<32x1xf32> to vector<32x32xf32>
    %851 = arith.subf %841, %850 : vector<32x32xf32>
    %852 = arith.mulf %851, %851 : vector<32x32xf32>
    %cst_337 = arith.constant dense<0.000000e+00> : vector<32xf32>
    %853 = vector.multi_reduction <add>, %852, %cst_337 [1] : vector<32x32xf32> to vector<32xf32>
    %854 = vector.shape_cast %853 : vector<32xf32> to vector<32x1xf32>
    %cst_338 = arith.constant 3.200000e+01 : f32
    %855 = vector.broadcast %cst_338 : f32 to vector<32x1xf32>
    %856 = arith.divf %854, %855 : vector<32x1xf32>
    %857 = vector.broadcast %849 : vector<32x1xf32> to vector<32x32xf32>
    %858 = arith.subf %841, %857 : vector<32x32xf32>
    %cst_339 = arith.constant 9.99999996E-13 : f32
    %859 = vector.broadcast %cst_339 : f32 to vector<32x1xf32>
    %860 = arith.addf %856, %859 : vector<32x1xf32>
    %861 = math.rsqrt %860 : vector<32x1xf32>
    %862 = vector.broadcast %861 : vector<32x1xf32> to vector<32x32xf32>
    %863 = arith.mulf %858, %862 : vector<32x32xf32>
    %864 = vector.broadcast %843 : vector<1x32xf32> to vector<32x32xf32>
    %865 = arith.mulf %863, %864 : vector<32x32xf32>
    %866 = vector.broadcast %845 : vector<1x32xf32> to vector<32x32xf32>
    %867 = arith.addf %865, %866 : vector<32x32xf32>
    %c0_340 = arith.constant 0 : index
    %c0_341 = arith.constant 0 : index
    %868 = vector.load %arg9[%c0_340, %c0_341] : memref<4x32xbf16, #tpu.memory_space<vmem>>, vector<4x32xbf16>
    %869 = arith.truncf %867 : vector<32x32xf32> to vector<32x32xbf16>
    %cst_342 = arith.constant dense<0.000000e+00> : vector<4x32xf32>
    %870 = tpu.matmul %868, %869, %cst_342 {dimension_numbers = #tpu.dot_dimension_numbers<[1], [0], [0], [1], [0, 0, 1, 1], [], []>} : vector<4x32xbf16>, vector<32x32xbf16>, vector<4x32xf32> -> vector<4x32xf32>
    %871 = arith.truncf %870 : vector<4x32xf32> to vector<4x32xbf16>
    %c0_343 = arith.constant 0 : index
    %c0_344 = arith.constant 0 : index
    %872 = vector.load %arg24[%c0_343, %c0_344] : memref<32x32xbf16, #tpu.memory_space<vmem>>, vector<32x32xbf16>
    %cst_345 = arith.constant dense<0.000000e+00> : vector<4x32xf32>
    %873 = tpu.matmul %871, %872, %cst_345 {dimension_numbers = #tpu.dot_dimension_numbers<[1], [0], [0], [1], [0, 0, 1, 1], [], []>} : vector<4x32xbf16>, vector<32x32xbf16>, vector<4x32xf32> -> vector<4x32xf32>
    %c0_346 = arith.constant 0 : index
    %c0_347 = arith.constant 0 : index
    %874 = vector.load %arg25[%c0_346, %c0_347] : memref<1x32xf32, #tpu.memory_space<vmem>>, vector<1x32xf32>
    %875 = vector.broadcast %874 : vector<1x32xf32> to vector<4x32xf32>
    %876 = arith.addf %873, %875 : vector<4x32xf32>
    %877 = math.tanh %876 : vector<4x32xf32>
    %c0_348 = arith.constant 0 : index
    %c0_349 = arith.constant 0 : index
    %878 = vector.load %arg29[%c0_348, %c0_349] : memref<4x32xf32, #tpu.memory_space<vmem>>, vector<4x32xf32>
    tpu.vector_store %arg29[%c0_348, %c0_349], %877 {strides = array<i32>} : memref<4x32xf32, #tpu.memory_space<vmem>>, vector<4x32xf32>,
    %879 = arith.truncf %877 : vector<4x32xf32> to vector<4x32xbf16>
    %c0_350 = arith.constant 0 : index
    %c0_351 = arith.constant 0 : index
    %880 = vector.load %arg26[%c0_350, %c0_351] : memref<32x2xbf16, #tpu.memory_space<vmem>>, vector<32x2xbf16>
    %cst_352 = arith.constant dense<0.000000e+00> : vector<4x2xf32>
    %881 = tpu.matmul %879, %880, %cst_352 {dimension_numbers = #tpu.dot_dimension_numbers<[1], [0], [0], [1], [0, 0, 1, 1], [], []>} : vector<4x32xbf16>, vector<32x2xbf16>, vector<4x2xf32> -> vector<4x2xf32>
    %c0_353 = arith.constant 0 : index
    %c0_354 = arith.constant 0 : index
    %882 = vector.load %arg27[%c0_353, %c0_354] : memref<1x2xf32, #tpu.memory_space<vmem>>, vector<1x2xf32>
    %883 = vector.broadcast %882 : vector<1x2xf32> to vector<4x2xf32>
    %884 = arith.addf %881, %883 : vector<4x2xf32>
    %c0_355 = arith.constant 0 : index
    %c0_356 = arith.constant 0 : index
    %885 = vector.load %arg28[%c0_355, %c0_356] : memref<4x2xf32, #tpu.memory_space<vmem>>, vector<4x2xf32>
    tpu.vector_store %arg28[%c0_355, %c0_356], %884 {strides = array<i32>} : memref<4x2xf32, #tpu.memory_space<vmem>>, vector<4x2xf32>,
    return
  }
}

</mosaic_0001>

<bundles_post_ra>
// kernel: bert_rnp2_share_forward.1
= control target key start
LH: loop header
LB: loop body
LE: loop exit
PB: predicated region body
PF: predicated region fallthrough
CT: control target
= control target key end

     0   :  { %s7552_s6 = smov 1   ;;  %vm134_vm0 = vcmask 261120   ;;  %v6458_v18 = vmov 0.0   ;;  %s6459_s10 = smov 10   ;;  %vm6460_vm1 = vmmov 0   ;;  %vm252_vm2 = vcmask 64512   ;;  %s7551_s0 = inlined_call_operand.smem [shape: u32[32], index: -1, kind: input, shape index: {}] }
   0x1   :  { %s6511_s5 = sld [smem:[%s7551_s0]]   ;;  %5562 = vmatprep.subr.bf16.mxu0 %v6458_v18  ;;  %5566 = vmatprep.mubr.msk.bf16.mxu0 %vm6460_vm1, %v6458_v18  ;;  %s6461_s14 = smov 3   ;;  %vm304_vm3 = vcmask 130048   ;;  %vm778_vm4 = vcmask 195584   ;;  %vm1021_vm5 = vcmask 523264   ;;  %vm2172_vm8 = vcmask 7168  }
   0x2   :  { %s6517_s9 = sld [smem:[%s7551_s0 + %s7552_s6]]   ;;  %5570 = vmatprep.subr.bf16.mxu1 %v6458_v18  ;;  %5572 = vmatprep.mubr.msk.bf16.mxu1 %vm6460_vm1, %v6458_v18  ;;  %s6462_s18 = smov 4   ;;  %vm5054_vm9 = vcmask 257024   ;;  %vm5123_vm10 = vcmask 11264  }
   0x3   :  { %s6531_s13 = sld [smem:[%s7551_s0 + %s6459_s10]]   ;;  %s6463_s22 = smov 11  }
   0x4   :  { %s6545_s17 = sld [smem:[%s7551_s0 + %s6461_s14]]   ;;  %s7578_s26 = smov 88  }
   0x5   :  { %s6550_s21 = sld [smem:[%s7551_s0 + %s6462_s18]]   ;;  %s7580_s27 = smov 96  }
   0x6   :  { %s6566_s25 = sld [smem:[%s7551_s0 + %s6463_s22]]   ;;  %s7576_s28 = smov 120  }
   0x7   :  { %v128_v0 = vld [vmem:[%s6511_s5] sm:$0xff]  ;;  %v129_v2 = vld [vmem:[%s6511_s5 + $0x8] sm:$0xff]  ;;  %s7572_s29 = smov 112   ;;  %s7574_s30 = smov 80  }
   0x8   :  { %v130_v1 = vld [vmem:[%s6517_s9] sm:$0xff]  ;;  %v131_v4 = vld [vmem:[%s6517_s9 + $0x8] sm:$0xff]  ;;  %s7570_s1 = smov 104   ;;  %s7568_s2 = smov 72  }
   0x9   :  { %v132_v3 = vadd.f32 %v130_v1, %v128_v0  ;;  %v133_v5 = vadd.f32 %v131_v4, %v129_v2  ;;  %v6121_v19 = vld [vmem:[%s6531_s13] sm:$0xff]   ;;  %v6122_v20 = vld [vmem:[%s6531_s13 + $0x8] sm:$0xff]   ;;  %s6471_s3 = smov 7   ;;  %s7566_s10 = smov 64  }
   0xa   :  { %5563 = vmatpush3.bf16.msra.mxu0 %v6121_v19  ;;  %v5172_v29 = vld [vmem:[%s6545_s17] ss:$0 sm:$0xff]  ;;  %s6609_s8 = sld [smem:[%s7551_s0 + %s6471_s3]]   ;;  %s7564_s11 = smov 48  }
   0xb   :  { %v135_v6 = vsel %vm134_vm0, %v132_v3, 0.0  ;;  %v138_v7 = vsel %vm134_vm0, %v133_v5, 0.0  ;;  %5564 = vmatprep.subr.bf16.mxu0 %v6458_v18  ;;  %v5173_v33 = vld [vmem:[%s6550_s21] ss:$0 sm:$0xff]  ;;  %s7562_s12 = smov 40   ;;  %s7560_s14 = smov 56  }
   0xc   :  { %136 = vadd.xlane.f32.xlu0 %v135_v6  ;;  %v5174_v38 = vld [vmem:[%s6566_s25] ss:$0 sm:$0xff]  ;;  %s7556_s15 = smov 16   ;;  %s7554_s20 = smov 24  }
   0xd   :  { %s6669_s19 = sld [smem:[%s7551_s0 + %s7556_s15]]   ;;  %s6478_s3 = smov 12  }
   0xe   :  { %5565 = vmatpush3.bf16.msra.mxu0 %v6122_v20  ;;  %s6675_s24 = sld [smem:[%s7551_s0 + %s7554_s20]]   ;;  %s7558_s16 = smov 8  }
   0xf   :  { %5576 = vmatprep.subr.bf16.mxu0 %v6458_v18  ;;  %s6680_s6 = sld [smem:[%s7551_s0 + %s6478_s3]]   ;;  %s6480_s18 = smov 13  }
  0x10   :  { %139 = vadd.xlane.f32.xlu0 %v138_v7  ;;  %v6612_v58 = vld [vmem:[%s6609_s8] sm:$0xff]  ;;  %v6615_v62 = vld [vmem:[%s6609_s8 + $0x8] sm:$0xff]  ;;  %s6701_s3 = sld [smem:[%s7551_s0 + %s6480_s18]]   ;;  %s6481_s4 = smov 14  }
  0x11   :  { %s6717_s22 = sld [smem:[%s7551_s0 + %s6481_s4]]   ;;  %s6482_s23 = smov 15  }
  0x12   :  { %s6484_s18 = smov 17   ;;  %s6485_s4 = smov 19  }
  0x14   :  { %7597 = sst [smem:[#allocation2_spill]] %s6675_s24  ;;  %s6490_s24 = smov 23  }
  0x17   :  { %7598 = sst [smem:[#allocation3_spill]] %s6717_s22 }
  0x99   :  { %v137_v8 = vpop.xlane.xlu0 %136 }
  0x9a   :  { %v142_v9 = vmul.f32 0.03125, %v137_v8 }
  0x9c   :  { %v144_v10 = vsub.f32 %v132_v3, %v142_v9 }
  0x9d   :  { %v140_v11 = vpop.xlane.xlu0 %139 }
  0x9e   :  { %v143_v12 = vmul.f32 0.03125, %v140_v11  ;;  %v146_v13 = vmul.f32 %v144_v10, %v144_v10 }
  0xa0   :  { %v145_v14 = vsub.f32 %v133_v5, %v143_v12  ;;  %v148_v15 = vsel %vm134_vm0, %v146_v13, 0.0 }
  0xa1   :  { %149 = vadd.xlane.f32.xlu1 %v148_v15 }
  0xa2   :  { %v147_v16 = vmul.f32 %v145_v14, %v145_v14 }
  0xa4   :  { %v151_v17 = vsel %vm134_vm0, %v147_v16, 0.0 }
  0xa5   :  { %152 = vadd.xlane.f32.xlu1 %v151_v17 }
 0x12e   :  { %v150_v21 = vpop.xlane.xlu1 %149 }
 0x12f   :  { %v154_v22 = vmul.f32 0.03125, %v150_v21 }
 0x131   :  { %v156_v23 = vadd.f32 1e-12, %v154_v22 }
 0x132   :  { %v153_v24 = vpop.xlane.xlu1 %152 }
 0x133   :  { %6167 = vrsqrt.f32 %v156_v23  ;;  %v155_v25 = vmul.f32 0.03125, %v153_v24 }
 0x135   :  { %v157_v26 = vadd.f32 1e-12, %v155_v25 }
 0x137   :  { %6169 = vrsqrt.f32 %v157_v26 }
 0x13d   :  { %v6168_v27 = vpop.eup %6167 }
 0x13e   :  { %v160_v28 = vmul.f32 %v6168_v27, %v144_v10 }
 0x140   :  { %v168_v32 = vmul.f32 %v5172_v29, %v160_v28 }
 0x141   :  { %v6170_v30 = vpop.eup %6169 }
 0x142   :  { %v161_v31 = vmul.f32 %v6170_v30, %v145_v14  ;;  %v6554_v35 = vadd.f32 %v5173_v33, %v168_v32 }
 0x144   :  { %v169_v34 = vmul.f32 %v5172_v29, %v161_v31 }
 0x146   :  { %v6556_v36 = vadd.f32 %v5173_v33, %v169_v34 }
 0x148   :  { %v180_v37 = vpack.c.bf16 %v6556_v36, %v6554_v35 }
 0x14a   :  { %5567 = vmatmul.mubr.msk.bf16.vlgmr.msra.gmra.mrb[0].mxu0 %vm134_vm0, %v180_v37 }
 0x14b   :  { %5578 = vmatprep.mubr.msk.bf16.mxu0 %vm6460_vm1, %v6458_v18 }
 0x21d   :  { %v241_v39 = vpop.f32.mrb[0].mxu0 }
 0x21e   :  { %v5568_v40 = vpop.f32.mrb[1].mxu0  ;;  %v242_v42 = vadd.f32 %v5174_v38, %v241_v39 }
 0x21f   :  { %v244_v41 = vpop.f32.mrb[2].mxu0 }
 0x220   :  { %v245_v43 = vadd.f32 %v5174_v38, %v244_v41  ;;  %v5569_v44 = vpop.f32.mrb[3].mxu0 }
 0x222   :  { %v6569_v45 = vpack.c.bf16 %v245_v43, %v242_v42 }
 0x224   :  { %377 = vrot.lane.b32.xlu1 %v6569_v45, %s7578_s26  ;;  %250 = vrot.lane.b32.xlu0 %v6569_v45, %s7580_s27 }
 0x228   :  { %375 = vrot.lane.b32.xlu1 %v6569_v45, %s7576_s28  ;;  %500 = vrot.lane.b32.xlu0 %v6569_v45, %s7572_s29 }
 0x22c   :  { %502 = vrot.lane.b32.xlu1 %v6569_v45, %s7574_s30  ;;  %625 = vrot.lane.b32.xlu0 %v6569_v45, %s7570_s1 }
 0x230   :  { %627 = vrot.lane.b32.xlu1 %v6569_v45, %s7568_s2 }
 0x296   :  { %v251_v46 = vpop.permute.xlu0 %250  ;;  %v378_v48 = vpop.permute.xlu1 %377 }
 0x297   :  { %v257_v47 = vsel %vm252_vm2, %v251_v46, 0  ;;  %v383_v50 = vsel %vm252_vm2, %v378_v48, 0 }
 0x298   :  { %5571 = vmatpush3.bf16.xpose.msra.mxu1 %v257_v47 }
 0x299   :  { %5582 = vmatprep.subr.bf16.mxu1 %v6458_v18 }
 0x29a   :  { %v376_v49 = vpop.permute.xlu1 %375  ;;  %v501_v54 = vpop.permute.xlu0 %500 }
 0x29e   :  { %v503_v51 = vpop.permute.xlu1 %502  ;;  %v626_v56 = vpop.permute.xlu0 %625 }
 0x29f   :  { %5573 = vmatmul.mubr.msk.bf16.vlgmr.msra.gmra.mrb[0].mxu1 %vm252_vm2, %v6569_v45  ;;  %v508_v52 = vsel %vm252_vm2, %v503_v51, 0 }
 0x2a0   :  { %5583 = vmatpush3.bf16.xpose.msra.mxu1 %v383_v50  ;;  %5584 = vmatprep.mubr.msk.bf16.mxu1 %vm6460_vm1, %v6458_v18 }
 0x2a1   :  { %5594 = vmatprep.subr.bf16.mxu1 %v6458_v18 }
 0x2a2   :  { %v628_v53 = vpop.permute.xlu1 %627 }
 0x2a3   :  { %v633_v55 = vsel %vm252_vm2, %v628_v53, 0 }
 0x2a7   :  { %5585 = vmatmul.mubr.msk.bf16.vlgmr.msra.gmra.mrb[4].mxu1 %vm252_vm2, %v376_v49 }
 0x2a8   :  { %5595 = vmatpush3.bf16.xpose.msra.mxu1 %v508_v52  ;;  %5596 = vmatprep.mubr.msk.bf16.mxu1 %vm6460_vm1, %v6458_v18 }
 0x2a9   :  { %5606 = vmatprep.subr.bf16.mxu1 %v6458_v18 }
 0x2af   :  { %5597 = vmatmul.mubr.msk.bf16.vlgmr.msra.gmra.mrb[8].mxu1 %vm252_vm2, %v501_v54 }
 0x2b0   :  { %5607 = vmatpush3.bf16.xpose.msra.mxu1 %v633_v55  ;;  %5608 = vmatprep.mubr.msk.bf16.mxu1 %vm6460_vm1, %v6458_v18 }
 0x2b1   :  { %5618 = vmatprep.subr.bf16.mxu1 %v6458_v18 }
 0x2b7   :  { %5609 = vmatmul.mubr.msk.bf16.vlgmr.msra.gmra.mrb[12].mxu1 %vm252_vm2, %v626_v56 }
 0x2b8   :  { %5622 = vmatprep.mubr.msk.bf16.mxu1 %vm6460_vm1, %v6458_v18 }
 0x372   :  { %v293_v57 = vpop.f32.mrb[0].mxu1 }
 0x373   :  { %v300_v59 = vmul.f32 0.35355338, %v293_v57  ;;  %v5574_v60 = vpop.f32.mrb[1].mxu1 }
 0x374   :  { %v296_v61 = vpop.f32.mrb[2].mxu1 }
 0x375   :  { %v301_v63 = vmul.f32 0.35355338, %v296_v61  ;;  %v5575_v0 = vpop.f32.mrb[3].mxu1  ;;  %v302_v1 = vadd.f32 %v300_v59, %v6612_v58 }
 0x377   :  { %v305_v2 = vsel %vm304_vm3, %v302_v1, -inf  ;;  %v303_v3 = vadd.f32 %v301_v63, %v6615_v62 }
 0x378   :  { %306 = vmax.xlane.f32.xlu1 %v305_v2 }
 0x379   :  { %v308_v4 = vsel %vm304_vm3, %v303_v3, -inf }
 0x37a   :  { %309 = vmax.xlane.f32.xlu0 %v308_v4  ;;  %v419_v5 = vpop.f32.mrb[4].mxu1 }
 0x37b   :  { %v426_v6 = vmul.f32 0.35355338, %v419_v5  ;;  %v5586_v7 = vpop.f32.mrb[5].mxu1 }
 0x37c   :  { %v422_v8 = vpop.f32.mrb[6].mxu1 }
 0x37d   :  { %v427_v9 = vmul.f32 0.35355338, %v422_v8  ;;  %v5587_v10 = vpop.f32.mrb[7].mxu1  ;;  %v428_v11 = vadd.f32 %v426_v6, %v6612_v58 }
 0x37f   :  { %v430_v12 = vsel %vm304_vm3, %v428_v11, -inf  ;;  %v429_v13 = vadd.f32 %v427_v9, %v6615_v62 }
 0x380   :  { %431 = vmax.xlane.f32.xlu0 %v430_v12 }
 0x381   :  { %v433_v17 = vsel %vm304_vm3, %v429_v13, -inf }
 0x382   :  { %v544_v14 = vpop.f32.mrb[8].mxu1 }
 0x383   :  { %v551_v15 = vmul.f32 0.35355338, %v544_v14  ;;  %v5598_v16 = vpop.f32.mrb[9].mxu1 }
 0x384   :  { %434 = vmax.xlane.f32.xlu0 %v433_v17  ;;  %v547_v19 = vpop.f32.mrb[10].mxu1 }
 0x385   :  { %v552_v20 = vmul.f32 0.35355338, %v547_v19  ;;  %v5599_v21 = vpop.f32.mrb[11].mxu1  ;;  %v553_v22 = vadd.f32 %v551_v15, %v6612_v58 }
 0x387   :  { %v555_v23 = vsel %vm304_vm3, %v553_v22, -inf  ;;  %v554_v24 = vadd.f32 %v552_v20, %v6615_v62 }
 0x388   :  { %556 = vmax.xlane.f32.xlu1 %v555_v23 }
 0x389   :  { %v558_v25 = vsel %vm304_vm3, %v554_v24, -inf }
 0x38a   :  { %559 = vmax.xlane.f32.xlu0 %v558_v25  ;;  %v669_v26 = vpop.f32.mrb[12].mxu1 }
 0x38b   :  { %v676_v27 = vmul.f32 0.35355338, %v669_v26  ;;  %v5610_v28 = vpop.f32.mrb[13].mxu1 }
 0x38c   :  { %v672_v29 = vpop.f32.mrb[14].mxu1 }
 0x38d   :  { %v677_v30 = vmul.f32 0.35355338, %v672_v29  ;;  %v5611_v31 = vpop.f32.mrb[15].mxu1  ;;  %v678_v32 = vadd.f32 %v676_v27, %v6612_v58 }
 0x38f   :  { %v680_v33 = vsel %vm304_vm3, %v678_v32, -inf  ;;  %v679_v34 = vadd.f32 %v677_v30, %v6615_v62 }
 0x390   :  { %681 = vmax.xlane.f32.xlu1 %v680_v33 }
 0x391   :  { %v683_v37 = vsel %vm304_vm3, %v679_v34, -inf }
 0x392   :  { %684 = vmax.xlane.f32.xlu0 %v683_v37 }
 0x3a1   :  { %328 = vrot.lane.b32.xlu1 %v6569_v45, %s7566_s10  ;;  %s7605_s10 = smov 72  }
 0x405   :  { %v307_v38 = vpop.xlane.xlu1 %306 }
 0x406   :  { %v311_v39 = vsub.f32 %v302_v1, %v307_v38 }
 0x407   :  { %v310_v40 = vpop.xlane.xlu0 %309 }
 0x408   :  { %v313_v41 = vmul.f32 1.442695, %v311_v39  ;;  %v312_v42 = vsub.f32 %v303_v3, %v310_v40 }
 0x40a   :  { %6171 = vpow2.f32 %v313_v41  ;;  %v315_v43 = vmul.f32 1.442695, %v312_v42 }
 0x40c   :  { %6173 = vpow2.f32 %v315_v43 }
 0x40d   :  { %v432_v44 = vpop.xlane.xlu0 %431 }
 0x40e   :  { %v436_v46 = vsub.f32 %v428_v11, %v432_v44 }
 0x410   :  { %v438_v47 = vmul.f32 1.442695, %v436_v46 }
 0x411   :  { %v435_v48 = vpop.xlane.xlu0 %434 }
 0x412   :  { %6175 = vpow2.f32 %v438_v47  ;;  %v437_v49 = vsub.f32 %v429_v13, %v435_v48 }
 0x414   :  { %v6172_v50 = vpop.eup %6171  ;;  %v440_v51 = vmul.f32 1.442695, %v437_v49 }
 0x415   :  { %v557_v52 = vpop.xlane.xlu1 %556  ;;  %v317_v53 = vsel %vm304_vm3, %v6172_v50, 0.0 }
 0x416   :  { %v6174_v54 = vpop.eup %6173  ;;  %6177 = vpow2.f32 %v440_v51  ;;  %v561_v55 = vsub.f32 %v553_v22, %v557_v52  ;;  %318 = vadd.xlane.f32.xlu1 %v317_v53 }
 0x417   :  { %v560_v56 = vpop.xlane.xlu0 %559  ;;  %v320_v57 = vsel %vm304_vm3, %v6174_v54, 0.0 }
 0x418   :  { %v563_v59 = vmul.f32 1.442695, %v561_v55  ;;  %v562_v60 = vsub.f32 %v554_v24, %v560_v56  ;;  %321 = vadd.xlane.f32.xlu0 %v320_v57 }
 0x41a   :  { %6179 = vpow2.f32 %v563_v59  ;;  %v565_v61 = vmul.f32 1.442695, %v562_v60 }
 0x41c   :  { %v6176_v63 = vpop.eup %6175  ;;  %6181 = vpow2.f32 %v565_v61 }
 0x41d   :  { %v682_v0 = vpop.xlane.xlu1 %681  ;;  %v442_v1 = vsel %vm304_vm3, %v6176_v63, 0.0 }
 0x41e   :  { %v686_v2 = vsub.f32 %v678_v32, %v682_v0  ;;  %443 = vadd.xlane.f32.xlu1 %v442_v1 }
 0x41f   :  { %v685_v3 = vpop.xlane.xlu0 %684 }
 0x420   :  { %v6178_v4 = vpop.eup %6177  ;;  %v688_v5 = vmul.f32 1.442695, %v686_v2  ;;  %v687_v6 = vsub.f32 %v679_v34, %v685_v3  ;;  %v6124_v2 = vld [vmem:[%s6680_s6 + $0x8] sm:$0xff]  }
 0x421   :  { %v329_v7 = vpop.permute.xlu1 %328  ;;  %v445_v8 = vsel %vm304_vm3, %v6178_v4, 0.0 }
 0x422   :  { %6183 = vpow2.f32 %v688_v5  ;;  %v690_v9 = vmul.f32 1.442695, %v687_v6  ;;  %5577 = vmatpush3.bf16.msra.mxu0 %v329_v7  ;;  %446 = vadd.xlane.f32.xlu0 %v445_v8 }
 0x423   :  { %5588 = vmatprep.subr.bf16.mxu0 %v6458_v18 }
 0x424   :  { %v6180_v10 = vpop.eup %6179  ;;  %6185 = vpow2.f32 %v690_v9 }
 0x425   :  { %v567_v11 = vsel %vm304_vm3, %v6180_v10, 0.0 }
 0x426   :  { %v6182_v12 = vpop.eup %6181  ;;  %568 = vadd.xlane.f32.xlu1 %v567_v11 }
 0x427   :  { %v570_v13 = vsel %vm304_vm3, %v6182_v12, 0.0 }
 0x428   :  { %571 = vadd.xlane.f32.xlu0 %v570_v13 }
 0x42c   :  { %v6184_v14 = vpop.eup %6183 }
 0x42d   :  { %v692_v15 = vsel %vm304_vm3, %v6184_v14, 0.0 }
 0x42e   :  { %v6186_v16 = vpop.eup %6185  ;;  %693 = vadd.xlane.f32.xlu1 %v692_v15 }
 0x42f   :  { %v695_v17 = vsel %vm304_vm3, %v6186_v16, 0.0 }
 0x430   :  { %696 = vadd.xlane.f32.xlu0 %v695_v17 }
 0x43f   :  { %578 = vrot.lane.b32.xlu1 %v6569_v45, %s7564_s11  ;;  %s7607_s11 = smov 48  }
 0x443   :  { %703 = vrot.lane.b32.xlu1 %v6569_v45, %s7562_s12  ;;  %s6487_s12 = smov 21  }
 0x444   :  { %s6773_s2 = sld [smem:[%s7551_s0 + %s6487_s12]]   ;;  %s7608_s12 = smov 40  }
 0x446   :  { %453 = vrot.lane.b32.xlu0 %v6569_v45, %s7560_s14 }
 0x44a   :  { %7604 = sst [smem:[#allocation9_spill]] %s6773_s2 }
 0x4a3   :  { %v319_v19 = vpop.xlane.xlu1 %318 }
 0x4a4   :  { %6187 = vrcp.f32 %v319_v19 }
 0x4a5   :  { %v322_v20 = vpop.xlane.xlu0 %321 }
 0x4a6   :  { %6189 = vrcp.f32 %v322_v20 }
 0x4ab   :  { %v444_v26 = vpop.xlane.xlu1 %443 }
 0x4ae   :  { %v6188_v21 = vpop.eup %6187 }
 0x4af   :  { %v447_v22 = vpop.xlane.xlu0 %446  ;;  %v325_v24 = vmul.f32 %v6188_v21, %v6172_v50 }
 0x4b0   :  { %v6190_v23 = vpop.eup %6189  ;;  %6191 = vrcp.f32 %v447_v22 }
 0x4b1   :  { %v326_v25 = vmul.f32 %v6190_v23, %v6174_v54  ;;  %6193 = vrcp.f32 %v444_v26 }
 0x4b3   :  { %v327_v27 = vpack.c.bf16 %v326_v25, %v325_v24  ;;  %v569_v45 = vpop.xlane.xlu1 %568 }
 0x4b5   :  { %5579 = vmatmul.mubr.msk.bf16.vlgmr.msra.gmra.mrb[4].mxu0 %vm304_vm3, %v327_v27  ;;  %v572_v28 = vpop.xlane.xlu0 %571 }
 0x4b6   :  { %5590 = vmatprep.mubr.msk.bf16.mxu0 %vm6460_vm1, %v6458_v18  ;;  %6195 = vrcp.f32 %v572_v28  ;;  %v5186_v28 = vld [vmem:[%s6701_s3] ss:$0 sm:$0xff] }
 0x4b7   :  { %6197 = vrcp.f32 %v569_v45 }
 0x4ba   :  { %v6192_v29 = vpop.eup %6191 }
 0x4bb   :  { %v6194_v31 = vpop.eup %6193  ;;  %v451_v32 = vmul.f32 %v6192_v29, %v6178_v4  ;;  %v694_v33 = vpop.xlane.xlu1 %693 }
 0x4bc   :  { %v450_v34 = vmul.f32 %v6194_v31, %v6176_v63  ;;  %v6123_v63 = vld [vmem:[%s6680_s6] sm:$0xff]  }
 0x4bd   :  { %v697_v30 = vpop.xlane.xlu0 %696  ;;  %5619 = vmatpush3.bf16.msra.mxu1 %v6123_v63 }
 0x4be   :  { %6199 = vrcp.f32 %v697_v30  ;;  %v452_v38 = vpack.c.bf16 %v451_v32, %v450_v34  ;;  %5620 = vmatprep.subr.bf16.mxu1 %v6458_v18 }
 0x4bf   :  { %6201 = vrcp.f32 %v694_v33  ;;  %v579_v40 = vpop.permute.xlu1 %578 }
 0x4c0   :  { %v6196_v39 = vpop.eup %6195 }
 0x4c1   :  { %v454_v37 = vpop.permute.xlu0 %453  ;;  %v6198_v41 = vpop.eup %6197  ;;  %v576_v42 = vmul.f32 %v6196_v39, %v6182_v12  ;;  %5621 = vmatpush3.bf16.msra.mxu1 %v6124_v2 }
 0x4c2   :  { %5589 = vmatpush3.bf16.msra.mxu0 %v454_v37  ;;  %v575_v43 = vmul.f32 %v6198_v41, %v6180_v10  ;;  %5634 = vmatprep.subr.bf16.mxu1 %v6458_v18 }
 0x4c3   :  { %5600 = vmatprep.subr.bf16.mxu0 %v6458_v18  ;;  %v704_v47 = vpop.permute.xlu1 %703 }
 0x4c4   :  { %v577_v44 = vpack.c.bf16 %v576_v42, %v575_v43 }
 0x4c5   :  { %5591 = vmatmul.mubr.msk.bf16.vlgmr.msra.gmra.mrb[8].mxu0 %vm304_vm3, %v452_v38 }
 0x4c6   :  { %5601 = vmatpush3.bf16.msra.mxu0 %v579_v40  ;;  %5602 = vmatprep.mubr.msk.bf16.mxu0 %vm6460_vm1, %v6458_v18 }
 0x4c7   :  { %5612 = vmatprep.subr.bf16.mxu0 %v6458_v18 }
 0x4c8   :  { %v6200_v46 = vpop.eup %6199 }
 0x4c9   :  { %v6202_v48 = vpop.eup %6201  ;;  %v701_v49 = vmul.f32 %v6200_v46, %v6186_v16 }
 0x4ca   :  { %v700_v50 = vmul.f32 %v6202_v48, %v6184_v14 }
 0x4cc   :  { %v702_v51 = vpack.c.bf16 %v701_v49, %v700_v50  ;;  %v6126_v50 = vld [vmem:[%s6669_s19 + $0x8] sm:$0xff]  }
 0x4cd   :  { %5603 = vmatmul.mubr.msk.bf16.vlgmr.msra.gmra.mrb[12].mxu0 %vm304_vm3, %v577_v44 }
 0x4ce   :  { %5613 = vmatpush3.bf16.msra.mxu0 %v704_v47  ;;  %5614 = vmatprep.mubr.msk.bf16.mxu0 %vm6460_vm1, %v6458_v18 }
 0x4cf   :  { %5626 = vmatprep.subr.bf16.mxu0 %v6458_v18 }
 0x4d5   :  { %5615 = vmatmul.mubr.msk.bf16.vlgmr.msra.gmra.mrb[16].mxu0 %vm304_vm3, %v702_v51 }
 0x4d6   :  { %5630 = vmatprep.mubr.msk.bf16.mxu0 %vm6460_vm1, %v6458_v18 }
 0x588   :  { %v368_v52 = vpop.f32.mrb[4].mxu0 }
 0x589   :  { %v5580_v53 = vpop.f32.mrb[5].mxu0 }
 0x58a   :  { %v371_v54 = vpop.f32.mrb[6].mxu0 }
 0x58b   :  { %v5581_v55 = vpop.f32.mrb[7].mxu0 }
 0x598   :  { %v493_v56 = vpop.f32.mrb[8].mxu0 }
 0x599   :  { %v5592_v57 = vpop.f32.mrb[9].mxu0 }
 0x59a   :  { %v496_v59 = vpop.f32.mrb[10].mxu0 }
 0x59b   :  { %v6024_v60 = vpack.i.bf16 %v496_v59, %v493_v56  ;;  %v5593_v61 = vpop.f32.mrb[11].mxu0 }
 0x59d   :  { %6025 = vrot.lane.b32.xlu1 %v6024_v60, %s7558_s16  ;;  %s6722_s16 = sld [smem:[%s7551_s0 + %s6482_s23]]   ;;  %v5190_v60 = vld [vmem:[%s6717_s22] ss:$0 sm:$0xff]  ;;  %s7611_s23 = smov 16  }
 0x5a0   :  { %v618_v0 = vpop.f32.mrb[12].mxu0 }
 0x5a1   :  { %v5604_v1 = vpop.f32.mrb[13].mxu0 }
 0x5a2   :  { %v621_v3 = vpop.f32.mrb[14].mxu0 }
 0x5a3   :  { %v6029_v4 = vpack.i.bf16 %v621_v3, %v618_v0  ;;  %v5605_v5 = vpop.f32.mrb[15].mxu0  ;;  %7599 = sst [smem:[#allocation4_spill]] %s6722_s16  ;;  %v5191_v1 = vld [vmem:[%s6722_s16] ss:$0 sm:$0xff] }
 0x5a5   :  { %6030 = vrot.lane.b32.xlu0 %v6029_v4, %s7556_s15  ;;  %s6483_s15 = smov 18  }
 0x5a6   :  { %s6732_s7 = sld [smem:[%s7551_s0 + %s6483_s15]]  }
 0x5a7   :  { %s6754_s15 = sld [smem:[%s7551_s0 + %s6485_s4]]   ;;  %s6486_s4 = smov 20  }
 0x5a8   :  { %v743_v6 = vpop.f32.mrb[16].mxu0  ;;  %s6768_s14 = sld [smem:[%s7551_s0 + %s6486_s4]]   ;;  %s7609_s4 = smov 56  }
 0x5a9   :  { %v5616_v7 = vpop.f32.mrb[17].mxu0 }
 0x5aa   :  { %v746_v8 = vpop.f32.mrb[18].mxu0 }
 0x5ab   :  { %v6034_v9 = vpack.i.bf16 %v746_v8, %v743_v6  ;;  %v5617_v10 = vpop.f32.mrb[19].mxu0 }
 0x5ac   :  { %7600 = sst [smem:[#allocation5_spill]] %s6732_s7  ;;  %v6127_v6 = vld [vmem:[%s6732_s7] sm:$0xff]   ;;  %v6128_v7 = vld [vmem:[%s6732_s7 + $0x8] sm:$0xff]   ;;  %v6129_v8 = vld [vmem:[%s6732_s7 + $0x10] sm:$0xff]  }
 0x5ad   :  { %6035 = vrot.lane.b32.xlu1 %v6034_v9, %s7554_s20  ;;  %v6130_v9 = vld [vmem:[%s6732_s7 + $0x18] sm:$0xff]   ;;  %s6745_s20 = sld [smem:[%s7551_s0 + %s6484_s18]]   ;;  %s7610_s18 = smov 8  }
 0x5ae   :  { %7602 = sst [smem:[#allocation7_spill]] %s6754_s15 }
 0x5af   :  { %7603 = sst [smem:[#allocation8_spill]] %s6768_s14 }
 0x5b3   :  { %7601 = sst [smem:[#allocation6_spill]] %s6745_s20  ;;  %v5192_v10 = vld [vmem:[%s6745_s20] ss:$0 sm:$0xff] }
 0x60f   :  { %v6026_v11 = vpop.permute.xlu1 %6025 }
 0x610   :  { %v6028_v13 = vunpack.i.h.bf16 %v6026_v11  ;;  %v6027_v14 = vunpack.i.l.bf16 %v6026_v11 }
 0x612   :  { %v775_v19 = vsel %vm252_vm2, %v371_v54, %v6028_v13  ;;  %v774_v20 = vsel %vm252_vm2, %v368_v52, %v6027_v14 }
 0x617   :  { %v6031_v12 = vpop.permute.xlu0 %6030 }
 0x618   :  { %v6033_v15 = vunpack.i.h.bf16 %v6031_v12  ;;  %v6032_v16 = vunpack.i.l.bf16 %v6031_v12 }
 0x61a   :  { %v777_v23 = vsel %vm304_vm3, %v775_v19, %v6033_v15  ;;  %v776_v24 = vsel %vm304_vm3, %v774_v20, %v6032_v16 }
 0x61f   :  { %v6036_v17 = vpop.permute.xlu1 %6035 }
 0x620   :  { %v6038_v21 = vunpack.i.h.bf16 %v6036_v17  ;;  %v6037_v22 = vunpack.i.l.bf16 %v6036_v17 }
 0x622   :  { %v780_v25 = vsel %vm778_vm4, %v777_v23, %v6038_v21  ;;  %v779_v26 = vsel %vm778_vm4, %v776_v24, %v6037_v22 }
 0x623   :  { %v781_v27 = vpack.c.bf16 %v780_v25, %v779_v26 }
 0x625   :  { %5623 = vmatmul.mubr.msk.bf16.vlgmr.msra.gmra.mrb[16].mxu1 %vm134_vm0, %v781_v27 }
 0x626   :  { %5642 = vmatprep.mubr.msk.bf16.mxu1 %vm6460_vm1, %v6458_v18  ;;  %5635 = vmatpush3.bf16.msra.mxu1 %v6127_v6 }
 0x627   :  { %5636 = vmatprep.subr.bf16.mxu1 %v6458_v18 }
 0x62a   :  { %5637 = vmatpush3.bf16.msra.mxu1 %v6128_v7 }
 0x62b   :  { %5638 = vmatprep.subr.bf16.mxu1 %v6458_v18 }
 0x62e   :  { %5639 = vmatpush3.bf16.msra.mxu1 %v6129_v8 }
 0x62f   :  { %5640 = vmatprep.subr.bf16.mxu1 %v6458_v18 }
 0x632   :  { %5641 = vmatpush3.bf16.msra.mxu1 %v6130_v9 }
 0x633   :  { %5660 = vmatprep.subr.bf16.mxu1 %v6458_v18 }
 0x6f8   :  { %v842_v45 = vpop.f32.mrb[16].mxu1 }
 0x6f9   :  { %v843_v29 = vadd.f32 %v5186_v28, %v842_v45  ;;  %v5624_v30 = vpop.f32.mrb[17].mxu1 }
 0x6fa   :  { %v845_v31 = vpop.f32.mrb[18].mxu1 }
 0x6fb   :  { %v846_v32 = vadd.f32 %v5186_v28, %v845_v31  ;;  %v5625_v33 = vpop.f32.mrb[19].mxu1  ;;  %v849_v34 = vadd.f32 %v843_v29, %v6554_v35 }
 0x6fd   :  { %v853_v37 = vsel %vm134_vm0, %v849_v34, 0.0  ;;  %v850_v38 = vadd.f32 %v846_v32, %v6556_v36  ;;  %v6125_v36 = vld [vmem:[%s6669_s19] sm:$0xff]  }
 0x6fe   :  { %854 = vadd.xlane.f32.xlu0 %v853_v37  ;;  %5627 = vmatpush3.bf16.msra.mxu0 %v6125_v36 }
 0x6ff   :  { %v856_v39 = vsel %vm134_vm0, %v850_v38, 0.0  ;;  %5628 = vmatprep.subr.bf16.mxu0 %v6458_v18 }
 0x700   :  { %857 = vadd.xlane.f32.xlu1 %v856_v39 }
 0x702   :  { %5629 = vmatpush3.bf16.msra.mxu0 %v6126_v50 }
 0x703   :  { %5646 = vmatprep.subr.bf16.mxu0 %v6458_v18 }
 0x78b   :  { %v855_v40 = vpop.xlane.xlu0 %854 }
 0x78c   :  { %v859_v41 = vmul.f32 0.03125, %v855_v40 }
 0x78d   :  { %v858_v42 = vpop.xlane.xlu1 %857 }
 0x78e   :  { %v861_v43 = vsub.f32 %v849_v34, %v859_v41  ;;  %v860_v44 = vmul.f32 0.03125, %v858_v42 }
 0x790   :  { %v862_v46 = vsub.f32 %v850_v38, %v860_v44  ;;  %v863_v47 = vmul.f32 %v861_v43, %v861_v43  ;;  %v5196_v38 = vld [vmem:[%s6754_s15] ss:$0 sm:$0xff] }
 0x792   :  { %v865_v48 = vsel %vm134_vm0, %v863_v47, 0.0  ;;  %v864_v35 = vmul.f32 %v862_v46, %v862_v46 }
 0x793   :  { %866 = vadd.xlane.f32.xlu0 %v865_v48 }
 0x794   :  { %v868_v49 = vsel %vm134_vm0, %v864_v35, 0.0 }
 0x797   :  { %869 = vadd.xlane.f32.xlu0 %v868_v49 }
 0x820   :  { %v867_v51 = vpop.xlane.xlu0 %866 }
 0x821   :  { %v871_v52 = vmul.f32 0.03125, %v867_v51 }
 0x823   :  { %v873_v53 = vadd.f32 1e-12, %v871_v52 }
 0x824   :  { %v870_v54 = vpop.xlane.xlu0 %869 }
 0x825   :  { %6203 = vrsqrt.f32 %v873_v53  ;;  %v872_v55 = vmul.f32 0.03125, %v870_v54 }
 0x827   :  { %v874_v56 = vadd.f32 1e-12, %v872_v55 }
 0x829   :  { %6205 = vrsqrt.f32 %v874_v56 }
 0x82f   :  { %v6204_v57 = vpop.eup %6203 }
 0x830   :  { %v877_v59 = vmul.f32 %v6204_v57, %v861_v43 }
 0x832   :  { %v885_v63 = vmul.f32 %v5190_v60, %v877_v59  ;;  %v6131_v59 = vld [vmem:[%s6531_s13 + $0x10] sm:$0xff]  }
 0x833   :  { %v6206_v61 = vpop.eup %6205 }
 0x834   :  { %v878_v0 = vmul.f32 %v6206_v61, %v862_v46  ;;  %v893_v3 = vadd.f32 %v5191_v1, %v885_v63 }
 0x836   :  { %v886_v2 = vmul.f32 %v5190_v60, %v878_v0  ;;  %v6132_v60 = vld [vmem:[%s6531_s13 + $0x18] sm:$0xff]  }
 0x838   :  { %v894_v4 = vadd.f32 %v5191_v1, %v886_v2 }
 0x83a   :  { %v895_v5 = vpack.c.bf16 %v894_v4, %v893_v3 }
 0x83c   :  { %5631 = vmatmul.mubr.msk.bf16.vlgmr.msra.gmra.mrb[20].mxu0 %vm134_vm0, %v895_v5  ;;  %v5202_v5 = vld [vmem:[%s6768_s14] ss:$0 sm:$0xff] }
 0x83d   :  { %5650 = vmatprep.mubr.msk.bf16.mxu0 %vm6460_vm1, %v6458_v18  ;;  %5647 = vmatpush3.bf16.msra.mxu0 %v6131_v59 }
 0x83e   :  { %5648 = vmatprep.subr.bf16.mxu0 %v6458_v18 }
 0x841   :  { %5649 = vmatpush3.bf16.msra.mxu0 %v6132_v60 }
 0x842   :  { %5654 = vmatprep.subr.bf16.mxu0 %v6458_v18 }
 0x90f   :  { %v956_v11 = vpop.f32.mrb[20].mxu0 }
 0x910   :  { %v957_v12 = vadd.f32 %v5192_v10, %v956_v11  ;;  %v5632_v13 = vpop.f32.mrb[21].mxu0 }
 0x911   :  { %v959_v14 = vpop.f32.mrb[22].mxu0 }
 0x912   :  { %v963_v15 = vmul.f32 %v957_v12, %v957_v12  ;;  %v960_v16 = vadd.f32 %v5192_v10, %v959_v14  ;;  %v5633_v17 = vpop.f32.mrb[23].mxu0  ;;  %v5203_v10 = vld [vmem:[%s6773_s2] ss:$0 sm:$0xff] }
 0x914   :  { %v965_v19 = vmul.f32 %v963_v15, %v957_v12  ;;  %v964_v20 = vmul.f32 %v960_v16, %v960_v16  ;;  %v5209_v15 = vld [vmem:[%s6566_s25 + $0x1] ss:$0 sm:$0xff] }
 0x916   :  { %v967_v21 = vmul.f32 0.044715, %v965_v19  ;;  %v966_v22 = vmul.f32 %v964_v20, %v960_v16 }
 0x918   :  { %v969_v23 = vadd.f32 %v967_v21, %v957_v12  ;;  %v968_v24 = vmul.f32 0.044715, %v966_v22 }
 0x91a   :  { %v971_v25 = vmul.f32 0.7978846, %v969_v23  ;;  %v970_v26 = vadd.f32 %v968_v24, %v960_v16 }
 0x91c   :  { %6207 = vtanh.f32 %v971_v25  ;;  %v972_v27 = vmul.f32 0.7978846, %v970_v26 }
 0x91e   :  { %6209 = vtanh.f32 %v972_v27 }
 0x926   :  { %v6208_v28 = vpop.eup %6207 }
 0x927   :  { %v975_v45 = vadd.f32 1.0, %v6208_v28 }
 0x928   :  { %v6210_v29 = vpop.eup %6209 }
 0x929   :  { %v977_v30 = vmul.f32 0.5, %v975_v45  ;;  %v976_v31 = vadd.f32 1.0, %v6210_v29 }
 0x92b   :  { %v978_v32 = vmul.f32 0.5, %v976_v31  ;;  %v979_v33 = vmul.f32 %v977_v30, %v957_v12 }
 0x92d   :  { %v980_v34 = vmul.f32 %v978_v32, %v960_v16 }
 0x92f   :  { %v981_v37 = vpack.c.bf16 %v980_v34, %v979_v33 }
 0x931   :  { %5643 = vmatmul.mubr.msk.bf16.vlgmr.msra.gmra.mrb[20].mxu1 %vm1021_vm5, %v981_v37 }
 0x932   :  { %5662 = vmatprep.mubr.msk.bf16.mxu1 %vm6460_vm1, %v6458_v18 }
 0xa04   :  { %v1059_v39 = vpop.f32.mrb[20].mxu1 }
 0xa05   :  { %v1060_v40 = vadd.f32 %v5196_v38, %v1059_v39  ;;  %v5644_v41 = vpop.f32.mrb[21].mxu1 }
 0xa06   :  { %v1062_v42 = vpop.f32.mrb[22].mxu1 }
 0xa07   :  { %v1063_v43 = vadd.f32 %v5196_v38, %v1062_v42  ;;  %v5645_v44 = vpop.f32.mrb[23].mxu1  ;;  %v1066_v46 = vadd.f32 %v1060_v40, %v893_v3 }
 0xa09   :  { %v1070_v47 = vsel %vm134_vm0, %v1066_v46, 0.0  ;;  %v1067_v48 = vadd.f32 %v1063_v43, %v894_v4 }
 0xa0a   :  { %1071 = vadd.xlane.f32.xlu0 %v1070_v47 }
 0xa0b   :  { %v1073_v35 = vsel %vm134_vm0, %v1067_v48, 0.0 }
 0xa0c   :  { %1074 = vadd.xlane.f32.xlu1 %v1073_v35 }
 0xa97   :  { %v1072_v49 = vpop.xlane.xlu0 %1071 }
 0xa98   :  { %v1076_v36 = vmul.f32 0.03125, %v1072_v49 }
 0xa99   :  { %v1075_v50 = vpop.xlane.xlu1 %1074 }
 0xa9a   :  { %v1078_v51 = vsub.f32 %v1066_v46, %v1076_v36  ;;  %v1077_v52 = vmul.f32 0.03125, %v1075_v50 }
 0xa9c   :  { %v1079_v53 = vsub.f32 %v1067_v48, %v1077_v52  ;;  %v1080_v54 = vmul.f32 %v1078_v51, %v1078_v51 }
 0xa9e   :  { %v1082_v55 = vsel %vm134_vm0, %v1080_v54, 0.0  ;;  %v1081_v56 = vmul.f32 %v1079_v53, %v1079_v53  ;;  %v6446_v54 = vld [vmem:[%s6609_s8 + $0x8] sm:$0xff] }
 0xa9f   :  { %1083 = vadd.xlane.f32.xlu0 %v1082_v55 }
 0xaa0   :  { %v1085_v57 = vsel %vm134_vm0, %v1081_v56, 0.0 }
 0xaa1   :  { %1086 = vadd.xlane.f32.xlu1 %v1085_v57 }
 0xb2c   :  { %v1084_v61 = vpop.xlane.xlu0 %1083 }
 0xb2d   :  { %v1088_v63 = vmul.f32 0.03125, %v1084_v61 }
 0xb2e   :  { %v1087_v0 = vpop.xlane.xlu1 %1086 }
 0xb2f   :  { %v1090_v1 = vadd.f32 1e-12, %v1088_v63  ;;  %v1089_v2 = vmul.f32 0.03125, %v1087_v0 }
 0xb31   :  { %6211 = vrsqrt.f32 %v1090_v1  ;;  %v1091_v3 = vadd.f32 1e-12, %v1089_v2 }
 0xb33   :  { %6213 = vrsqrt.f32 %v1091_v3 }
 0xb3b   :  { %v6212_v4 = vpop.eup %6211 }
 0xb3c   :  { %v1094_v6 = vmul.f32 %v6212_v4, %v1078_v51  ;;  %v6445_v51 = vld [vmem:[%s6609_s8] sm:$0xff]  ;;  %s7606_s8 = smov 64  }
 0xb3d   :  { %v6214_v7 = vpop.eup %6213 }
 0xb3e   :  { %v1102_v8 = vmul.f32 %v5202_v5, %v1094_v6  ;;  %v1095_v9 = vmul.f32 %v6214_v7, %v1079_v53 }
 0xb40   :  { %v1103_v11 = vmul.f32 %v5202_v5, %v1095_v9  ;;  %v6777_v12 = vadd.f32 %v5203_v10, %v1102_v8 }
 0xb42   :  { %v6779_v13 = vadd.f32 %v5203_v10, %v1103_v11 }
 0xb44   :  { %v1112_v14 = vpack.c.bf16 %v6779_v13, %v6777_v12 }
 0xb46   :  { %5651 = vmatmul.mubr.msk.bf16.vlgmr.msra.gmra.mrb[24].mxu0 %vm134_vm0, %v1112_v14 }
 0xb47   :  { %5656 = vmatprep.mubr.msk.bf16.mxu0 %vm6460_vm1, %v6458_v18 }
 0xc19   :  { %v1175_v16 = vpop.f32.mrb[24].mxu0 }
 0xc1a   :  { %v5652_v17 = vpop.f32.mrb[25].mxu0  ;;  %v1176_v20 = vadd.f32 %v5209_v15, %v1175_v16 }
 0xc1b   :  { %v1178_v19 = vpop.f32.mrb[26].mxu0 }
 0xc1c   :  { %v1179_v21 = vadd.f32 %v5209_v15, %v1178_v19  ;;  %v5653_v22 = vpop.f32.mrb[27].mxu0 }
 0xc1e   :  { %v6787_v23 = vpack.c.bf16 %v1179_v21, %v1176_v20 }
 0xc20   :  { %1309 = vrot.lane.b32.xlu1 %v6787_v23, %s7578_s26  ;;  %1184 = vrot.lane.b32.xlu0 %v6787_v23, %s7580_s27  ;;  %s7613_s27 = smov 1  }
 0xc24   :  { %1307 = vrot.lane.b32.xlu1 %v6787_v23, %s7576_s28  ;;  %1432 = vrot.lane.b32.xlu0 %v6787_v23, %s7572_s29  ;;  %s6488_s29 = smov 22   ;;  %s7621_s28 = sld [smem:[#allocation4_spill]] }
 0xc25   :  { %s5162_s26 = sld [smem:[%s7551_s0 + %s6488_s29]]  }
 0xc26   :  { %s7622_s29 = sld [smem:[#allocation5_spill]] }
 0xc28   :  { %1434 = vrot.lane.b32.xlu1 %v6787_v23, %s7574_s30  ;;  %1557 = vrot.lane.b32.xlu0 %v6787_v23, %s7570_s1  ;;  %s7612_s1 = smov 24  }
 0xc2c   :  { %1559 = vrot.lane.b32.xlu1 %v6787_v23, %s7605_s10 }
 0xc92   :  { %v1185_v24 = vpop.permute.xlu0 %1184  ;;  %v1310_v26 = vpop.permute.xlu1 %1309 }
 0xc93   :  { %v1190_v25 = vsel %vm252_vm2, %v1185_v24, 0  ;;  %v1315_v28 = vsel %vm252_vm2, %v1310_v26, 0 }
 0xc94   :  { %5655 = vmatpush3.bf16.xpose.msra.mxu0 %v1190_v25 }
 0xc95   :  { %5666 = vmatprep.subr.bf16.mxu0 %v6458_v18 }
 0xc96   :  { %v1308_v27 = vpop.permute.xlu1 %1307  ;;  %v1433_v31 = vpop.permute.xlu0 %1432 }
 0xc9a   :  { %v1435_v45 = vpop.permute.xlu1 %1434  ;;  %v1558_v33 = vpop.permute.xlu0 %1557 }
 0xc9b   :  { %5657 = vmatmul.mubr.msk.bf16.vlgmr.msra.gmra.mrb[28].mxu0 %vm252_vm2, %v6787_v23  ;;  %v1440_v29 = vsel %vm252_vm2, %v1435_v45, 0 }
 0xc9c   :  { %5667 = vmatpush3.bf16.xpose.msra.mxu0 %v1315_v28  ;;  %5668 = vmatprep.mubr.msk.bf16.mxu0 %vm6460_vm1, %v6458_v18 }
 0xc9d   :  { %5678 = vmatprep.subr.bf16.mxu0 %v6458_v18 }
 0xc9e   :  { %v1560_v30 = vpop.permute.xlu1 %1559 }
 0xc9f   :  { %v1565_v32 = vsel %vm252_vm2, %v1560_v30, 0 }
 0xca3   :  { %5669 = vmatmul.mubr.msk.bf16.vlgmr.msra.gmra.mrb[32].mxu0 %vm252_vm2, %v1308_v27 }
 0xca4   :  { %5679 = vmatpush3.bf16.xpose.msra.mxu0 %v1440_v29  ;;  %5680 = vmatprep.mubr.msk.bf16.mxu0 %vm6460_vm1, %v6458_v18 }
 0xca5   :  { %5690 = vmatprep.subr.bf16.mxu0 %v6458_v18 }
 0xcab   :  { %5681 = vmatmul.mubr.msk.bf16.vlgmr.msra.gmra.mrb[36].mxu0 %vm252_vm2, %v1433_v31 }
 0xcac   :  { %5691 = vmatpush3.bf16.xpose.msra.mxu0 %v1565_v32  ;;  %5692 = vmatprep.mubr.msk.bf16.mxu0 %vm6460_vm1, %v6458_v18 }
 0xcad   :  { %5702 = vmatprep.subr.bf16.mxu0 %v6458_v18 }
 0xcb3   :  { %5693 = vmatmul.mubr.msk.bf16.vlgmr.msra.gmra.mrb[40].mxu0 %vm252_vm2, %v1558_v33 }
 0xcb4   :  { %5706 = vmatprep.mubr.msk.bf16.mxu0 %vm6460_vm1, %v6458_v18 }
 0xd6e   :  { %v1226_v34 = vpop.f32.mrb[28].mxu0 }
 0xd6f   :  { %v1233_v37 = vmul.f32 0.35355338, %v1226_v34  ;;  %v5658_v38 = vpop.f32.mrb[29].mxu0 }
 0xd70   :  { %v1229_v39 = vpop.f32.mrb[30].mxu0 }
 0xd71   :  { %v1234_v40 = vmul.f32 0.35355338, %v1229_v39  ;;  %v5659_v41 = vpop.f32.mrb[31].mxu0  ;;  %v1235_v42 = vadd.f32 %v1233_v37, %v6612_v58 }
 0xd73   :  { %v1237_v43 = vsel %vm304_vm3, %v1235_v42, -inf  ;;  %v1236_v44 = vadd.f32 %v1234_v40, %v6615_v62 }
 0xd74   :  { %1238 = vmax.xlane.f32.xlu1 %v1237_v43 }
 0xd75   :  { %v1240_v46 = vsel %vm304_vm3, %v1236_v44, -inf }
 0xd76   :  { %1241 = vmax.xlane.f32.xlu0 %v1240_v46  ;;  %v1351_v47 = vpop.f32.mrb[32].mxu0 }
 0xd77   :  { %v1358_v48 = vmul.f32 0.35355338, %v1351_v47  ;;  %v5670_v35 = vpop.f32.mrb[33].mxu0 }
 0xd78   :  { %v1354_v49 = vpop.f32.mrb[34].mxu0 }
 0xd79   :  { %v1359_v36 = vmul.f32 0.35355338, %v1354_v49  ;;  %v5671_v50 = vpop.f32.mrb[35].mxu0  ;;  %v1360_v52 = vadd.f32 %v6445_v51, %v1358_v48 }
 0xd7b   :  { %v1362_v53 = vsel %vm304_vm3, %v1360_v52, -inf  ;;  %v1361_v58 = vadd.f32 %v6446_v54, %v1359_v36 }
 0xd7c   :  { %1363 = vmax.xlane.f32.xlu0 %v1362_v53 }
 0xd7d   :  { %v1365_v57 = vsel %vm304_vm3, %v1361_v58, -inf }
 0xd7e   :  { %v1476_v55 = vpop.f32.mrb[36].mxu0 }
 0xd7f   :  { %v1483_v56 = vmul.f32 0.35355338, %v1476_v55  ;;  %v5682_v62 = vpop.f32.mrb[37].mxu0 }
 0xd80   :  { %1366 = vmax.xlane.f32.xlu0 %v1365_v57  ;;  %v1479_v59 = vpop.f32.mrb[38].mxu0 }
 0xd81   :  { %v1484_v60 = vmul.f32 0.35355338, %v1479_v59  ;;  %v5683_v61 = vpop.f32.mrb[39].mxu0  ;;  %v1485_v63 = vadd.f32 %v6445_v51, %v1483_v56 }
 0xd83   :  { %v1487_v0 = vsel %vm304_vm3, %v1485_v63, -inf  ;;  %v1486_v1 = vadd.f32 %v6446_v54, %v1484_v60 }
 0xd84   :  { %1488 = vmax.xlane.f32.xlu1 %v1487_v0 }
 0xd85   :  { %v1490_v2 = vsel %vm304_vm3, %v1486_v1, -inf }
 0xd86   :  { %1491 = vmax.xlane.f32.xlu0 %v1490_v2  ;;  %v1601_v3 = vpop.f32.mrb[40].mxu0 }
 0xd87   :  { %v1608_v4 = vmul.f32 0.35355338, %v1601_v3  ;;  %v5694_v5 = vpop.f32.mrb[41].mxu0 }
 0xd88   :  { %v1604_v6 = vpop.f32.mrb[42].mxu0 }
 0xd89   :  { %v1609_v7 = vmul.f32 0.35355338, %v1604_v6  ;;  %v5695_v8 = vpop.f32.mrb[43].mxu0  ;;  %v1610_v9 = vadd.f32 %v6445_v51, %v1608_v4 }
 0xd8b   :  { %v1612_v10 = vsel %vm304_vm3, %v1610_v9, -inf  ;;  %v1611_v11 = vadd.f32 %v6446_v54, %v1609_v7 }
 0xd8c   :  { %1613 = vmax.xlane.f32.xlu1 %v1612_v10 }
 0xd8d   :  { %v1615_v14 = vsel %vm304_vm3, %v1611_v11, -inf }
 0xd8e   :  { %1616 = vmax.xlane.f32.xlu0 %v1615_v14 }
 0xd9d   :  { %1260 = vrot.lane.b32.xlu1 %v6787_v23, %s7606_s8 }
 0xe01   :  { %v1239_v15 = vpop.xlane.xlu1 %1238 }
 0xe02   :  { %v1243_v16 = vsub.f32 %v1235_v42, %v1239_v15 }
 0xe03   :  { %v1242_v17 = vpop.xlane.xlu0 %1241 }
 0xe04   :  { %v1245_v19 = vmul.f32 1.442695, %v1243_v16  ;;  %v1244_v20 = vsub.f32 %v1236_v44, %v1242_v17 }
 0xe06   :  { %6215 = vpow2.f32 %v1245_v19  ;;  %v1247_v21 = vmul.f32 1.442695, %v1244_v20 }
 0xe08   :  { %6217 = vpow2.f32 %v1247_v21 }
 0xe09   :  { %v1364_v22 = vpop.xlane.xlu0 %1363 }
 0xe0a   :  { %v1368_v24 = vsub.f32 %v1360_v52, %v1364_v22 }
 0xe0c   :  { %v1370_v25 = vmul.f32 1.442695, %v1368_v24 }
 0xe0d   :  { %v1367_v26 = vpop.xlane.xlu0 %1366 }
 0xe0e   :  { %6219 = vpow2.f32 %v1370_v25  ;;  %v1369_v27 = vsub.f32 %v1361_v58, %v1367_v26 }
 0xe10   :  { %v6216_v28 = vpop.eup %6215  ;;  %v1372_v45 = vmul.f32 1.442695, %v1369_v27 }
 0xe11   :  { %v1489_v29 = vpop.xlane.xlu1 %1488  ;;  %v1249_v30 = vsel %vm304_vm3, %v6216_v28, 0.0 }
 0xe12   :  { %v6218_v31 = vpop.eup %6217  ;;  %6221 = vpow2.f32 %v1372_v45  ;;  %v1493_v32 = vsub.f32 %v1485_v63, %v1489_v29  ;;  %1250 = vadd.xlane.f32.xlu1 %v1249_v30 }
 0xe13   :  { %v1492_v33 = vpop.xlane.xlu0 %1491  ;;  %v1252_v34 = vsel %vm304_vm3, %v6218_v31, 0.0 }
 0xe14   :  { %v1495_v37 = vmul.f32 1.442695, %v1493_v32  ;;  %v1494_v38 = vsub.f32 %v1486_v1, %v1492_v33  ;;  %1253 = vadd.xlane.f32.xlu0 %v1252_v34  ;;  %v6133_v34 = vld [vmem:[%s6680_s6 + $0x10] sm:$0xff]  }
 0xe15   :  { %5703 = vmatpush3.bf16.msra.mxu0 %v6133_v34 }
 0xe16   :  { %6223 = vpow2.f32 %v1495_v37  ;;  %v1497_v39 = vmul.f32 1.442695, %v1494_v38  ;;  %5704 = vmatprep.subr.bf16.mxu0 %v6458_v18 }
 0xe18   :  { %v6220_v40 = vpop.eup %6219  ;;  %6225 = vpow2.f32 %v1497_v39 }
 0xe19   :  { %v1614_v41 = vpop.xlane.xlu1 %1613  ;;  %v1374_v42 = vsel %vm304_vm3, %v6220_v40, 0.0 }
 0xe1a   :  { %v1618_v43 = vsub.f32 %v1610_v9, %v1614_v41  ;;  %1375 = vadd.xlane.f32.xlu1 %v1374_v42  ;;  %v6134_v41 = vld [vmem:[%s6680_s6 + $0x18] sm:$0xff]  }
 0xe1b   :  { %v1617_v44 = vpop.xlane.xlu0 %1616  ;;  %5705 = vmatpush3.bf16.msra.mxu0 %v6134_v41 }
 0xe1c   :  { %v6222_v46 = vpop.eup %6221  ;;  %v1620_v47 = vmul.f32 1.442695, %v1618_v43  ;;  %v1619_v48 = vsub.f32 %v1611_v11, %v1617_v44  ;;  %5718 = vmatprep.subr.bf16.mxu0 %v6458_v18 }
 0xe1d   :  { %v1261_v35 = vpop.permute.xlu1 %1260  ;;  %v1377_v49 = vsel %vm304_vm3, %v6222_v46, 0.0 }
 0xe1e   :  { %6227 = vpow2.f32 %v1620_v47  ;;  %v1622_v36 = vmul.f32 1.442695, %v1619_v48  ;;  %5661 = vmatpush3.bf16.msra.mxu1 %v1261_v35  ;;  %1378 = vadd.xlane.f32.xlu0 %v1377_v49 }
 0xe1f   :  { %5672 = vmatprep.subr.bf16.mxu1 %v6458_v18 }
 0xe20   :  { %v6224_v50 = vpop.eup %6223  ;;  %6229 = vpow2.f32 %v1622_v36 }
 0xe21   :  { %v1499_v51 = vsel %vm304_vm3, %v6224_v50, 0.0 }
 0xe22   :  { %v6226_v52 = vpop.eup %6225  ;;  %1500 = vadd.xlane.f32.xlu1 %v1499_v51 }
 0xe23   :  { %v1502_v53 = vsel %vm304_vm3, %v6226_v52, 0.0 }
 0xe24   :  { %1503 = vadd.xlane.f32.xlu0 %v1502_v53 }
 0xe28   :  { %v6228_v54 = vpop.eup %6227 }
 0xe29   :  { %v1624_v58 = vsel %vm304_vm3, %v6228_v54, 0.0 }
 0xe2a   :  { %v6230_v55 = vpop.eup %6229  ;;  %1625 = vadd.xlane.f32.xlu1 %v1624_v58 }
 0xe2b   :  { %v1627_v56 = vsel %vm304_vm3, %v6230_v55, 0.0 }
 0xe2c   :  { %1628 = vadd.xlane.f32.xlu0 %v1627_v56 }
 0xe3b   :  { %1510 = vrot.lane.b32.xlu1 %v6787_v23, %s7607_s11 }
 0xe3f   :  { %1635 = vrot.lane.b32.xlu1 %v6787_v23, %s7608_s12 }
 0xe42   :  { %1385 = vrot.lane.b32.xlu0 %v6787_v23, %s7609_s4 }
 0xe9f   :  { %v1251_v62 = vpop.xlane.xlu1 %1250 }
 0xea0   :  { %6231 = vrcp.f32 %v1251_v62 }
 0xea1   :  { %v1254_v57 = vpop.xlane.xlu0 %1253 }
 0xea2   :  { %6233 = vrcp.f32 %v1254_v57 }
 0xea7   :  { %v1376_v1 = vpop.xlane.xlu1 %1375 }
 0xeaa   :  { %v6232_v59 = vpop.eup %6231 }
 0xeab   :  { %v1379_v60 = vpop.xlane.xlu0 %1378  ;;  %v1257_v63 = vmul.f32 %v6232_v59, %v6216_v28 }
 0xeac   :  { %v6234_v61 = vpop.eup %6233  ;;  %6235 = vrcp.f32 %v1379_v60 }
 0xead   :  { %v1258_v0 = vmul.f32 %v6234_v61, %v6218_v31  ;;  %6237 = vrcp.f32 %v1376_v1  ;;  %v5226_v1 = vld [vmem:[%s6701_s3 + $0x1] ss:$0 sm:$0xff] }
 0xeaf   :  { %v1259_v2 = vpack.c.bf16 %v1258_v0, %v1257_v63  ;;  %v1501_v23 = vpop.xlane.xlu1 %1500 }
 0xeb1   :  { %5663 = vmatmul.mubr.msk.bf16.vlgmr.msra.gmra.mrb[24].mxu1 %vm304_vm3, %v1259_v2  ;;  %v1504_v3 = vpop.xlane.xlu0 %1503 }
 0xeb2   :  { %5674 = vmatprep.mubr.msk.bf16.mxu1 %vm6460_vm1, %v6458_v18  ;;  %6239 = vrcp.f32 %v1504_v3 }
 0xeb3   :  { %6241 = vrcp.f32 %v1501_v23 }
 0xeb6   :  { %v6236_v4 = vpop.eup %6235 }
 0xeb7   :  { %v6238_v6 = vpop.eup %6237  ;;  %v1383_v7 = vmul.f32 %v6236_v4, %v6222_v46  ;;  %v1626_v8 = vpop.xlane.xlu1 %1625 }
 0xeb8   :  { %v1382_v9 = vmul.f32 %v6238_v6, %v6220_v40 }
 0xeb9   :  { %v1629_v5 = vpop.xlane.xlu0 %1628 }
 0xeba   :  { %6243 = vrcp.f32 %v1629_v5  ;;  %v1384_v11 = vpack.c.bf16 %v1383_v7, %v1382_v9 }
 0xebb   :  { %6245 = vrcp.f32 %v1626_v8  ;;  %v1511_v15 = vpop.permute.xlu1 %1510 }
 0xebc   :  { %v6240_v14 = vpop.eup %6239 }
 0xebd   :  { %v1386_v10 = vpop.permute.xlu0 %1385  ;;  %v6242_v16 = vpop.eup %6241  ;;  %v1508_v17 = vmul.f32 %v6240_v14, %v6226_v52 }
 0xebe   :  { %5673 = vmatpush3.bf16.msra.mxu1 %v1386_v10  ;;  %v1507_v19 = vmul.f32 %v6242_v16, %v6224_v50 }
 0xebf   :  { %5684 = vmatprep.subr.bf16.mxu1 %v6458_v18  ;;  %v1636_v22 = vpop.permute.xlu1 %1635 }
 0xec0   :  { %v1509_v20 = vpack.c.bf16 %v1508_v17, %v1507_v19 }
 0xec1   :  { %5675 = vmatmul.mubr.msk.bf16.vlgmr.msra.gmra.mrb[28].mxu1 %vm304_vm3, %v1384_v11 }
 0xec2   :  { %5685 = vmatpush3.bf16.msra.mxu1 %v1511_v15  ;;  %5686 = vmatprep.mubr.msk.bf16.mxu1 %vm6460_vm1, %v6458_v18 }
 0xec3   :  { %5696 = vmatprep.subr.bf16.mxu1 %v6458_v18 }
 0xec4   :  { %v6244_v21 = vpop.eup %6243 }
 0xec5   :  { %v6246_v24 = vpop.eup %6245  ;;  %v1633_v25 = vmul.f32 %v6244_v21, %v6230_v55 }
 0xec6   :  { %v1632_v26 = vmul.f32 %v6246_v24, %v6228_v54  ;;  %v6136_v24 = vld [vmem:[%s6669_s19 + $0x18] sm:$0xff]  }
 0xec8   :  { %v1634_v27 = vpack.c.bf16 %v1633_v25, %v1632_v26 }
 0xec9   :  { %5687 = vmatmul.mubr.msk.bf16.vlgmr.msra.gmra.mrb[32].mxu1 %vm304_vm3, %v1509_v20 }
 0xeca   :  { %5697 = vmatpush3.bf16.msra.mxu1 %v1636_v22  ;;  %5698 = vmatprep.mubr.msk.bf16.mxu1 %vm6460_vm1, %v6458_v18 }
 0xecb   :  { %5710 = vmatprep.subr.bf16.mxu1 %v6458_v18 }
 0xed1   :  { %5699 = vmatmul.mubr.msk.bf16.vlgmr.msra.gmra.mrb[36].mxu1 %vm304_vm3, %v1634_v27 }
 0xed2   :  { %5714 = vmatprep.mubr.msk.bf16.mxu1 %vm6460_vm1, %v6458_v18 }
 0xf84   :  { %v1300_v28 = vpop.f32.mrb[24].mxu1 }
 0xf85   :  { %v5664_v45 = vpop.f32.mrb[25].mxu1 }
 0xf86   :  { %v1303_v29 = vpop.f32.mrb[26].mxu1 }
 0xf87   :  { %v5665_v30 = vpop.f32.mrb[27].mxu1 }
 0xf94   :  { %v1425_v31 = vpop.f32.mrb[28].mxu1 }
 0xf95   :  { %v5676_v32 = vpop.f32.mrb[29].mxu1 }
 0xf96   :  { %v1428_v33 = vpop.f32.mrb[30].mxu1  ;;  %v5232_v32 = vld [vmem:[%s6717_s22 + $0x1] ss:$0 sm:$0xff] }
 0xf97   :  { %v6039_v37 = vpack.i.bf16 %v1428_v33, %v1425_v31  ;;  %v5677_v38 = vpop.f32.mrb[31].mxu1 }
 0xf98   :  { %v5233_v38 = vld [vmem:[%s6722_s16 + $0x1] ss:$0 sm:$0xff]  ;;  %s7615_s16 = smov 88  }
 0xf99   :  { %6040 = vrot.lane.b32.xlu1 %v6039_v37, %s7610_s18 }
 0xf9c   :  { %v1550_v39 = vpop.f32.mrb[32].mxu1 }
 0xf9d   :  { %v5688_v40 = vpop.f32.mrb[33].mxu1 }
 0xf9e   :  { %v1553_v42 = vpop.f32.mrb[34].mxu1 }
 0xf9f   :  { %v6044_v43 = vpack.i.bf16 %v1553_v42, %v1550_v39  ;;  %v5689_v44 = vpop.f32.mrb[35].mxu1 }
 0xfa0   :  { %v6138_v44 = vld [vmem:[%s6732_s7 + $0x28] sm:$0xff]  }
 0xfa1   :  { %6045 = vrot.lane.b32.xlu0 %v6044_v43, %s7611_s23  ;;  %v6137_v43 = vld [vmem:[%s6732_s7 + $0x20] sm:$0xff]  }
 0xfa4   :  { %v1675_v46 = vpop.f32.mrb[36].mxu1 }
 0xfa5   :  { %v5700_v47 = vpop.f32.mrb[37].mxu1 }
 0xfa6   :  { %v1678_v48 = vpop.f32.mrb[38].mxu1  ;;  %v6140_v47 = vld [vmem:[%s6732_s7 + $0x38] sm:$0xff]  }
 0xfa7   :  { %v6049_v35 = vpack.i.bf16 %v1678_v48, %v1675_v46  ;;  %v5701_v49 = vpop.f32.mrb[39].mxu1  ;;  %v6139_v46 = vld [vmem:[%s6732_s7 + $0x30] sm:$0xff]   ;;  %v5239_v48 = vld [vmem:[%s6745_s20 + $0x1] ss:$0 sm:$0xff]  ;;  %s5163_s20 = sld [smem:[%s7551_s0 + %s6490_s24]]   ;;  %s7617_s7 = smov 80  }
 0xfa9   :  { %6050 = vrot.lane.b32.xlu1 %v6049_v35, %s7612_s1 }
0x100b   :  { %v6041_v36 = vpop.permute.xlu1 %6040 }
0x100c   :  { %v6043_v51 = vunpack.i.h.bf16 %v6041_v36  ;;  %v6042_v52 = vunpack.i.l.bf16 %v6041_v36 }
0x100e   :  { %v1707_v55 = vsel %vm252_vm2, %v1303_v29, %v6043_v51  ;;  %v1706_v56 = vsel %vm252_vm2, %v1300_v28, %v6042_v52 }
0x1013   :  { %v6046_v50 = vpop.permute.xlu0 %6045 }
0x1014   :  { %v6048_v53 = vunpack.i.h.bf16 %v6046_v50  ;;  %v6047_v54 = vunpack.i.l.bf16 %v6046_v50 }
0x1016   :  { %v1709_v59 = vsel %vm304_vm3, %v1707_v55, %v6048_v53  ;;  %v1708_v60 = vsel %vm304_vm3, %v1706_v56, %v6047_v54 }
0x101b   :  { %v6051_v58 = vpop.permute.xlu1 %6050 }
0x101c   :  { %v6053_v62 = vunpack.i.h.bf16 %v6051_v58  ;;  %v6052_v57 = vunpack.i.l.bf16 %v6051_v58 }
0x101e   :  { %v1711_v61 = vsel %vm778_vm4, %v1709_v59, %v6053_v62  ;;  %v1710_v63 = vsel %vm778_vm4, %v1708_v60, %v6052_v57 }
0x101f   :  { %v1712_v0 = vpack.c.bf16 %v1711_v61, %v1710_v63 }
0x1021   :  { %5707 = vmatmul.mubr.msk.bf16.vlgmr.msra.gmra.mrb[44].mxu0 %vm134_vm0, %v1712_v0 }
0x1022   :  { %5726 = vmatprep.mubr.msk.bf16.mxu0 %vm6460_vm1, %v6458_v18  ;;  %5719 = vmatpush3.bf16.msra.mxu0 %v6137_v43 }
0x1023   :  { %5720 = vmatprep.subr.bf16.mxu0 %v6458_v18 }
0x1026   :  { %5721 = vmatpush3.bf16.msra.mxu0 %v6138_v44 }
0x1027   :  { %5722 = vmatprep.subr.bf16.mxu0 %v6458_v18 }
0x102a   :  { %5723 = vmatpush3.bf16.msra.mxu0 %v6139_v46  ;;  %v5261_v46 = vld [vmem:[%s6773_s2 + $0x1] ss:$0 sm:$0xff]  ;;  %s6491_s2 = smov 6  }
0x102b   :  { %5724 = vmatprep.subr.bf16.mxu0 %v6458_v18  ;;  %s5146_s22 = sld [smem:[%s7551_s0 + %s6491_s2]]  }
0x102c   :  { %s7625_s2 = sld [smem:[#allocation8_spill]] }
0x102e   :  { %5725 = vmatpush3.bf16.msra.mxu0 %v6140_v47 }
0x10f4   :  { %v1775_v2 = vpop.f32.mrb[44].mxu0 }
0x10f5   :  { %v1776_v3 = vadd.f32 %v5226_v1, %v1775_v2  ;;  %v5708_v23 = vpop.f32.mrb[45].mxu0 }
0x10f6   :  { %v1778_v4 = vpop.f32.mrb[46].mxu0 }
0x10f7   :  { %v1779_v5 = vadd.f32 %v5226_v1, %v1778_v4  ;;  %v5709_v6 = vpop.f32.mrb[47].mxu0  ;;  %v1782_v7 = vadd.f32 %v1776_v3, %v6777_v12 }
0x10f9   :  { %v1788_v8 = vsel %vm134_vm0, %v1782_v7, 0.0  ;;  %v1783_v9 = vadd.f32 %v1779_v5, %v6779_v13  ;;  %v6135_v13 = vld [vmem:[%s6669_s19 + $0x10] sm:$0xff]  }
0x10fa   :  { %1789 = vadd.xlane.f32.xlu0 %v1788_v8  ;;  %5711 = vmatpush3.bf16.msra.mxu1 %v6135_v13 }
0x10fb   :  { %v1791_v10 = vsel %vm134_vm0, %v1783_v9, 0.0  ;;  %5712 = vmatprep.subr.bf16.mxu1 %v6458_v18 }
0x10fc   :  { %1792 = vadd.xlane.f32.xlu1 %v1791_v10 }
0x10fe   :  { %5713 = vmatpush3.bf16.msra.mxu1 %v6136_v24 }
0x10ff   :  { %5730 = vmatprep.subr.bf16.mxu1 %v6458_v18 }
0x1187   :  { %v1790_v11 = vpop.xlane.xlu0 %1789 }
0x1188   :  { %v1794_v14 = vmul.f32 0.03125, %v1790_v11 }
0x1189   :  { %v1793_v15 = vpop.xlane.xlu1 %1792 }
0x118a   :  { %v1796_v16 = vsub.f32 %v1782_v7, %v1794_v14  ;;  %v1795_v17 = vmul.f32 0.03125, %v1793_v15  ;;  %v5252_v7 = vld [vmem:[%s6754_s15 + $0x1] ss:$0 sm:$0xff]  ;;  %s7619_s15 = smov 104  }
0x118c   :  { %v1797_v19 = vsub.f32 %v1783_v9, %v1795_v17  ;;  %v1798_v20 = vmul.f32 %v1796_v16, %v1796_v16 }
0x118e   :  { %v1800_v21 = vsel %vm134_vm0, %v1798_v20, 0.0  ;;  %v1799_v12 = vmul.f32 %v1797_v19, %v1797_v19 }
0x118f   :  { %1801 = vadd.xlane.f32.xlu0 %v1800_v21 }
0x1190   :  { %v1803_v22 = vsel %vm134_vm0, %v1799_v12, 0.0 }
0x1193   :  { %1804 = vadd.xlane.f32.xlu0 %v1803_v22 }
0x121c   :  { %v1802_v25 = vpop.xlane.xlu0 %1801 }
0x121d   :  { %v1806_v26 = vmul.f32 0.03125, %v1802_v25 }
0x121f   :  { %v1808_v27 = vadd.f32 1e-12, %v1806_v26 }
0x1220   :  { %v1805_v28 = vpop.xlane.xlu0 %1804 }
0x1221   :  { %6247 = vrsqrt.f32 %v1808_v27  ;;  %v1807_v45 = vmul.f32 0.03125, %v1805_v28 }
0x1223   :  { %v1809_v29 = vadd.f32 1e-12, %v1807_v45 }
0x1225   :  { %6249 = vrsqrt.f32 %v1809_v29  ;;  %v6141_v29 = vld [vmem:[%s5162_s26] sm:$0xff]  }
0x122b   :  { %v6248_v30 = vpop.eup %6247 }
0x122c   :  { %v1812_v31 = vmul.f32 %v6248_v30, %v1796_v16  ;;  %v6142_v30 = vld [vmem:[%s5162_s26 + $0x8] sm:$0xff]   ;;  %s6489_s26 = smov 5  }
0x122d   :  { %s5145_s30 = sld [smem:[%s7551_s0 + %s6489_s26]]  }
0x122e   :  { %v1820_v34 = vmul.f32 %v5232_v32, %v1812_v31  ;;  %s7620_s26 = sld [smem:[#allocation3_spill]] }
0x122f   :  { %v6250_v33 = vpop.eup %6249 }
0x1230   :  { %v1813_v37 = vmul.f32 %v6250_v33, %v1797_v19  ;;  %v1828_v40 = vadd.f32 %v5233_v38, %v1820_v34 }
0x1232   :  { %v1821_v39 = vmul.f32 %v5232_v32, %v1813_v37 }
0x1234   :  { %v1829_v41 = vadd.f32 %v5233_v38, %v1821_v39 }
0x1236   :  { %v1830_v42 = vpack.c.bf16 %v1829_v41, %v1828_v40 }
0x1238   :  { %5715 = vmatmul.mubr.msk.bf16.vlgmr.msra.gmra.mrb[40].mxu1 %vm134_vm0, %v1830_v42 }
0x1239   :  { %5734 = vmatprep.mubr.msk.bf16.mxu1 %vm6460_vm1, %v6458_v18  ;;  %5731 = vmatpush3.bf16.msra.mxu1 %v6141_v29 }
0x123a   :  { %5732 = vmatprep.subr.bf16.mxu1 %v6458_v18 }
0x123d   :  { %5733 = vmatpush3.bf16.msra.mxu1 %v6142_v30 }
0x130b   :  { %v1893_v35 = vpop.f32.mrb[40].mxu1 }
0x130c   :  { %v1894_v49 = vadd.f32 %v5239_v48, %v1893_v35  ;;  %v5716_v36 = vpop.f32.mrb[41].mxu1 }
0x130d   :  { %v1896_v50 = vpop.f32.mrb[42].mxu1  ;;  %v2134_v36 = vld [vmem:[%s5145_s30] sm:$0xff] }
0x130e   :  { %v1900_v51 = vmul.f32 %v1894_v49, %v1894_v49  ;;  %v1897_v52 = vadd.f32 %v5239_v48, %v1896_v50  ;;  %v5717_v53 = vpop.f32.mrb[43].mxu1  ;;  %v5262_v50 = vld [vmem:[%s5163_s20] ss:$0 sm:$0xff]  ;;  %s7618_s20 = smov 112  }
0x130f   :  { %v2148_v53 = vld [vmem:[%s5146_s22] sm:$0xff] }
0x1310   :  { %v1902_v54 = vmul.f32 %v1900_v51, %v1894_v49  ;;  %v1901_v58 = vmul.f32 %v1897_v52, %v1897_v52  ;;  %v6492_v51 = vmov 1  }
0x1311   :  { %6054 = vset.pattern.permute.xlu0 %v6492_v51  ;;  %6055 = vset.pattern.permute.xlu1 %v6492_v51 }
0x1312   :  { %v1904_v55 = vmul.f32 0.044715, %v1902_v54  ;;  %v1903_v56 = vmul.f32 %v1901_v58, %v1897_v52 }
0x1314   :  { %v1906_v62 = vadd.f32 %v1904_v55, %v1894_v49  ;;  %v1905_v57 = vmul.f32 0.044715, %v1903_v56 }
0x1316   :  { %v1908_v59 = vmul.f32 0.7978846, %v1906_v62  ;;  %v1907_v60 = vadd.f32 %v1905_v57, %v1897_v52  ;;  %v2150_v57 = vsub.f32 1.0, %v2148_v53 }
0x1318   :  { %6251 = vtanh.f32 %v1908_v59  ;;  %v1909_v61 = vmul.f32 0.7978846, %v1907_v60  ;;  %v2135_v59 = vld [vmem:[%s5145_s30 + $0x8] sm:$0xff]  ;;  %s7623_s30 = sld [smem:[#allocation6_spill]] }
0x1319   :  { %v2149_v60 = vld [vmem:[%s5146_s22 + $0x8] sm:$0xff]  ;;  %s7616_s22 = smov 120  }
0x131a   :  { %6253 = vtanh.f32 %v1909_v61  ;;  %v2151_v61 = vsub.f32 1.0, %v2149_v60 }
0x1322   :  { %v6252_v63 = vpop.eup %6251 }
0x1323   :  { %v1912_v0 = vadd.f32 1.0, %v6252_v63 }
0x1324   :  { %v6254_v1 = vpop.eup %6253 }
0x1325   :  { %v1914_v2 = vmul.f32 0.5, %v1912_v0  ;;  %v1913_v3 = vadd.f32 1.0, %v6254_v1 }
0x1327   :  { %v1915_v23 = vmul.f32 0.5, %v1913_v3  ;;  %v1916_v4 = vmul.f32 %v1914_v2, %v1894_v49 }
0x1329   :  { %v1917_v5 = vmul.f32 %v1915_v23, %v1897_v52 }
0x132b   :  { %v1918_v6 = vpack.c.bf16 %v1917_v5, %v1916_v4 }
0x132d   :  { %5727 = vmatmul.mubr.msk.bf16.vlgmr.msra.gmra.mrb[48].mxu0 %vm1021_vm5, %v1918_v6 }
0x1400   :  { %v1997_v8 = vpop.f32.mrb[48].mxu0 }
0x1401   :  { %v1998_v9 = vadd.f32 %v5252_v7, %v1997_v8  ;;  %v5728_v10 = vpop.f32.mrb[49].mxu0 }
0x1402   :  { %v2000_v11 = vpop.f32.mrb[50].mxu0 }
0x1403   :  { %v2001_v14 = vadd.f32 %v5252_v7, %v2000_v11  ;;  %v5729_v15 = vpop.f32.mrb[51].mxu0  ;;  %v2004_v16 = vadd.f32 %v1998_v9, %v1828_v40  ;;  %v5260_v40 = vld [vmem:[%s6768_s14 + $0x1] ss:$0 sm:$0xff]  ;;  %s7626_s14 = sld [smem:[#allocation9_spill]] }
0x1405   :  { %v2010_v17 = vsel %vm134_vm0, %v2004_v16, 0.0  ;;  %v2005_v19 = vadd.f32 %v2001_v14, %v1829_v41 }
0x1406   :  { %2011 = vadd.xlane.f32.xlu0 %v2010_v17 }
0x1407   :  { %v2013_v20 = vsel %vm134_vm0, %v2005_v19, 0.0 }
0x1408   :  { %2014 = vadd.xlane.f32.xlu1 %v2013_v20 }
0x1493   :  { %v2012_v21 = vpop.xlane.xlu0 %2011 }
0x1494   :  { %v2016_v12 = vmul.f32 0.03125, %v2012_v21 }
0x1495   :  { %v2015_v22 = vpop.xlane.xlu1 %2014 }
0x1496   :  { %v2018_v13 = vsub.f32 %v2004_v16, %v2016_v12  ;;  %v2017_v24 = vmul.f32 0.03125, %v2015_v22 }
0x1498   :  { %v2019_v25 = vsub.f32 %v2005_v19, %v2017_v24  ;;  %v2020_v26 = vmul.f32 %v2018_v13, %v2018_v13  ;;  %v6447_v24 = vld [vmem:[%s6511_s5] sm:$0xff] }
0x149a   :  { %v2022_v27 = vsel %vm134_vm0, %v2020_v26, 0.0  ;;  %v2021_v28 = vmul.f32 %v2019_v25, %v2019_v25 }
0x149b   :  { %2023 = vadd.xlane.f32.xlu0 %v2022_v27 }
0x149c   :  { %v2025_v45 = vsel %vm134_vm0, %v2021_v28, 0.0  ;;  %v6448_v28 = vld [vmem:[%s6511_s5 + $0x8] sm:$0xff]  ;;  %s7614_s5 = smov 96  }
0x149d   :  { %2026 = vadd.xlane.f32.xlu1 %v2025_v45 }
0x14ae   :  { %2138 = vrot.lane.b32.xlu1 %v2134_v36, %s7613_s27 }
0x1528   :  { %v2024_v31 = vpop.xlane.xlu0 %2023 }
0x1529   :  { %v2028_v32 = vmul.f32 0.03125, %v2024_v31 }
0x152a   :  { %v2027_v33 = vpop.xlane.xlu1 %2026 }
0x152b   :  { %v2030_v34 = vadd.f32 1e-12, %v2028_v32  ;;  %v2029_v37 = vmul.f32 0.03125, %v2027_v33 }
0x152d   :  { %6255 = vrsqrt.f32 %v2030_v34  ;;  %v2031_v38 = vadd.f32 1e-12, %v2029_v37 }
0x152e   :  { %v2139_v63 = vpop.permute.xlu1 %2138 }
0x152f   :  { %6257 = vrsqrt.f32 %v2031_v38  ;;  %v6449_v38 = vld [vmem:[%s6517_s9] sm:$0xff] }
0x1537   :  { %v6256_v39 = vpop.eup %6255 }
0x1538   :  { %v2034_v41 = vmul.f32 %v6256_v39, %v2018_v13 }
0x1539   :  { %v6258_v42 = vpop.eup %6257 }
0x153a   :  { %v2042_v43 = vmul.f32 %v5260_v40, %v2034_v41  ;;  %v2035_v44 = vmul.f32 %v6258_v42, %v2019_v25 }
0x153c   :  { %v2043_v47 = vmul.f32 %v5260_v40, %v2035_v44  ;;  %v2050_v48 = vadd.f32 %v5261_v46, %v2042_v43  ;;  %v6450_v43 = vld [vmem:[%s6517_s9 + $0x8] sm:$0xff] }
0x153e   :  { %v2051_v35 = vadd.f32 %v5261_v46, %v2043_v47 }
0x1540   :  { %v2052_v49 = vpack.c.bf16 %v2051_v35, %v2050_v48 }
0x1542   :  { %5735 = vmatmul.mubr.msk.bf16.vlgmr.msra.gmra.mrb[44].mxu1 %vm134_vm0, %v2052_v49 }
0x1615   :  { %v2113_v52 = vpop.f32.mrb[44].mxu1 }
0x1616   :  { %v2114_v54 = vadd.f32 %v5262_v50, %v2113_v52  ;;  %v5736_v58 = vpop.f32.mrb[45].mxu1 }
0x1617   :  { %v2116_v55 = vpop.f32.mrb[46].mxu1 }
0x1618   :  { %v2117_v56 = vadd.f32 %v5262_v50, %v2116_v55  ;;  %2122 = vrot.lane.b32.xlu0 %v2114_v54, %s7613_s27  ;;  %v5737_v62 = vpop.f32.mrb[47].mxu1 }
0x161a   :  { %2124 = vrot.lane.b32.xlu1 %v2117_v56, %s7613_s27 }
0x161c   :  { %2154 = vrot.lane.b32.xlu0 %v2150_v57, %s7613_s27 }
0x161e   :  { %2140 = vrot.lane.b32.xlu1 %v2135_v59, %s7613_s27 }
0x1622   :  { %2156 = vrot.lane.b32.xlu1 %v2151_v61, %s7613_s27  ;;  %s6493_s27 = smov 2  }
0x1623   :  { %s5142_s24 = sld [smem:[%s7551_s0 + %s6493_s27]]  }
0x1624   :  { %s7624_s27 = sld [smem:[#allocation7_spill]] }
0x1629   :  { %v5268_v12 = vld [vmem:[%s5142_s24] ss:$0 sm:$0xff] }
0x168a   :  { %v2123_v0 = vpop.permute.xlu0 %2122 }
0x168b   :  { %vm2128_vm6 = vcmp.gt.f32.partialorder %v2114_v54, %v2123_v0 }
0x168c   :  { %v6937_v1 = vsel %vm2128_vm6, 1.0, %v6458_v18  ;;  %v2125_v2 = vpop.permute.xlu1 %2124 }
0x168d   :  { %v2144_v3 = vmul.f32 %v6937_v1, %v2139_v63  ;;  %vm2129_vm7 = vcmp.gt.f32.partialorder %v2117_v56, %v2125_v2 }
0x168e   :  { %v2155_v23 = vpop.permute.xlu0 %2154  ;;  %v6941_v4 = vsel %vm2129_vm7, 1.0, %v6458_v18 }
0x168f   :  { %v2146_v5 = vsub.f32 1.0, %v2144_v3  ;;  %v6116_v6 = vpack.i.bf16 %v6941_v4, %v6937_v1 }
0x1690   :  { %v2141_v7 = vpop.permute.xlu1 %2140 }
0x1691   :  { %v2160_v8 = vmul.f32 %v2155_v23, %v2146_v5  ;;  %v2145_v9 = vmul.f32 %v6941_v4, %v2141_v7  ;;  %v6143_v5 = vld [vmem:[%s6531_s13] sm:$0xff]   ;;  %v6144_v7 = vld [vmem:[%s6531_s13 + $0x8] sm:$0xff]  }
0x1692   :  { %5738 = vmatprep.subr.bf16.mxu1 %v6143_v5 }
0x1693   :  { %v6946_v10 = vsub.f32 1.0, %v2160_v8  ;;  %v2147_v11 = vsub.f32 1.0, %v2145_v9  ;;  %5739 = vmatpush3.bf16.msra.mxu1 %v6143_v5 }
0x1694   :  { %v2157_v14 = vpop.permute.xlu1 %2156  ;;  %5740 = vmatprep.subr.bf16.mxu1 %v6144_v7 }
0x1695   :  { %v2161_v15 = vmul.f32 %v2157_v14, %v2147_v11  ;;  %2187 = vperm.xlu0 %6054, %v6946_v10   ;;  %v2196_v19 = vsub.f32 1.0, %v6946_v10 }
0x1697   :  { %v6949_v16 = vsub.f32 1.0, %v2161_v15  ;;  %5741 = vmatpush3.bf16.msra.mxu1 %v6144_v7 }
0x1699   :  { %2191 = vperm.xlu1 %6055, %v6949_v16   ;;  %v2197_v17 = vsub.f32 1.0, %v6949_v16 }
0x169b   :  { %2211 = vperm.xlu0 %6054, %v2197_v17  }
0x169d   :  { %2206 = vperm.xlu1 %6055, %v2196_v19  }
0x1714   :  { %v2188_v20 = vpop.permute.xlu0 %2187 }
0x1715   :  { %v2194_v25 = vmul.f32 %v6447_v24, %v2188_v20  ;;  %v2218_v27 = vmul.f32 %v5268_v12, %v2188_v20 }
0x1718   :  { %v2192_v21 = vpop.permute.xlu1 %2191 }
0x1719   :  { %v2195_v45 = vmul.f32 %v6448_v28, %v2192_v21  ;;  %v2219_v37 = vmul.f32 %v5268_v12, %v2192_v21 }
0x171a   :  { %v2212_v22 = vpop.permute.xlu0 %2211 }
0x171b   :  { %v2215_v13 = vmul.f32 %v5268_v12, %v2212_v22  ;;  %v2221_v31 = vmul.f32 %v6448_v28, %v2212_v22 }
0x171c   :  { %v2207_v26 = vpop.permute.xlu1 %2206 }
0x171d   :  { %v2214_v29 = vmul.f32 %v5268_v12, %v2207_v26  ;;  %v2220_v30 = vmul.f32 %v6447_v24, %v2207_v26  ;;  %v2217_v34 = vadd.f32 %v2215_v13, %v2195_v45  ;;  %v2223_v46 = vadd.f32 %v2221_v31, %v2219_v37  ;;  %v6452_v37 = vld [vmem:[%s6550_s21] ss:$0 sm:$0xff]  ;;  %s7008_s21 = sld [smem:[%s7551_s0 + %s7610_s18]]  }
0x171f   :  { %v2216_v32 = vadd.f32 %v2214_v29, %v2194_v25  ;;  %v2222_v33 = vadd.f32 %v2220_v30, %v2218_v27  ;;  %v2225_v44 = vadd.f32 %v6450_v43, %v2217_v34  ;;  %v2257_v48 = vadd.f32 %v6450_v43, %v2223_v46  ;;  %v6451_v29 = vld [vmem:[%s6545_s17] ss:$0 sm:$0xff] }
0x1721   :  { %v2224_v39 = vadd.f32 %v6449_v38, %v2216_v32  ;;  %v2256_v40 = vadd.f32 %v6449_v38, %v2222_v33  ;;  %v2229_v47 = vsel %vm134_vm0, %v2225_v44, 0.0  ;;  %v2261_v35 = vsel %vm134_vm0, %v2257_v48, 0.0 }
0x1723   :  { %v2226_v41 = vsel %vm134_vm0, %v2224_v39, 0.0  ;;  %v2258_v42 = vsel %vm134_vm0, %v2256_v40, 0.0 }
0x1724   :  { %2227 = vadd.xlane.f32.xlu1 %v2226_v41  ;;  %2259 = vadd.xlane.f32.xlu0 %v2258_v42 }
0x1728   :  { %2230 = vadd.xlane.f32.xlu0 %v2229_v47  ;;  %v5269_v47 = vld [vmem:[%s6566_s25] ss:$0 sm:$0xff] }
0x172c   :  { %2262 = vadd.xlane.f32.xlu0 %v2261_v35 }
0x17b1   :  { %v2228_v49 = vpop.xlane.xlu1 %2227  ;;  %v2260_v36 = vpop.xlane.xlu0 %2259 }
0x17b2   :  { %v2232_v50 = vmul.f32 0.03125, %v2228_v49  ;;  %v2264_v51 = vmul.f32 0.03125, %v2260_v36 }
0x17b4   :  { %v2234_v52 = vsub.f32 %v2224_v39, %v2232_v50  ;;  %v2266_v53 = vsub.f32 %v2256_v40, %v2264_v51 }
0x17b5   :  { %v2231_v54 = vpop.xlane.xlu0 %2230 }
0x17b6   :  { %v2233_v58 = vmul.f32 0.03125, %v2231_v54  ;;  %v2236_v55 = vmul.f32 %v2234_v52, %v2234_v52  ;;  %v2268_v57 = vmul.f32 %v2266_v53, %v2266_v53 }
0x17b8   :  { %v2235_v56 = vsub.f32 %v2225_v44, %v2233_v58  ;;  %v2238_v62 = vsel %vm134_vm0, %v2236_v55, 0.0  ;;  %v2270_v0 = vsel %vm134_vm0, %v2268_v57, 0.0 }
0x17b9   :  { %2239 = vadd.xlane.f32.xlu1 %v2238_v62  ;;  %v2263_v59 = vpop.xlane.xlu0 %2262 }
0x17ba   :  { %v2265_v60 = vmul.f32 0.03125, %v2263_v59  ;;  %v2237_v61 = vmul.f32 %v2235_v56, %v2235_v56  ;;  %v7011_v59 = vld [vmem:[%s7008_s21] sm:$0xff] }
0x17bc   :  { %v2267_v63 = vsub.f32 %v2257_v48, %v2265_v60  ;;  %v2241_v2 = vsel %vm134_vm0, %v2237_v61, 0.0 }
0x17bd   :  { %2271 = vadd.xlane.f32.xlu1 %v2270_v0  ;;  %2242 = vadd.xlane.f32.xlu0 %v2241_v2  ;;  %v7014_v2 = vld [vmem:[%s7008_s21 + $0x10] sm:$0xff] }
0x17be   :  { %v2269_v3 = vmul.f32 %v2267_v63, %v2267_v63 }
0x17c0   :  { %v2273_v23 = vsel %vm134_vm0, %v2269_v3, 0.0  ;;  %v7017_v3 = vld [vmem:[%s7008_s21 + $0x8] sm:$0xff] }
0x17c1   :  { %2274 = vadd.xlane.f32.xlu0 %v2273_v23 }
0x1846   :  { %v2240_v8 = vpop.xlane.xlu1 %2239 }
0x1847   :  { %v2244_v9 = vmul.f32 0.03125, %v2240_v8 }
0x1849   :  { %v2246_v11 = vadd.f32 1e-12, %v2244_v9  ;;  %v7021_v9 = vld [vmem:[%s7008_s21 + $0x18] sm:$0xff] }
0x184a   :  { %v2272_v14 = vpop.xlane.xlu1 %2271  ;;  %v2243_v15 = vpop.xlane.xlu0 %2242 }
0x184b   :  { %6259 = vrsqrt.f32 %v2246_v11  ;;  %v2276_v17 = vmul.f32 0.03125, %v2272_v14  ;;  %v2245_v19 = vmul.f32 0.03125, %v2243_v15 }
0x184d   :  { %v2278_v20 = vadd.f32 1e-12, %v2276_v17  ;;  %v2247_v21 = vadd.f32 1e-12, %v2245_v19 }
0x184e   :  { %v2275_v12 = vpop.xlane.xlu0 %2274 }
0x184f   :  { %6261 = vrsqrt.f32 %v2278_v20  ;;  %v2277_v22 = vmul.f32 0.03125, %v2275_v12 }
0x1850   :  { %6263 = vrsqrt.f32 %v2247_v21 }
0x1851   :  { %v2279_v13 = vadd.f32 1e-12, %v2277_v22 }
0x1853   :  { %6265 = vrsqrt.f32 %v2279_v13 }
0x1855   :  { %v6260_v24 = vpop.eup %6259 }
0x1856   :  { %v2250_v25 = vmul.f32 %v6260_v24, %v2234_v52 }
0x1858   :  { %v2252_v30 = vmul.f32 %v6451_v29, %v2250_v25 }
0x1859   :  { %v6262_v26 = vpop.eup %6261 }
0x185a   :  { %v6264_v27 = vpop.eup %6263  ;;  %v2282_v28 = vmul.f32 %v6262_v26, %v2266_v53  ;;  %v6973_v38 = vadd.f32 %v6452_v37, %v2252_v30 }
0x185b   :  { %v2251_v45 = vmul.f32 %v6264_v27, %v2235_v56 }
0x185c   :  { %v2284_v33 = vmul.f32 %v6451_v29, %v2282_v28 }
0x185d   :  { %v6266_v31 = vpop.eup %6265  ;;  %v2253_v32 = vmul.f32 %v6451_v29, %v2251_v45 }
0x185e   :  { %v2283_v34 = vmul.f32 %v6266_v31, %v2267_v63  ;;  %v6979_v42 = vadd.f32 %v6452_v37, %v2284_v33 }
0x185f   :  { %v6975_v39 = vadd.f32 %v6452_v37, %v2253_v32 }
0x1860   :  { %v2285_v40 = vmul.f32 %v6451_v29, %v2283_v34 }
0x1861   :  { %v2292_v41 = vpack.c.bf16 %v6975_v39, %v6973_v38 }
0x1862   :  { %v6981_v43 = vadd.f32 %v6452_v37, %v2285_v40 }
0x1863   :  { %5742 = vmatprep.mubr.msk.bf16.mxu1 %vm134_vm0, %v2292_v41 }
0x1864   :  { %v2293_v44 = vpack.c.bf16 %v6981_v43, %v6979_v42 }
0x1866   :  { %5743 = vmatmul.mubr.msk.bf16.vlgmr.msra.gmra.mrb[48].mxu1 %vm134_vm0, %v2293_v44 }
0x1939   :  { %v5744_v46 = vpop.f32.mrb[48].mxu1 }
0x193a   :  { %v2357_v48 = vpop.f32.mrb[49].mxu1  ;;  %v2366_v49 = vadd.f32 %v5744_v46, %v5269_v47 }
0x193b   :  { %v5745_v35 = vpop.f32.mrb[50].mxu1  ;;  %v2358_v51 = vadd.f32 %v5269_v47, %v2357_v48 }
0x193c   :  { %v2369_v36 = vadd.f32 %v5745_v35, %v5269_v47  ;;  %v2360_v50 = vpop.f32.mrb[51].mxu1 }
0x193d   :  { %v2361_v52 = vadd.f32 %v5269_v47, %v2360_v50 }
0x193e   :  { %v6988_v53 = vpack.c.bf16 %v2369_v36, %v2366_v49 }
0x193f   :  { %v6990_v54 = vpack.c.bf16 %v2361_v52, %v2358_v51 }
0x1940   :  { %2378 = vrot.lane.b32.xlu0 %v6988_v53, %s7614_s5 }
0x1941   :  { %2376 = vrot.lane.b32.xlu1 %v6990_v54, %s7614_s5  ;;  %5750 = vmatprep.mubr.msk.bf16.mxu0 %vm252_vm2, %v6990_v54 }
0x19b2   :  { %v2379_v56 = vpop.permute.xlu0 %2378 }
0x19b3   :  { %v2377_v58 = vpop.permute.xlu1 %2376  ;;  %v2390_v62 = vsel %vm252_vm2, %v2379_v56, 0 }
0x19b4   :  { %5962 = vmatprep.subr.msk.bf16.mxu0 %vm252_vm2, %v2377_v58  ;;  %v2387_v55 = vsel %vm252_vm2, %v2377_v58, 0 }
0x19b5   :  { %5747 = vmatpush3.bf16.xpose.msra.mxu0 %v2387_v55 }
0x19b6   :  { %5963 = vmatprep.subr.msk.bf16.mxu0 %vm252_vm2, %v2379_v56 }
0x19bd   :  { %5749 = vmatpush3.bf16.xpose.msra.mxu0 %v2390_v62 }
0x19c4   :  { %5751 = vmatmul.mubr.msk.bf16.vlgmr.msra.gmra.mrb[52].mxu0 %vm252_vm2, %v6988_v53 }
0x1a97   :  { %v5752_v57 = vpop.f32.mrb[52].mxu0 }
0x1a98   :  { %v2426_v60 = vpop.f32.mrb[53].mxu0  ;;  %v2443_v61 = vmul.f32 0.35355338, %v5752_v57 }
0x1a99   :  { %v2441_v63 = vmul.f32 0.35355338, %v2426_v60  ;;  %v5753_v0 = vpop.f32.mrb[54].mxu0 }
0x1a9a   :  { %v2429_v23 = vpop.f32.mrb[55].mxu0  ;;  %v2444_v7 = vmul.f32 0.35355338, %v5753_v0  ;;  %v2447_v11 = vadd.f32 %v2443_v61, %v7014_v2 }
0x1a9b   :  { %v2445_v5 = vadd.f32 %v2441_v63, %v7011_v59  ;;  %v2442_v8 = vmul.f32 0.35355338, %v2429_v23 }
0x1a9c   :  { %v2448_v17 = vadd.f32 %v2444_v7, %v7021_v9  ;;  %v2455_v20 = vsel %vm134_vm0, %v2447_v11, -inf }
0x1a9d   :  { %v2446_v14 = vadd.f32 %v2442_v8, %v7017_v3  ;;  %v2449_v15 = vsel %vm134_vm0, %v2445_v5, -inf }
0x1a9e   :  { %2450 = vmax.xlane.f32.xlu1 %v2449_v15  ;;  %v2458_v21 = vsel %vm134_vm0, %v2448_v17, -inf }
0x1a9f   :  { %v2452_v19 = vsel %vm134_vm0, %v2446_v14, -inf }
0x1aa0   :  { %2453 = vmax.xlane.f32.xlu0 %v2452_v19 }
0x1aa2   :  { %2456 = vmax.xlane.f32.xlu1 %v2455_v20 }
0x1aa4   :  { %2459 = vmax.xlane.f32.xlu0 %v2458_v21 }
0x1ab3   :  { %2495 = vrot.lane.b32.xlu1 %v6990_v54, %s7606_s8 }
0x1b2b   :  { %v2451_v12 = vpop.xlane.xlu1 %2450 }
0x1b2c   :  { %v2461_v22 = vsub.f32 %v2445_v5, %v2451_v12 }
0x1b2d   :  { %v2454_v13 = vpop.xlane.xlu0 %2453 }
0x1b2e   :  { %v2462_v25 = vsub.f32 %v2446_v14, %v2454_v13  ;;  %v2465_v27 = vmul.f32 1.442695, %v2461_v22 }
0x1b2f   :  { %v2457_v24 = vpop.xlane.xlu1 %2456 }
0x1b30   :  { %v2463_v26 = vsub.f32 %v2447_v11, %v2457_v24  ;;  %v2467_v31 = vmul.f32 1.442695, %v2462_v25 }
0x1b31   :  { %v2460_v28 = vpop.xlane.xlu0 %2459 }
0x1b32   :  { %v2469_v45 = vmul.f32 1.442695, %v2463_v26  ;;  %v2464_v29 = vsub.f32 %v2448_v17, %v2460_v28 }
0x1b33   :  { %v2496_v30 = vpop.permute.xlu1 %2495 }
0x1b34   :  { %6267 = vpow2.f32 %v2469_v45  ;;  %v2471_v32 = vmul.f32 1.442695, %v2464_v29  ;;  %5754 = vmatprep.subr.bf16.mxu1 %v2496_v30 }
0x1b35   :  { %6269 = vpow2.f32 %v2465_v27  ;;  %5755 = vmatpush3.bf16.msra.mxu1 %v2496_v30 }
0x1b36   :  { %6271 = vpow2.f32 %v2471_v32 }
0x1b37   :  { %6273 = vpow2.f32 %v2467_v31 }
0x1b3e   :  { %v6268_v33 = vpop.eup %6267 }
0x1b3f   :  { %v6270_v34 = vpop.eup %6269  ;;  %v2479_v37 = vsel %vm134_vm0, %v6268_v33, 0.0 }
0x1b40   :  { %v6272_v40 = vpop.eup %6271  ;;  %2480 = vadd.xlane.f32.xlu1 %v2479_v37  ;;  %v2473_v46 = vsel %vm134_vm0, %v6270_v34, 0.0 }
0x1b41   :  { %v2482_v41 = vsel %vm134_vm0, %v6272_v40, 0.0  ;;  %v6274_v44 = vpop.eup %6273 }
0x1b42   :  { %2483 = vadd.xlane.f32.xlu0 %v2482_v41  ;;  %v2476_v47 = vsel %vm134_vm0, %v6274_v44, 0.0 }
0x1b44   :  { %2474 = vadd.xlane.f32.xlu1 %v2473_v46 }
0x1b46   :  { %2477 = vadd.xlane.f32.xlu0 %v2476_v47 }
0x1b55   :  { %2560 = vrot.lane.b32.xlu1 %v6990_v54, %s7615_s16 }
0x1b59   :  { %2562 = vrot.lane.b32.xlu1 %v6988_v53, %s7615_s16 }
0x1b5c   :  { %2497 = vrot.lane.b32.xlu0 %v6988_v53, %s7606_s8 }
0x1b5d   :  { %2556 = vrot.lane.b32.xlu1 %v6990_v54, %s7616_s22 }
0x1b60   :  { %2558 = vrot.lane.b32.xlu0 %v6988_v53, %s7616_s22 }
0x1bcd   :  { %v2481_v48 = vpop.xlane.xlu1 %2480 }
0x1bcf   :  { %v2484_v35 = vpop.xlane.xlu0 %2483 }
0x1bd0   :  { %6275 = vrcp.f32 %v2484_v35 }
0x1bd1   :  { %v2475_v49 = vpop.xlane.xlu1 %2474 }
0x1bd2   :  { %6277 = vrcp.f32 %v2475_v49 }
0x1bd3   :  { %6279 = vrcp.f32 %v2481_v48  ;;  %v2478_v36 = vpop.xlane.xlu0 %2477 }
0x1bd4   :  { %6281 = vrcp.f32 %v2478_v36 }
0x1bd5   :  { %v2561_v51 = vpop.permute.xlu1 %2560 }
0x1bd6   :  { %v2571_v7 = vsel %vm252_vm2, %v2561_v51, 0 }
0x1bd7   :  { %v2498_v50 = vpop.permute.xlu0 %2497 }
0x1bd8   :  { %5756 = vmatprep.subr.bf16.mxu1 %v2498_v50 }
0x1bd9   :  { %5757 = vmatpush3.bf16.msra.mxu1 %v2498_v50  ;;  %v2563_v57 = vpop.permute.xlu1 %2562 }
0x1bda   :  { %5964 = vmatprep.subr.msk.bf16.mxu1 %vm252_vm2, %v2561_v51  ;;  %v6276_v52 = vpop.eup %6275  ;;  %v2574_v8 = vsel %vm252_vm2, %v2563_v57, 0 }
0x1bdb   :  { %v2492_v62 = vmul.f32 %v6276_v52, %v6272_v40  ;;  %v2559_v11 = vpop.permute.xlu0 %2558 }
0x1bdc   :  { %v6278_v58 = vpop.eup %6277 }
0x1bdd   :  { %v6280_v55 = vpop.eup %6279  ;;  %v2489_v60 = vmul.f32 %v6278_v58, %v6270_v34  ;;  %v2557_v5 = vpop.permute.xlu1 %2556 }
0x1bde   :  { %v6282_v56 = vpop.eup %6281  ;;  %v2491_v63 = vmul.f32 %v6280_v55, %v6268_v33 }
0x1bdf   :  { %v2490_v61 = vmul.f32 %v6282_v56, %v6274_v44 }
0x1be0   :  { %v2494_v23 = vpack.c.bf16 %v2492_v62, %v2491_v63 }
0x1be1   :  { %v2493_v0 = vpack.c.bf16 %v2490_v61, %v2489_v60 }
0x1be3   :  { %5758 = vmatprep.mubr.msk.bf16.mxu1 %vm134_vm0, %v2493_v0 }
0x1be4   :  { %5759 = vmatmul.mubr.msk.bf16.vlgmr.msra.gmra.mrb[52].mxu1 %vm134_vm0, %v2494_v23 }
0x1be5   :  { %5763 = vmatpush3.bf16.xpose.msra.mxu1 %v2571_v7  ;;  %5766 = vmatprep.mubr.msk.bf16.mxu1 %vm252_vm2, %v2557_v5 }
0x1be6   :  { %5965 = vmatprep.subr.msk.bf16.mxu1 %vm252_vm2, %v2563_v57 }
0x1bed   :  { %5765 = vmatpush3.bf16.xpose.msra.mxu1 %v2574_v8 }
0x1bf4   :  { %5767 = vmatmul.mubr.msk.bf16.vlgmr.msra.gmra.mrb[56].mxu1 %vm252_vm2, %v2559_v11 }
0x1cb7   :  { %v7054_v14 = vpop.f32.mrb[52].mxu1 }
0x1cb8   :  { %v7056_v15 = vpop.f32.mrb[53].mxu1 }
0x1cb9   :  { %v7058_v17 = vpop.f32.mrb[54].mxu1 }
0x1cba   :  { %v7060_v19 = vpop.f32.mrb[55].mxu1 }
0x1cc7   :  { %v5768_v20 = vpop.f32.mrb[56].mxu1 }
0x1cc8   :  { %v2627_v21 = vmul.f32 0.35355338, %v5768_v20  ;;  %v2610_v12 = vpop.f32.mrb[57].mxu1 }
0x1cc9   :  { %v2625_v22 = vmul.f32 0.35355338, %v2610_v12  ;;  %v5769_v13 = vpop.f32.mrb[58].mxu1 }
0x1cca   :  { %v2631_v24 = vadd.f32 %v2627_v21, %v7014_v2  ;;  %v2613_v25 = vpop.f32.mrb[59].mxu1  ;;  %v2628_v28 = vmul.f32 0.35355338, %v5769_v13 }
0x1ccb   :  { %v2629_v26 = vadd.f32 %v2625_v22, %v7011_v59  ;;  %v2626_v27 = vmul.f32 0.35355338, %v2613_v25 }
0x1ccc   :  { %v2639_v45 = vsel %vm134_vm0, %v2631_v24, -inf  ;;  %v2632_v32 = vadd.f32 %v2628_v28, %v7021_v9 }
0x1ccd   :  { %v2630_v29 = vadd.f32 %v2626_v27, %v7017_v3  ;;  %2640 = vmax.xlane.f32.xlu0 %v2639_v45  ;;  %v2633_v30 = vsel %vm134_vm0, %v2629_v26, -inf }
0x1cce   :  { %2634 = vmax.xlane.f32.xlu1 %v2633_v30  ;;  %v2642_v33 = vsel %vm134_vm0, %v2632_v32, -inf }
0x1ccf   :  { %v2636_v31 = vsel %vm134_vm0, %v2630_v29, -inf }
0x1cd1   :  { %2637 = vmax.xlane.f32.xlu0 %v2636_v31 }
0x1cd5   :  { %2643 = vmax.xlane.f32.xlu0 %v2642_v33 }
0x1cdf   :  { %2679 = vrot.lane.b32.xlu1 %v6990_v54, %s7609_s4 }
0x1d5a   :  { %v2641_v34 = vpop.xlane.xlu0 %2640 }
0x1d5b   :  { %v2647_v37 = vsub.f32 %v2631_v24, %v2641_v34  ;;  %v2635_v40 = vpop.xlane.xlu1 %2634 }
0x1d5c   :  { %v2645_v41 = vsub.f32 %v2629_v26, %v2635_v40 }
0x1d5d   :  { %v2653_v44 = vmul.f32 1.442695, %v2647_v37 }
0x1d5e   :  { %v2649_v46 = vmul.f32 1.442695, %v2645_v41  ;;  %v2638_v47 = vpop.xlane.xlu0 %2637 }
0x1d5f   :  { %6283 = vpow2.f32 %v2653_v44  ;;  %v2680_v48 = vpop.permute.xlu1 %2679  ;;  %v2646_v35 = vsub.f32 %v2630_v29, %v2638_v47 }
0x1d60   :  { %5770 = vmatprep.subr.bf16.mxu0 %v2680_v48  ;;  %6285 = vpow2.f32 %v2649_v46 }
0x1d61   :  { %5771 = vmatpush3.bf16.msra.mxu0 %v2680_v48  ;;  %v2651_v50 = vmul.f32 1.442695, %v2646_v35 }
0x1d62   :  { %v2644_v49 = vpop.xlane.xlu0 %2643 }
0x1d63   :  { %v2648_v36 = vsub.f32 %v2632_v32, %v2644_v49 }
0x1d65   :  { %v2655_v51 = vmul.f32 1.442695, %v2648_v36 }
0x1d67   :  { %6287 = vpow2.f32 %v2655_v51 }
0x1d68   :  { %6289 = vpow2.f32 %v2651_v50 }
0x1d69   :  { %v6284_v52 = vpop.eup %6283 }
0x1d6a   :  { %v2663_v58 = vsel %vm134_vm0, %v6284_v52, 0.0  ;;  %v6286_v55 = vpop.eup %6285 }
0x1d6b   :  { %2664 = vadd.xlane.f32.xlu1 %v2663_v58  ;;  %v2657_v56 = vsel %vm134_vm0, %v6286_v55, 0.0 }
0x1d6f   :  { %2658 = vadd.xlane.f32.xlu1 %v2657_v56 }
0x1d71   :  { %v6288_v62 = vpop.eup %6287 }
0x1d72   :  { %v2666_v57 = vsel %vm134_vm0, %v6288_v62, 0.0  ;;  %v6290_v60 = vpop.eup %6289 }
0x1d73   :  { %2667 = vadd.xlane.f32.xlu0 %v2666_v57  ;;  %v2660_v61 = vsel %vm134_vm0, %v6290_v60, 0.0 }
0x1d77   :  { %2661 = vadd.xlane.f32.xlu0 %v2660_v61 }
0x1d80   :  { %2744 = vrot.lane.b32.xlu1 %v6990_v54, %s7617_s7 }
0x1d84   :  { %2746 = vrot.lane.b32.xlu1 %v6988_v53, %s7617_s7 }
0x1d88   :  { %2740 = vrot.lane.b32.xlu1 %v6990_v54, %s7618_s20 }
0x1d8d   :  { %2681 = vrot.lane.b32.xlu0 %v6988_v53, %s7609_s4 }
0x1d91   :  { %2742 = vrot.lane.b32.xlu0 %v6988_v53, %s7618_s20 }
0x1df8   :  { %v2665_v63 = vpop.xlane.xlu1 %2664 }
0x1dfc   :  { %v2659_v0 = vpop.xlane.xlu1 %2658 }
0x1e00   :  { %v2668_v23 = vpop.xlane.xlu0 %2667  ;;  %v2745_v8 = vpop.permute.xlu1 %2744 }
0x1e01   :  { %6291 = vrcp.f32 %v2668_v23  ;;  %v2755_v29 = vsel %vm252_vm2, %v2745_v8, 0 }
0x1e02   :  { %6293 = vrcp.f32 %v2659_v0 }
0x1e03   :  { %6295 = vrcp.f32 %v2665_v63 }
0x1e04   :  { %v2662_v5 = vpop.xlane.xlu0 %2661  ;;  %v2747_v13 = vpop.permute.xlu1 %2746 }
0x1e05   :  { %6297 = vrcp.f32 %v2662_v5  ;;  %v2758_v30 = vsel %vm252_vm2, %v2747_v13, 0 }
0x1e08   :  { %v2682_v7 = vpop.permute.xlu0 %2681  ;;  %v2741_v45 = vpop.permute.xlu1 %2740 }
0x1e09   :  { %5772 = vmatprep.subr.bf16.mxu0 %v2682_v7 }
0x1e0a   :  { %5773 = vmatpush3.bf16.msra.mxu0 %v2682_v7 }
0x1e0b   :  { %5966 = vmatprep.subr.msk.bf16.mxu0 %vm252_vm2, %v2745_v8  ;;  %v6292_v11 = vpop.eup %6291 }
0x1e0c   :  { %v6294_v20 = vpop.eup %6293  ;;  %v2676_v22 = vmul.f32 %v6292_v11, %v6288_v62  ;;  %v2743_v31 = vpop.permute.xlu0 %2742 }
0x1e0d   :  { %v6296_v21 = vpop.eup %6295  ;;  %v2673_v24 = vmul.f32 %v6294_v20, %v6286_v55 }
0x1e0e   :  { %v2675_v26 = vmul.f32 %v6296_v21, %v6284_v52 }
0x1e0f   :  { %v6298_v12 = vpop.eup %6297 }
0x1e10   :  { %v2674_v25 = vmul.f32 %v6298_v12, %v6290_v60  ;;  %v2678_v28 = vpack.c.bf16 %v2676_v22, %v2675_v26 }
0x1e12   :  { %v2677_v27 = vpack.c.bf16 %v2674_v25, %v2673_v24 }
0x1e14   :  { %5774 = vmatprep.mubr.msk.bf16.mxu0 %vm134_vm0, %v2677_v27 }
0x1e15   :  { %5775 = vmatmul.mubr.msk.bf16.vlgmr.msra.gmra.mrb[56].mxu0 %vm134_vm0, %v2678_v28 }
0x1e16   :  { %5779 = vmatpush3.bf16.xpose.msra.mxu0 %v2755_v29  ;;  %5782 = vmatprep.mubr.msk.bf16.mxu0 %vm252_vm2, %v2741_v45 }
0x1e17   :  { %5967 = vmatprep.subr.msk.bf16.mxu0 %vm252_vm2, %v2747_v13 }
0x1e1e   :  { %5781 = vmatpush3.bf16.xpose.msra.mxu0 %v2758_v30 }
0x1e25   :  { %5783 = vmatmul.mubr.msk.bf16.vlgmr.msra.gmra.mrb[60].mxu0 %vm252_vm2, %v2743_v31 }
0x1ee8   :  { %v7094_v32 = vpop.f32.mrb[56].mxu0 }
0x1ee9   :  { %v7096_v33 = vpop.f32.mrb[57].mxu0 }
0x1eea   :  { %v7098_v34 = vpop.f32.mrb[58].mxu0 }
0x1eeb   :  { %v6061_v37 = vpack.i.bf16 %v7098_v34, %v7094_v32  ;;  %v7102_v40 = vpop.f32.mrb[59].mxu0 }
0x1eec   :  { %v6056_v41 = vpack.i.bf16 %v7102_v40, %v7096_v33 }
0x1ef8   :  { %v5784_v44 = vpop.f32.mrb[60].mxu0 }
0x1ef9   :  { %v2811_v46 = vmul.f32 0.35355338, %v5784_v44  ;;  %v2794_v47 = vpop.f32.mrb[61].mxu0 }
0x1efa   :  { %v2809_v48 = vmul.f32 0.35355338, %v2794_v47  ;;  %v5785_v35 = vpop.f32.mrb[62].mxu0 }
0x1efb   :  { %v2815_v49 = vadd.f32 %v2811_v46, %v7014_v2  ;;  %v2797_v36 = vpop.f32.mrb[63].mxu0  ;;  %v2812_v52 = vmul.f32 0.35355338, %v5785_v35 }
0x1efc   :  { %v2813_v50 = vadd.f32 %v2809_v48, %v7011_v59  ;;  %v2810_v51 = vmul.f32 0.35355338, %v2797_v36 }
0x1efd   :  { %v2823_v58 = vsel %vm134_vm0, %v2815_v49, -inf  ;;  %v2816_v57 = vadd.f32 %v2812_v52, %v7021_v9 }
0x1efe   :  { %v2814_v55 = vadd.f32 %v2810_v51, %v7017_v3  ;;  %2824 = vmax.xlane.f32.xlu0 %v2823_v58  ;;  %v2817_v56 = vsel %vm134_vm0, %v2813_v50, -inf }
0x1eff   :  { %2818 = vmax.xlane.f32.xlu1 %v2817_v56  ;;  %v2826_v60 = vsel %vm134_vm0, %v2816_v57, -inf }
0x1f00   :  { %v2820_v62 = vsel %vm134_vm0, %v2814_v55, -inf }
0x1f02   :  { %2821 = vmax.xlane.f32.xlu0 %v2820_v62 }
0x1f06   :  { %2827 = vmax.xlane.f32.xlu0 %v2826_v60 }
0x1f10   :  { %2863 = vrot.lane.b32.xlu1 %v6990_v54, %s7607_s11 }
0x1f8b   :  { %v2825_v61 = vpop.xlane.xlu0 %2824 }
0x1f8c   :  { %v2831_v63 = vsub.f32 %v2815_v49, %v2825_v61  ;;  %v2819_v0 = vpop.xlane.xlu1 %2818 }
0x1f8d   :  { %v2829_v23 = vsub.f32 %v2813_v50, %v2819_v0 }
0x1f8e   :  { %v2837_v5 = vmul.f32 1.442695, %v2831_v63 }
0x1f8f   :  { %v2833_v7 = vmul.f32 1.442695, %v2829_v23  ;;  %v2822_v8 = vpop.xlane.xlu0 %2821 }
0x1f90   :  { %6299 = vpow2.f32 %v2837_v5  ;;  %v2864_v11 = vpop.permute.xlu1 %2863  ;;  %v2830_v20 = vsub.f32 %v2814_v55, %v2822_v8 }
0x1f91   :  { %5786 = vmatprep.subr.bf16.mxu1 %v2864_v11  ;;  %6301 = vpow2.f32 %v2833_v7 }
0x1f92   :  { %5787 = vmatpush3.bf16.msra.mxu1 %v2864_v11  ;;  %v2835_v22 = vmul.f32 1.442695, %v2830_v20 }
0x1f93   :  { %v2828_v21 = vpop.xlane.xlu0 %2827 }
0x1f94   :  { %v2832_v12 = vsub.f32 %v2816_v57, %v2828_v21 }
0x1f96   :  { %v2839_v13 = vmul.f32 1.442695, %v2832_v12 }
0x1f98   :  { %6303 = vpow2.f32 %v2839_v13 }
0x1f99   :  { %6305 = vpow2.f32 %v2835_v22 }
0x1f9a   :  { %v6300_v24 = vpop.eup %6299 }
0x1f9b   :  { %v2847_v25 = vsel %vm134_vm0, %v6300_v24, 0.0  ;;  %v6302_v26 = vpop.eup %6301 }
0x1f9c   :  { %2848 = vadd.xlane.f32.xlu1 %v2847_v25  ;;  %v2841_v27 = vsel %vm134_vm0, %v6302_v26, 0.0 }
0x1fa0   :  { %2842 = vadd.xlane.f32.xlu1 %v2841_v27 }
0x1fa2   :  { %v6304_v28 = vpop.eup %6303 }
0x1fa3   :  { %v2850_v45 = vsel %vm134_vm0, %v6304_v28, 0.0  ;;  %v6306_v29 = vpop.eup %6305 }
0x1fa4   :  { %2851 = vadd.xlane.f32.xlu0 %v2850_v45  ;;  %v2844_v30 = vsel %vm134_vm0, %v6306_v29, 0.0 }
0x1fa8   :  { %2845 = vadd.xlane.f32.xlu0 %v2844_v30 }
0x1fb1   :  { %2928 = vrot.lane.b32.xlu1 %v6990_v54, %s7605_s10 }
0x1fb5   :  { %2930 = vrot.lane.b32.xlu1 %v6988_v53, %s7605_s10 }
0x1fb9   :  { %2924 = vrot.lane.b32.xlu1 %v6990_v54, %s7619_s15 }
0x1fbe   :  { %2865 = vrot.lane.b32.xlu0 %v6988_v53, %s7607_s11 }
0x1fc2   :  { %2926 = vrot.lane.b32.xlu0 %v6988_v53, %s7619_s15 }
0x2029   :  { %v2849_v31 = vpop.xlane.xlu1 %2848 }
0x202d   :  { %v2843_v44 = vpop.xlane.xlu1 %2842 }
0x2031   :  { %v2852_v46 = vpop.xlane.xlu0 %2851  ;;  %v2929_v35 = vpop.permute.xlu1 %2928 }
0x2032   :  { %6307 = vrcp.f32 %v2852_v46  ;;  %v2939_v63 = vsel %vm252_vm2, %v2929_v35, 0 }
0x2033   :  { %6309 = vrcp.f32 %v2843_v44 }
0x2034   :  { %6311 = vrcp.f32 %v2849_v31 }
0x2035   :  { %v2846_v47 = vpop.xlane.xlu0 %2845  ;;  %v2931_v58 = vpop.permute.xlu1 %2930 }
0x2036   :  { %6313 = vrcp.f32 %v2846_v47  ;;  %v2942_v0 = vsel %vm252_vm2, %v2931_v58, 0 }
0x2039   :  { %v2866_v48 = vpop.permute.xlu0 %2865  ;;  %v2925_v61 = vpop.permute.xlu1 %2924 }
0x203a   :  { %5788 = vmatprep.subr.bf16.mxu1 %v2866_v48 }
0x203b   :  { %5789 = vmatpush3.bf16.msra.mxu1 %v2866_v48 }
0x203c   :  { %5968 = vmatprep.subr.msk.bf16.mxu1 %vm252_vm2, %v2929_v35  ;;  %v6308_v49 = vpop.eup %6307 }
0x203d   :  { %v6310_v36 = vpop.eup %6309  ;;  %v2860_v52 = vmul.f32 %v6308_v49, %v6304_v28  ;;  %v2927_v23 = vpop.permute.xlu0 %2926 }
0x203e   :  { %v6312_v50 = vpop.eup %6311  ;;  %v2857_v55 = vmul.f32 %v6310_v36, %v6302_v26 }
0x203f   :  { %v2859_v62 = vmul.f32 %v6312_v50, %v6300_v24 }
0x2040   :  { %v6314_v51 = vpop.eup %6313 }
0x2041   :  { %v2858_v56 = vmul.f32 %v6314_v51, %v6306_v29  ;;  %v2862_v60 = vpack.c.bf16 %v2860_v52, %v2859_v62 }
0x2043   :  { %v2861_v57 = vpack.c.bf16 %v2858_v56, %v2857_v55 }
0x2045   :  { %5790 = vmatprep.mubr.msk.bf16.mxu1 %vm134_vm0, %v2861_v57 }
0x2046   :  { %5791 = vmatmul.mubr.msk.bf16.vlgmr.msra.gmra.mrb[60].mxu1 %vm134_vm0, %v2862_v60 }
0x2047   :  { %5795 = vmatpush3.bf16.xpose.msra.mxu1 %v2939_v63  ;;  %5798 = vmatprep.mubr.msk.bf16.mxu1 %vm252_vm2, %v2925_v61 }
0x2048   :  { %5969 = vmatprep.subr.msk.bf16.mxu1 %vm252_vm2, %v2931_v58 }
0x204f   :  { %5797 = vmatpush3.bf16.xpose.msra.mxu1 %v2942_v0 }
0x2056   :  { %5799 = vmatmul.mubr.msk.bf16.vlgmr.msra.gmra.mrb[64].mxu1 %vm252_vm2, %v2927_v23 }
0x2119   :  { %v5792_v5 = vpop.f32.mrb[60].mxu1 }
0x211a   :  { %v2909_v7 = vpop.f32.mrb[61].mxu1 }
0x211b   :  { %v5793_v8 = vpop.f32.mrb[62].mxu1 }
0x211c   :  { %v6071_v11 = vpack.i.bf16 %v5793_v8, %v5792_v5  ;;  %v2912_v20 = vpop.f32.mrb[63].mxu1 }
0x211d   :  { %v6066_v21 = vpack.i.bf16 %v2912_v20, %v2909_v7 }
0x2129   :  { %v5800_v12 = vpop.f32.mrb[64].mxu1 }
0x212a   :  { %v2995_v22 = vmul.f32 0.35355338, %v5800_v12  ;;  %v2978_v13 = vpop.f32.mrb[65].mxu1 }
0x212b   :  { %v2993_v24 = vmul.f32 0.35355338, %v2978_v13  ;;  %v5801_v25 = vpop.f32.mrb[66].mxu1  ;;  %v6145_v13 = vld [vmem:[%s6680_s6] sm:$0xff]  }
0x212c   :  { %v2999_v26 = vadd.f32 %v2995_v22, %v7014_v2  ;;  %v2981_v27 = vpop.f32.mrb[67].mxu1  ;;  %v2996_v29 = vmul.f32 0.35355338, %v5801_v25 }
0x212d   :  { %v2997_v28 = vadd.f32 %v2993_v24, %v7011_v59  ;;  %v2994_v45 = vmul.f32 0.35355338, %v2981_v27  ;;  %v6146_v24 = vld [vmem:[%s6680_s6 + $0x8] sm:$0xff]  }
0x212e   :  { %v3007_v30 = vsel %vm134_vm0, %v2999_v26, -inf  ;;  %v3000_v47 = vadd.f32 %v2996_v29, %v7021_v9 }
0x212f   :  { %v2998_v31 = vadd.f32 %v2994_v45, %v7017_v3  ;;  %3008 = vmax.xlane.f32.xlu0 %v3007_v30  ;;  %v3001_v44 = vsel %vm134_vm0, %v2997_v28, -inf }
0x2130   :  { %3002 = vmax.xlane.f32.xlu1 %v3001_v44  ;;  %v3010_v2 = vsel %vm134_vm0, %v3000_v47, -inf }
0x2131   :  { %v3004_v46 = vsel %vm134_vm0, %v2998_v31, -inf }
0x2133   :  { %3005 = vmax.xlane.f32.xlu0 %v3004_v46 }
0x2137   :  { %3011 = vmax.xlane.f32.xlu0 %v3010_v2 }
0x21bc   :  { %v3009_v48 = vpop.xlane.xlu0 %3008 }
0x21bd   :  { %v3015_v59 = vsub.f32 %v2999_v26, %v3009_v48  ;;  %v3003_v35 = vpop.xlane.xlu1 %3002 }
0x21be   :  { %v3013_v49 = vsub.f32 %v2997_v28, %v3003_v35 }
0x21bf   :  { %v3021_v36 = vmul.f32 1.442695, %v3015_v59 }
0x21c0   :  { %v3017_v50 = vmul.f32 1.442695, %v3013_v49  ;;  %v3006_v51 = vpop.xlane.xlu0 %3005 }
0x21c1   :  { %6315 = vpow2.f32 %v3021_v36  ;;  %v3014_v3 = vsub.f32 %v2998_v31, %v3006_v51 }
0x21c2   :  { %6317 = vpow2.f32 %v3017_v50 }
0x21c3   :  { %v3019_v55 = vmul.f32 1.442695, %v3014_v3 }
0x21c4   :  { %v3012_v52 = vpop.xlane.xlu0 %3011 }
0x21c5   :  { %v3016_v58 = vsub.f32 %v3000_v47, %v3012_v52 }
0x21c7   :  { %v3023_v56 = vmul.f32 1.442695, %v3016_v58 }
0x21c9   :  { %6319 = vpow2.f32 %v3023_v56 }
0x21ca   :  { %6321 = vpow2.f32 %v3019_v55 }
0x21cb   :  { %v6316_v9 = vpop.eup %6315 }
0x21cc   :  { %v3031_v62 = vsel %vm134_vm0, %v6316_v9, 0.0  ;;  %v6318_v57 = vpop.eup %6317 }
0x21cd   :  { %3032 = vadd.xlane.f32.xlu1 %v3031_v62  ;;  %v3025_v60 = vsel %vm134_vm0, %v6318_v57, 0.0 }
0x21d1   :  { %3026 = vadd.xlane.f32.xlu1 %v3025_v60 }
0x21d3   :  { %v6320_v61 = vpop.eup %6319 }
0x21d4   :  { %v3034_v63 = vsel %vm134_vm0, %v6320_v61, 0.0  ;;  %v6322_v0 = vpop.eup %6321 }
0x21d5   :  { %3035 = vadd.xlane.f32.xlu0 %v3034_v63  ;;  %v3028_v23 = vsel %vm134_vm0, %v6322_v0, 0.0 }
0x21d9   :  { %3029 = vadd.xlane.f32.xlu0 %v3028_v23 }
0x21e2   :  { %3047 = vrot.lane.b32.xlu1 %v6990_v54, %s7608_s12 }
0x21e6   :  { %6057 = vrot.lane.b32.xlu1 %v6056_v41, %s7610_s18 }
0x21ea   :  { %6062 = vrot.lane.b32.xlu1 %v6061_v37, %s7610_s18 }
0x21ee   :  { %6067 = vrot.lane.b32.xlu1 %v6066_v21, %s7611_s23 }
0x21ef   :  { %3049 = vrot.lane.b32.xlu0 %v6988_v53, %s7608_s12 }
0x21f3   :  { %6072 = vrot.lane.b32.xlu0 %v6071_v11, %s7611_s23 }
0x225a   :  { %v3033_v5 = vpop.xlane.xlu1 %3032 }
0x225e   :  { %v3027_v7 = vpop.xlane.xlu1 %3026 }
0x2262   :  { %v3048_v54 = vpop.permute.xlu1 %3047  ;;  %v3036_v8 = vpop.xlane.xlu0 %3035 }
0x2263   :  { %5802 = vmatprep.subr.bf16.mxu0 %v3048_v54  ;;  %6323 = vrcp.f32 %v3036_v8 }
0x2264   :  { %5803 = vmatpush3.bf16.msra.mxu0 %v3048_v54  ;;  %6325 = vrcp.f32 %v3027_v7  ;;  %v5290_v54 = vld [vmem:[%s6701_s3] ss:$0 sm:$0xff] }
0x2265   :  { %6327 = vrcp.f32 %v3033_v5 }
0x2266   :  { %v3030_v33 = vpop.xlane.xlu0 %3029  ;;  %v6058_v30 = vpop.permute.xlu1 %6057 }
0x2267   :  { %6329 = vrcp.f32 %v3030_v33  ;;  %v6060_v46 = vunpack.i.h.bf16 %v6058_v30  ;;  %v6059_v47 = vunpack.i.l.bf16 %v6058_v30 }
0x2269   :  { %v3157_v51 = vsel %vm252_vm2, %v7060_v19, %v6060_v46  ;;  %v3156_v3 = vsel %vm252_vm2, %v7056_v15, %v6059_v47 }
0x226a   :  { %v3050_v32 = vpop.permute.xlu0 %3049  ;;  %v6063_v31 = vpop.permute.xlu1 %6062 }
0x226b   :  { %5804 = vmatprep.subr.bf16.mxu0 %v3050_v32  ;;  %v6065_v48 = vunpack.i.h.bf16 %v6063_v31  ;;  %v6064_v59 = vunpack.i.l.bf16 %v6063_v31 }
0x226c   :  { %5805 = vmatpush3.bf16.msra.mxu0 %v3050_v32 }
0x226d   :  { %v6324_v34 = vpop.eup %6323  ;;  %5810 = vmatprep.subr.bf16.mxu0 %v6145_v13  ;;  %v3159_v58 = vsel %vm252_vm2, %v7058_v17, %v6065_v48  ;;  %v3158_v55 = vsel %vm252_vm2, %v7054_v14, %v6064_v59 }
0x226e   :  { %v6326_v53 = vpop.eup %6325  ;;  %v3044_v41 = vmul.f32 %v6324_v34, %v6320_v61  ;;  %v6073_v44 = vpop.permute.xlu0 %6072 }
0x226f   :  { %v6328_v37 = vpop.eup %6327  ;;  %v3041_v11 = vmul.f32 %v6326_v53, %v6318_v57  ;;  %v6068_v2 = vpop.permute.xlu1 %6067  ;;  %v6075_v35 = vunpack.i.h.bf16 %v6073_v44  ;;  %v6074_v49 = vunpack.i.l.bf16 %v6073_v44 }
0x2270   :  { %v3043_v21 = vmul.f32 %v6328_v37, %v6316_v9  ;;  %v6070_v36 = vunpack.i.h.bf16 %v6068_v2  ;;  %v6069_v50 = vunpack.i.l.bf16 %v6068_v2 }
0x2271   :  { %v6330_v40 = vpop.eup %6329  ;;  %v3163_v57 = vsel %vm304_vm3, %v3159_v58, %v6075_v35  ;;  %v3162_v60 = vsel %vm304_vm3, %v3158_v55, %v6074_v49 }
0x2272   :  { %v3042_v20 = vmul.f32 %v6330_v40, %v6322_v0  ;;  %v3046_v22 = vpack.c.bf16 %v3044_v41, %v3043_v21  ;;  %v3160_v63 = vsel %vm304_vm3, %v3156_v3, %v6069_v50  ;;  %v3161_v15 = vsel %vm304_vm3, %v3157_v51, %v6070_v36  ;;  %v6147_v50 = vld [vmem:[%s6669_s19] sm:$0xff]   ;;  %v6148_v51 = vld [vmem:[%s6669_s19 + $0x8] sm:$0xff]  }
0x2273   :  { %5818 = vmatprep.subr.bf16.mxu1 %v6147_v50 }
0x2274   :  { %v3045_v12 = vpack.c.bf16 %v3042_v20, %v3041_v11  ;;  %5819 = vmatpush3.bf16.msra.mxu1 %v6147_v50 }
0x2275   :  { %5820 = vmatprep.subr.bf16.mxu1 %v6148_v51 }
0x2276   :  { %5806 = vmatprep.mubr.msk.bf16.mxu0 %vm134_vm0, %v3045_v12 }
0x2277   :  { %5807 = vmatmul.mubr.msk.bf16.vlgmr.msra.gmra.mrb[64].mxu0 %vm134_vm0, %v3046_v22 }
0x2278   :  { %5811 = vmatpush3.bf16.msra.mxu0 %v6145_v13  ;;  %5821 = vmatpush3.bf16.msra.mxu1 %v6148_v51 }
0x2279   :  { %5812 = vmatprep.subr.bf16.mxu0 %v6146_v24 }
0x227c   :  { %5813 = vmatpush3.bf16.msra.mxu0 %v6146_v24 }
0x234a   :  { %v5808_v25 = vpop.f32.mrb[64].mxu0 }
0x234b   :  { %v3093_v26 = vpop.f32.mrb[65].mxu0 }
0x234c   :  { %v5809_v27 = vpop.f32.mrb[66].mxu0 }
0x234d   :  { %v6081_v28 = vpack.i.bf16 %v5809_v27, %v5808_v25  ;;  %v3096_v45 = vpop.f32.mrb[67].mxu0 }
0x234e   :  { %v6076_v29 = vpack.i.bf16 %v3096_v45, %v3093_v26 }
0x234f   :  { %6082 = vrot.lane.b32.xlu0 %v6081_v28, %s7612_s1 }
0x2350   :  { %6077 = vrot.lane.b32.xlu1 %v6076_v29, %s7612_s1 }
0x23c1   :  { %v6083_v52 = vpop.permute.xlu0 %6082 }
0x23c2   :  { %v6085_v56 = vunpack.i.h.bf16 %v6083_v52  ;;  %v6084_v9 = vunpack.i.l.bf16 %v6083_v52  ;;  %v6078_v62 = vpop.permute.xlu1 %6077 }
0x23c3   :  { %v6080_v61 = vunpack.i.h.bf16 %v6078_v62  ;;  %v6079_v19 = vunpack.i.l.bf16 %v6078_v62 }
0x23c4   :  { %v3166_v0 = vsel %vm778_vm4, %v3162_v60, %v6084_v9  ;;  %v3167_v17 = vsel %vm778_vm4, %v3163_v57, %v6085_v56 }
0x23c5   :  { %v3169_v23 = vpack.c.bf16 %v3167_v17, %v3166_v0  ;;  %v3165_v14 = vsel %vm778_vm4, %v3161_v15, %v6080_v61  ;;  %v3164_v5 = vsel %vm778_vm4, %v3160_v63, %v6079_v19  ;;  %v5295_v17 = vld [vmem:[%s7620_s26] ss:$0 sm:$0xff] }
0x23c6   :  { %v3168_v7 = vpack.c.bf16 %v3165_v14, %v3164_v5 }
0x23c8   :  { %5814 = vmatprep.mubr.msk.bf16.mxu0 %vm134_vm0, %v3168_v7 }
0x23c9   :  { %5815 = vmatmul.mubr.msk.bf16.vlgmr.msra.gmra.mrb[68].mxu0 %vm134_vm0, %v3169_v23 }
0x249c   :  { %v5816_v8 = vpop.f32.mrb[68].mxu0 }
0x249d   :  { %v3242_v33 = vadd.f32 %v5816_v8, %v5290_v54  ;;  %v3233_v32 = vpop.f32.mrb[69].mxu0  ;;  %v5296_v8 = vld [vmem:[%s7621_s28] ss:$0 sm:$0xff] }
0x249e   :  { %v3234_v34 = vadd.f32 %v5290_v54, %v3233_v32  ;;  %v5817_v53 = vpop.f32.mrb[70].mxu0 }
0x249f   :  { %v3250_v37 = vadd.f32 %v3242_v33, %v6979_v42  ;;  %v3236_v40 = vpop.f32.mrb[71].mxu0  ;;  %v3245_v20 = vadd.f32 %v5817_v53, %v5290_v54 }
0x24a0   :  { %v3248_v41 = vadd.f32 %v3234_v34, %v6973_v38  ;;  %v3237_v11 = vadd.f32 %v5290_v54, %v3236_v40 }
0x24a1   :  { %v3260_v21 = vsel %vm134_vm0, %v3250_v37, 0.0  ;;  %v3251_v24 = vadd.f32 %v3245_v20, %v6981_v43 }
0x24a2   :  { %v3249_v12 = vadd.f32 %v3237_v11, %v6975_v39  ;;  %3261 = vadd.xlane.f32.xlu0 %v3260_v21  ;;  %v3254_v22 = vsel %vm134_vm0, %v3248_v41, 0.0 }
0x24a3   :  { %3255 = vadd.xlane.f32.xlu1 %v3254_v22  ;;  %v3263_v42 = vsel %vm134_vm0, %v3251_v24, 0.0  ;;  %v6149_v22 = vld [vmem:[%s7622_s29] sm:$0xff]  }
0x24a4   :  { %v3257_v13 = vsel %vm134_vm0, %v3249_v12, 0.0  ;;  %5826 = vmatprep.subr.bf16.mxu0 %v6149_v22 }
0x24a5   :  { %5827 = vmatpush3.bf16.msra.mxu0 %v6149_v22 }
0x24a6   :  { %3258 = vadd.xlane.f32.xlu0 %v3257_v13  ;;  %v6150_v13 = vld [vmem:[%s7622_s29 + $0x8] sm:$0xff]  }
0x24a7   :  { %5828 = vmatprep.subr.bf16.mxu0 %v6150_v13 }
0x24a9   :  { %5829 = vmatpush3.bf16.msra.mxu0 %v6150_v13 }
0x24aa   :  { %3264 = vadd.xlane.f32.xlu0 %v3263_v42  ;;  %v6152_v42 = vld [vmem:[%s7622_s29 + $0x18] sm:$0xff]  }
0x252f   :  { %v3262_v25 = vpop.xlane.xlu0 %3261 }
0x2530   :  { %v3268_v38 = vmul.f32 0.03125, %v3262_v25  ;;  %v3256_v26 = vpop.xlane.xlu1 %3255  ;;  %v5297_v25 = vld [vmem:[%s7623_s30] ss:$0 sm:$0xff] }
0x2531   :  { %v3266_v27 = vmul.f32 0.03125, %v3256_v26 }
0x2532   :  { %v3272_v28 = vsub.f32 %v3250_v37, %v3268_v38 }
0x2533   :  { %v3270_v45 = vsub.f32 %v3248_v41, %v3266_v27  ;;  %v3259_v29 = vpop.xlane.xlu0 %3258 }
0x2534   :  { %v3267_v39 = vmul.f32 0.03125, %v3259_v29  ;;  %v3276_v43 = vmul.f32 %v3272_v28, %v3272_v28 }
0x2535   :  { %v3274_v30 = vmul.f32 %v3270_v45, %v3270_v45 }
0x2536   :  { %v3271_v31 = vsub.f32 %v3249_v12, %v3267_v39  ;;  %v3284_v35 = vsel %vm134_vm0, %v3276_v43, 0.0 }
0x2537   :  { %v3265_v44 = vpop.xlane.xlu0 %3264  ;;  %v3278_v46 = vsel %vm134_vm0, %v3274_v30, 0.0 }
0x2538   :  { %v3269_v47 = vmul.f32 0.03125, %v3265_v44  ;;  %3279 = vadd.xlane.f32.xlu1 %v3278_v46  ;;  %v3275_v2 = vmul.f32 %v3271_v31, %v3271_v31 }
0x253a   :  { %v3273_v48 = vsub.f32 %v3251_v24, %v3269_v47  ;;  %v3281_v59 = vsel %vm134_vm0, %v3275_v2, 0.0  ;;  %v6151_v24 = vld [vmem:[%s7622_s29 + $0x10] sm:$0xff]  }
0x253b   :  { %3282 = vadd.xlane.f32.xlu0 %v3281_v59  ;;  %5830 = vmatprep.subr.bf16.mxu0 %v6151_v24 }
0x253c   :  { %3285 = vadd.xlane.f32.xlu1 %v3284_v35  ;;  %v3277_v49 = vmul.f32 %v3273_v48, %v3273_v48  ;;  %5831 = vmatpush3.bf16.msra.mxu0 %v6151_v24 }
0x253d   :  { %5832 = vmatprep.subr.bf16.mxu0 %v6152_v42 }
0x253e   :  { %v3287_v36 = vsel %vm134_vm0, %v3277_v49, 0.0 }
0x253f   :  { %3288 = vadd.xlane.f32.xlu0 %v3287_v36 }
0x2540   :  { %5833 = vmatpush3.bf16.msra.mxu0 %v6152_v42 }
0x25c5   :  { %v3280_v3 = vpop.xlane.xlu1 %3279 }
0x25c6   :  { %v3290_v52 = vmul.f32 0.03125, %v3280_v3 }
0x25c8   :  { %v3294_v58 = vadd.f32 1e-12, %v3290_v52  ;;  %v3283_v55 = vpop.xlane.xlu0 %3282 }
0x25c9   :  { %v3291_v56 = vmul.f32 0.03125, %v3283_v55  ;;  %v3286_v9 = vpop.xlane.xlu1 %3285 }
0x25ca   :  { %6331 = vrsqrt.f32 %v3294_v58  ;;  %v3292_v62 = vmul.f32 0.03125, %v3286_v9 }
0x25cb   :  { %v3295_v57 = vadd.f32 1e-12, %v3291_v56 }
0x25cc   :  { %v3296_v60 = vadd.f32 1e-12, %v3292_v62  ;;  %v3289_v61 = vpop.xlane.xlu0 %3288 }
0x25cd   :  { %6333 = vrsqrt.f32 %v3295_v57  ;;  %v3293_v19 = vmul.f32 0.03125, %v3289_v61 }
0x25ce   :  { %6335 = vrsqrt.f32 %v3296_v60 }
0x25cf   :  { %v3297_v63 = vadd.f32 1e-12, %v3293_v19 }
0x25d1   :  { %6337 = vrsqrt.f32 %v3297_v63 }
0x25d4   :  { %v6332_v15 = vpop.eup %6331 }
0x25d5   :  { %v3302_v0 = vmul.f32 %v6332_v15, %v3270_v45 }
0x25d7   :  { %v6334_v23 = vpop.eup %6333  ;;  %v3312_v7 = vmul.f32 %v5295_v17, %v3302_v0 }
0x25d8   :  { %v6336_v14 = vpop.eup %6335  ;;  %v3303_v5 = vmul.f32 %v6334_v23, %v3271_v31 }
0x25d9   :  { %v3304_v54 = vmul.f32 %v6336_v14, %v3272_v28  ;;  %v7205_v37 = vadd.f32 %v5296_v8, %v3312_v7 }
0x25da   :  { %v3313_v33 = vmul.f32 %v5295_v17, %v3303_v5 }
0x25db   :  { %v6338_v32 = vpop.eup %6337  ;;  %v3314_v34 = vmul.f32 %v5295_v17, %v3304_v54 }
0x25dc   :  { %v3305_v53 = vmul.f32 %v6338_v32, %v3273_v48  ;;  %v7207_v40 = vadd.f32 %v5296_v8, %v3313_v33 }
0x25dd   :  { %v7212_v20 = vadd.f32 %v5296_v8, %v3314_v34 }
0x25de   :  { %v3315_v41 = vmul.f32 %v5295_v17, %v3305_v53  ;;  %v3326_v11 = vpack.c.bf16 %v7207_v40, %v7205_v37 }
0x25e0   :  { %5822 = vmatprep.mubr.msk.bf16.mxu1 %vm134_vm0, %v3326_v11  ;;  %v7214_v21 = vadd.f32 %v5296_v8, %v3315_v41  ;;  %v5302_v41 = vld [vmem:[%s7624_s27] ss:$0 sm:$0xff] }
0x25e2   :  { %v3327_v12 = vpack.c.bf16 %v7214_v21, %v7212_v20 }
0x25e4   :  { %5823 = vmatmul.mubr.msk.bf16.vlgmr.msra.gmra.mrb[68].mxu1 %vm134_vm0, %v3327_v12 }
0x26b7   :  { %v5824_v38 = vpop.f32.mrb[68].mxu1 }
0x26b8   :  { %v3400_v26 = vadd.f32 %v5824_v38, %v5297_v25  ;;  %v3391_v27 = vpop.f32.mrb[69].mxu1 }
0x26b9   :  { %v3392_v28 = vadd.f32 %v5297_v25, %v3391_v27  ;;  %v5825_v45 = vpop.f32.mrb[70].mxu1 }
0x26ba   :  { %v3408_v29 = vmul.f32 %v3400_v26, %v3400_v26  ;;  %v3403_v39 = vadd.f32 %v5825_v45, %v5297_v25  ;;  %v3394_v30 = vpop.f32.mrb[71].mxu1 }
0x26bb   :  { %v3406_v31 = vmul.f32 %v3392_v28, %v3392_v28  ;;  %v3395_v44 = vadd.f32 %v5297_v25, %v3394_v30 }
0x26bc   :  { %v3412_v46 = vmul.f32 %v3408_v29, %v3400_v26  ;;  %v3409_v43 = vmul.f32 %v3403_v39, %v3403_v39 }
0x26bd   :  { %v3410_v47 = vmul.f32 %v3406_v31, %v3392_v28  ;;  %v3407_v2 = vmul.f32 %v3395_v44, %v3395_v44 }
0x26be   :  { %v3416_v48 = vmul.f32 0.044715, %v3412_v46  ;;  %v3413_v59 = vmul.f32 %v3409_v43, %v3403_v39 }
0x26bf   :  { %v3414_v35 = vmul.f32 0.044715, %v3410_v47  ;;  %v3411_v49 = vmul.f32 %v3407_v2, %v3395_v44 }
0x26c0   :  { %v3420_v36 = vadd.f32 %v3416_v48, %v3400_v26  ;;  %v3417_v50 = vmul.f32 0.044715, %v3413_v59 }
0x26c1   :  { %v3418_v51 = vadd.f32 %v3414_v35, %v3392_v28  ;;  %v3415_v3 = vmul.f32 0.044715, %v3411_v49 }
0x26c2   :  { %v3424_v52 = vmul.f32 0.7978846, %v3420_v36  ;;  %v3421_v58 = vadd.f32 %v3417_v50, %v3403_v39 }
0x26c3   :  { %v3422_v55 = vmul.f32 0.7978846, %v3418_v51  ;;  %v3419_v56 = vadd.f32 %v3415_v3, %v3395_v44 }
0x26c4   :  { %6339 = vtanh.f32 %v3424_v52  ;;  %v3425_v9 = vmul.f32 0.7978846, %v3421_v58 }
0x26c5   :  { %6341 = vtanh.f32 %v3422_v55  ;;  %v3423_v62 = vmul.f32 0.7978846, %v3419_v56  ;;  %v6153_v56 = vld [vmem:[%s6531_s13 + $0x10] sm:$0xff]  }
0x26c6   :  { %6343 = vtanh.f32 %v3425_v9  ;;  %5838 = vmatprep.subr.bf16.mxu1 %v6153_v56  ;;  %v6154_v9 = vld [vmem:[%s6531_s13 + $0x18] sm:$0xff]   ;;  %s6495_s13 = smov 30  }
0x26c7   :  { %6345 = vtanh.f32 %v3423_v62  ;;  %5839 = vmatpush3.bf16.msra.mxu1 %v6153_v56 }
0x26c8   :  { %5840 = vmatprep.subr.bf16.mxu1 %v6154_v9 }
0x26cb   :  { %5841 = vmatpush3.bf16.msra.mxu1 %v6154_v9  ;;  %v7279_v9 = vld [vmem:[%s7008_s21 + $0x10] sm:$0xff] }
0x26ce   :  { %v6340_v57 = vpop.eup %6339 }
0x26cf   :  { %v6342_v60 = vpop.eup %6341  ;;  %v3432_v61 = vadd.f32 1.0, %v6340_v57 }
0x26d0   :  { %v6344_v19 = vpop.eup %6343  ;;  %v3430_v63 = vadd.f32 1.0, %v6342_v60 }
0x26d1   :  { %v6346_v15 = vpop.eup %6345  ;;  %v3436_v0 = vmul.f32 0.5, %v3432_v61  ;;  %v3433_v17 = vadd.f32 1.0, %v6344_v19 }
0x26d2   :  { %v3434_v23 = vmul.f32 0.5, %v3430_v63  ;;  %v3431_v14 = vadd.f32 1.0, %v6346_v15 }
0x26d3   :  { %v3437_v5 = vmul.f32 0.5, %v3433_v17  ;;  %v3440_v54 = vmul.f32 %v3436_v0, %v3400_v26 }
0x26d4   :  { %v3435_v7 = vmul.f32 0.5, %v3431_v14  ;;  %v3438_v33 = vmul.f32 %v3434_v23, %v3392_v28 }
0x26d5   :  { %v3441_v8 = vmul.f32 %v3437_v5, %v3403_v39 }
0x26d6   :  { %v3439_v32 = vmul.f32 %v3435_v7, %v3395_v44 }
0x26d7   :  { %v3443_v34 = vpack.c.bf16 %v3441_v8, %v3440_v54  ;;  %v5309_v54 = vld [vmem:[%s7625_s2] ss:$0 sm:$0xff] }
0x26d8   :  { %v3442_v53 = vpack.c.bf16 %v3439_v32, %v3438_v33 }
0x26da   :  { %5834 = vmatprep.mubr.msk.bf16.mxu0 %vm1021_vm5, %v3442_v53 }
0x26db   :  { %5835 = vmatmul.mubr.msk.bf16.vlgmr.msra.gmra.mrb[72].mxu0 %vm1021_vm5, %v3443_v34 }
0x27ae   :  { %v5836_v11 = vpop.f32.mrb[72].mxu0 }
0x27af   :  { %v3523_v12 = vpop.f32.mrb[73].mxu0  ;;  %v3532_v22 = vadd.f32 %v5836_v11, %v5302_v41 }
0x27b0   :  { %v3524_v13 = vadd.f32 %v5302_v41, %v3523_v12  ;;  %v5837_v24 = vpop.f32.mrb[74].mxu0 }
0x27b1   :  { %v3526_v42 = vpop.f32.mrb[75].mxu0  ;;  %v3535_v38 = vadd.f32 %v5837_v24, %v5302_v41  ;;  %v3540_v27 = vadd.f32 %v3532_v22, %v7212_v20 }
0x27b2   :  { %v3538_v25 = vadd.f32 %v3524_v13, %v7205_v37  ;;  %v3527_v26 = vadd.f32 %v5302_v41, %v3526_v42  ;;  %v5310_v41 = vld [vmem:[%s7626_s14] ss:$0 sm:$0xff] }
0x27b3   :  { %v3541_v29 = vadd.f32 %v3535_v38, %v7214_v21  ;;  %v3550_v30 = vsel %vm134_vm0, %v3540_v27, 0.0 }
0x27b4   :  { %v3539_v28 = vadd.f32 %v3527_v26, %v7207_v40  ;;  %v3544_v45 = vsel %vm134_vm0, %v3538_v25, 0.0 }
0x27b5   :  { %3545 = vadd.xlane.f32.xlu1 %v3544_v45  ;;  %v3553_v31 = vsel %vm134_vm0, %v3541_v29, 0.0 }
0x27b6   :  { %v3547_v39 = vsel %vm134_vm0, %v3539_v28, 0.0 }
0x27b7   :  { %3548 = vadd.xlane.f32.xlu0 %v3547_v39  ;;  %v5316_v39 = vld [vmem:[%s6566_s25 + $0x1] ss:$0 sm:$0xff] }
0x27b9   :  { %3551 = vadd.xlane.f32.xlu1 %v3550_v30 }
0x27bb   :  { %3554 = vadd.xlane.f32.xlu0 %v3553_v31 }
0x2842   :  { %v3546_v37 = vpop.xlane.xlu1 %3545 }
0x2843   :  { %v3556_v44 = vmul.f32 0.03125, %v3546_v37 }
0x2844   :  { %v3549_v46 = vpop.xlane.xlu0 %3548 }
0x2845   :  { %v3560_v20 = vsub.f32 %v3538_v25, %v3556_v44  ;;  %v3557_v43 = vmul.f32 0.03125, %v3549_v46 }
0x2846   :  { %v3552_v40 = vpop.xlane.xlu1 %3551 }
0x2847   :  { %v3561_v47 = vsub.f32 %v3539_v28, %v3557_v43  ;;  %v3558_v2 = vmul.f32 0.03125, %v3552_v40  ;;  %v3564_v48 = vmul.f32 %v3560_v20, %v3560_v20 }
0x2848   :  { %v3555_v21 = vpop.xlane.xlu0 %3554 }
0x2849   :  { %v3562_v59 = vsub.f32 %v3540_v27, %v3558_v2  ;;  %v3559_v35 = vmul.f32 0.03125, %v3555_v21  ;;  %v3568_v49 = vsel %vm134_vm0, %v3564_v48, 0.0  ;;  %v3565_v36 = vmul.f32 %v3561_v47, %v3561_v47 }
0x284a   :  { %3569 = vadd.xlane.f32.xlu1 %v3568_v49 }
0x284b   :  { %v3563_v50 = vsub.f32 %v3541_v29, %v3559_v35  ;;  %v3571_v51 = vsel %vm134_vm0, %v3565_v36, 0.0  ;;  %v3566_v3 = vmul.f32 %v3562_v59, %v3562_v59 }
0x284c   :  { %3572 = vadd.xlane.f32.xlu0 %v3571_v51 }
0x284d   :  { %v3574_v52 = vsel %vm134_vm0, %v3566_v3, 0.0  ;;  %v3567_v58 = vmul.f32 %v3563_v50, %v3563_v50 }
0x284e   :  { %3575 = vadd.xlane.f32.xlu1 %v3574_v52  ;;  %v7275_v52 = vld [vmem:[%s7008_s21] sm:$0xff] }
0x284f   :  { %v3577_v55 = vsel %vm134_vm0, %v3567_v58, 0.0 }
0x2850   :  { %3578 = vadd.xlane.f32.xlu0 %v3577_v55 }
0x28d7   :  { %v3570_v62 = vpop.xlane.xlu1 %3569 }
0x28d8   :  { %v3580_v57 = vmul.f32 0.03125, %v3570_v62 }
0x28d9   :  { %v3573_v60 = vpop.xlane.xlu0 %3572 }
0x28da   :  { %v3584_v61 = vadd.f32 1e-12, %v3580_v57  ;;  %v3581_v19 = vmul.f32 0.03125, %v3573_v60  ;;  %v7283_v57 = vld [vmem:[%s7008_s21 + $0x8] sm:$0xff] }
0x28db   :  { %v3576_v63 = vpop.xlane.xlu1 %3575 }
0x28dc   :  { %6347 = vrsqrt.f32 %v3584_v61  ;;  %v3585_v15 = vadd.f32 1e-12, %v3581_v19  ;;  %v3582_v0 = vmul.f32 0.03125, %v3576_v63  ;;  %v7288_v19 = vld [vmem:[%s7008_s21 + $0x18] sm:$0xff] }
0x28dd   :  { %v3579_v17 = vpop.xlane.xlu0 %3578 }
0x28de   :  { %6349 = vrsqrt.f32 %v3585_v15  ;;  %v3586_v23 = vadd.f32 1e-12, %v3582_v0  ;;  %v3583_v14 = vmul.f32 0.03125, %v3579_v17 }
0x28e0   :  { %6351 = vrsqrt.f32 %v3586_v23  ;;  %v3587_v5 = vadd.f32 1e-12, %v3583_v14 }
0x28e2   :  { %6353 = vrsqrt.f32 %v3587_v5 }
0x28e6   :  { %v6348_v7 = vpop.eup %6347 }
0x28e7   :  { %v3592_v8 = vmul.f32 %v6348_v7, %v3560_v20 }
0x28e8   :  { %v6350_v33 = vpop.eup %6349 }
0x28e9   :  { %v3593_v32 = vmul.f32 %v6350_v33, %v3561_v47  ;;  %v3602_v34 = vmul.f32 %v5309_v54, %v3592_v8 }
0x28ea   :  { %v6352_v53 = vpop.eup %6351 }
0x28eb   :  { %v3594_v11 = vmul.f32 %v6352_v53, %v3562_v59  ;;  %v3603_v12 = vmul.f32 %v5309_v54, %v3593_v32  ;;  %v7243_v42 = vadd.f32 %v5310_v41, %v3602_v34 }
0x28ec   :  { %v6354_v22 = vpop.eup %6353 }
0x28ed   :  { %v3604_v13 = vmul.f32 %v5309_v54, %v3594_v11  ;;  %v3595_v24 = vmul.f32 %v6354_v22, %v3563_v50  ;;  %v7245_v25 = vadd.f32 %v5310_v41, %v3603_v12 }
0x28ef   :  { %v3605_v38 = vmul.f32 %v5309_v54, %v3595_v24  ;;  %v3616_v26 = vpack.c.bf16 %v7245_v25, %v7243_v42  ;;  %v7250_v27 = vadd.f32 %v5310_v41, %v3604_v13 }
0x28f1   :  { %5842 = vmatprep.mubr.msk.bf16.mxu1 %vm134_vm0, %v3616_v26  ;;  %v7252_v28 = vadd.f32 %v5310_v41, %v3605_v38 }
0x28f3   :  { %v3617_v45 = vpack.c.bf16 %v7252_v28, %v7250_v27 }
0x28f5   :  { %5843 = vmatmul.mubr.msk.bf16.vlgmr.msra.gmra.mrb[72].mxu1 %vm134_vm0, %v3617_v45 }
0x29c8   :  { %v5844_v29 = vpop.f32.mrb[72].mxu1 }
0x29c9   :  { %v3681_v30 = vpop.f32.mrb[73].mxu1  ;;  %v3690_v37 = vadd.f32 %v5844_v29, %v5316_v39 }
0x29ca   :  { %v5845_v31 = vpop.f32.mrb[74].mxu1  ;;  %v3682_v20 = vadd.f32 %v5316_v39, %v3681_v30 }
0x29cb   :  { %v3693_v44 = vadd.f32 %v5845_v31, %v5316_v39  ;;  %v3684_v46 = vpop.f32.mrb[75].mxu1 }
0x29cc   :  { %v3685_v43 = vadd.f32 %v5316_v39, %v3684_v46 }
0x29cd   :  { %v7258_v40 = vpack.c.bf16 %v3693_v44, %v3690_v37 }
0x29ce   :  { %v7260_v47 = vpack.c.bf16 %v3685_v43, %v3682_v20 }
0x29cf   :  { %3702 = vrot.lane.b32.xlu0 %v7258_v40, %s7614_s5 }
0x29d0   :  { %3700 = vrot.lane.b32.xlu1 %v7260_v47, %s7614_s5  ;;  %5850 = vmatprep.mubr.msk.bf16.mxu1 %vm252_vm2, %v7260_v47  ;;  %s6498_s5 = smov 26  }
0x29d1   :  { %s5166_s21 = sld [smem:[%s7551_s0 + %s6498_s5]]  }
0x2a41   :  { %v3703_v21 = vpop.permute.xlu0 %3702 }
0x2a42   :  { %v3701_v2 = vpop.permute.xlu1 %3700  ;;  %v3714_v59 = vsel %vm252_vm2, %v3703_v21, 0 }
0x2a43   :  { %v3711_v48 = vsel %vm252_vm2, %v3701_v2, 0  ;;  %5970 = vmatprep.subr.msk.bf16.mxu1 %vm252_vm2, %v3701_v2 }
0x2a44   :  { %5847 = vmatpush3.bf16.xpose.msra.mxu1 %v3711_v48 }
0x2a45   :  { %5971 = vmatprep.subr.msk.bf16.mxu1 %vm252_vm2, %v3703_v21 }
0x2a4c   :  { %5849 = vmatpush3.bf16.xpose.msra.mxu1 %v3714_v59 }
0x2a53   :  { %5851 = vmatmul.mubr.msk.bf16.vlgmr.msra.gmra.mrb[76].mxu1 %vm252_vm2, %v7258_v40 }
0x2b26   :  { %v5852_v35 = vpop.f32.mrb[76].mxu1 }
0x2b27   :  { %v3750_v49 = vpop.f32.mrb[77].mxu1  ;;  %v3767_v36 = vmul.f32 0.35355338, %v5852_v35 }
0x2b28   :  { %v3765_v50 = vmul.f32 0.35355338, %v3750_v49  ;;  %v5853_v51 = vpop.f32.mrb[78].mxu1 }
0x2b29   :  { %v3753_v3 = vpop.f32.mrb[79].mxu1  ;;  %v3768_v55 = vmul.f32 0.35355338, %v5853_v51  ;;  %v3771_v62 = vadd.f32 %v7279_v9, %v3767_v36 }
0x2b2a   :  { %v3769_v58 = vadd.f32 %v7275_v52, %v3765_v50  ;;  %v3766_v56 = vmul.f32 0.35355338, %v3753_v3 }
0x2b2b   :  { %v3772_v63 = vadd.f32 %v7288_v19, %v3768_v55  ;;  %v3779_v0 = vsel %vm134_vm0, %v3771_v62, -inf }
0x2b2c   :  { %v3770_v60 = vadd.f32 %v7283_v57, %v3766_v56  ;;  %v3773_v61 = vsel %vm134_vm0, %v3769_v58, -inf }
0x2b2d   :  { %3774 = vmax.xlane.f32.xlu1 %v3773_v61  ;;  %v3782_v17 = vsel %vm134_vm0, %v3772_v63, -inf }
0x2b2e   :  { %v3776_v15 = vsel %vm134_vm0, %v3770_v60, -inf }
0x2b2f   :  { %3777 = vmax.xlane.f32.xlu0 %v3776_v15 }
0x2b31   :  { %3780 = vmax.xlane.f32.xlu1 %v3779_v0 }
0x2b33   :  { %3783 = vmax.xlane.f32.xlu0 %v3782_v17 }
0x2b42   :  { %3819 = vrot.lane.b32.xlu1 %v7260_v47, %s7606_s8 }
0x2bba   :  { %v3775_v23 = vpop.xlane.xlu1 %3774 }
0x2bbb   :  { %v3785_v14 = vsub.f32 %v3769_v58, %v3775_v23 }
0x2bbc   :  { %v3778_v5 = vpop.xlane.xlu0 %3777 }
0x2bbd   :  { %v3786_v54 = vsub.f32 %v3770_v60, %v3778_v5  ;;  %v3789_v33 = vmul.f32 1.442695, %v3785_v14 }
0x2bbe   :  { %v3781_v7 = vpop.xlane.xlu1 %3780 }
0x2bbf   :  { %v3787_v8 = vsub.f32 %v3771_v62, %v3781_v7  ;;  %v3791_v11 = vmul.f32 1.442695, %v3786_v54 }
0x2bc0   :  { %v3784_v32 = vpop.xlane.xlu0 %3783 }
0x2bc1   :  { %v3793_v34 = vmul.f32 1.442695, %v3787_v8  ;;  %v3788_v53 = vsub.f32 %v3772_v63, %v3784_v32 }
0x2bc2   :  { %v3820_v41 = vpop.permute.xlu1 %3819 }
0x2bc3   :  { %6355 = vpow2.f32 %v3793_v34  ;;  %v3795_v12 = vmul.f32 1.442695, %v3788_v53  ;;  %5854 = vmatprep.subr.bf16.mxu0 %v3820_v41 }
0x2bc4   :  { %6357 = vpow2.f32 %v3789_v33  ;;  %5855 = vmatpush3.bf16.msra.mxu0 %v3820_v41 }
0x2bc5   :  { %6359 = vpow2.f32 %v3795_v12 }
0x2bc6   :  { %6361 = vpow2.f32 %v3791_v11 }
0x2bcd   :  { %v6356_v22 = vpop.eup %6355 }
0x2bce   :  { %v6358_v13 = vpop.eup %6357  ;;  %v3803_v24 = vsel %vm134_vm0, %v6356_v22, 0.0 }
0x2bcf   :  { %v6360_v38 = vpop.eup %6359  ;;  %3804 = vadd.xlane.f32.xlu1 %v3803_v24  ;;  %v3797_v29 = vsel %vm134_vm0, %v6358_v13, 0.0 }
0x2bd0   :  { %v3806_v26 = vsel %vm134_vm0, %v6360_v38, 0.0  ;;  %v6362_v45 = vpop.eup %6361 }
0x2bd1   :  { %3807 = vadd.xlane.f32.xlu0 %v3806_v26  ;;  %v3800_v39 = vsel %vm134_vm0, %v6362_v45, 0.0 }
0x2bd3   :  { %3798 = vadd.xlane.f32.xlu1 %v3797_v29 }
0x2bd5   :  { %3801 = vadd.xlane.f32.xlu0 %v3800_v39 }
0x2be4   :  { %3884 = vrot.lane.b32.xlu1 %v7260_v47, %s7615_s16 }
0x2be8   :  { %3886 = vrot.lane.b32.xlu1 %v7258_v40, %s7615_s16  ;;  %s6499_s16 = smov 25  }
0x2beb   :  { %3821 = vrot.lane.b32.xlu0 %v7258_v40, %s7606_s8 }
0x2bec   :  { %3880 = vrot.lane.b32.xlu1 %v7260_v47, %s7616_s22 }
0x2bef   :  { %3882 = vrot.lane.b32.xlu0 %v7258_v40, %s7616_s22 }
0x2c5c   :  { %v3805_v30 = vpop.xlane.xlu1 %3804 }
0x2c5e   :  { %v3808_v31 = vpop.xlane.xlu0 %3807 }
0x2c5f   :  { %6363 = vrcp.f32 %v3808_v31 }
0x2c60   :  { %v3799_v37 = vpop.xlane.xlu1 %3798 }
0x2c61   :  { %6365 = vrcp.f32 %v3799_v37 }
0x2c62   :  { %6367 = vrcp.f32 %v3805_v30  ;;  %v3802_v44 = vpop.xlane.xlu0 %3801 }
0x2c63   :  { %6369 = vrcp.f32 %v3802_v44 }
0x2c64   :  { %v3885_v20 = vpop.permute.xlu1 %3884 }
0x2c65   :  { %v3895_v58 = vsel %vm252_vm2, %v3885_v20, 0 }
0x2c66   :  { %v3822_v46 = vpop.permute.xlu0 %3821 }
0x2c67   :  { %5856 = vmatprep.subr.bf16.mxu0 %v3822_v46 }
0x2c68   :  { %5857 = vmatpush3.bf16.msra.mxu0 %v3822_v46  ;;  %v3887_v35 = vpop.permute.xlu1 %3886 }
0x2c69   :  { %5972 = vmatprep.subr.msk.bf16.mxu0 %vm252_vm2, %v3885_v20  ;;  %v6364_v43 = vpop.eup %6363  ;;  %v3898_v56 = vsel %vm252_vm2, %v3887_v35, 0 }
0x2c6a   :  { %v3816_v59 = vmul.f32 %v6364_v43, %v6360_v38  ;;  %v3883_v62 = vpop.permute.xlu0 %3882 }
0x2c6b   :  { %v6366_v2 = vpop.eup %6365 }
0x2c6c   :  { %v6368_v48 = vpop.eup %6367  ;;  %v3813_v49 = vmul.f32 %v6366_v2, %v6358_v13  ;;  %v3881_v55 = vpop.permute.xlu1 %3880 }
0x2c6d   :  { %v6370_v21 = vpop.eup %6369  ;;  %v3815_v50 = vmul.f32 %v6368_v48, %v6356_v22 }
0x2c6e   :  { %v3814_v36 = vmul.f32 %v6370_v21, %v6362_v45 }
0x2c6f   :  { %v3818_v3 = vpack.c.bf16 %v3816_v59, %v3815_v50 }
0x2c70   :  { %v3817_v51 = vpack.c.bf16 %v3814_v36, %v3813_v49 }
0x2c72   :  { %5858 = vmatprep.mubr.msk.bf16.mxu0 %vm134_vm0, %v3817_v51 }
0x2c73   :  { %5859 = vmatmul.mubr.msk.bf16.vlgmr.msra.gmra.mrb[76].mxu0 %vm134_vm0, %v3818_v3 }
0x2c74   :  { %5863 = vmatpush3.bf16.xpose.msra.mxu0 %v3895_v58  ;;  %5866 = vmatprep.mubr.msk.bf16.mxu0 %vm252_vm2, %v3881_v55 }
0x2c75   :  { %5973 = vmatprep.subr.msk.bf16.mxu0 %vm252_vm2, %v3887_v35 }
0x2c7c   :  { %5865 = vmatpush3.bf16.xpose.msra.mxu0 %v3898_v56 }
0x2c83   :  { %5867 = vmatmul.mubr.msk.bf16.vlgmr.msra.gmra.mrb[80].mxu0 %vm252_vm2, %v3883_v62 }
0x2d46   :  { %v7318_v60 = vpop.f32.mrb[76].mxu0 }
0x2d47   :  { %v7320_v61 = vpop.f32.mrb[77].mxu0 }
0x2d48   :  { %v7322_v63 = vpop.f32.mrb[78].mxu0 }
0x2d49   :  { %v7324_v15 = vpop.f32.mrb[79].mxu0 }
0x2d56   :  { %v5868_v0 = vpop.f32.mrb[80].mxu0 }
0x2d57   :  { %v3951_v17 = vmul.f32 0.35355338, %v5868_v0  ;;  %v3934_v23 = vpop.f32.mrb[81].mxu0 }
0x2d58   :  { %v3949_v14 = vmul.f32 0.35355338, %v3934_v23  ;;  %v5869_v5 = vpop.f32.mrb[82].mxu0 }
0x2d59   :  { %v3955_v7 = vadd.f32 %v7279_v9, %v3951_v17  ;;  %v3937_v54 = vpop.f32.mrb[83].mxu0  ;;  %v3952_v32 = vmul.f32 0.35355338, %v5869_v5 }
0x2d5a   :  { %v3953_v8 = vadd.f32 %v7275_v52, %v3949_v14  ;;  %v3950_v33 = vmul.f32 0.35355338, %v3937_v54 }
0x2d5b   :  { %v3963_v34 = vsel %vm134_vm0, %v3955_v7, -inf  ;;  %v3956_v12 = vadd.f32 %v7288_v19, %v3952_v32 }
0x2d5c   :  { %v3954_v53 = vadd.f32 %v7283_v57, %v3950_v33  ;;  %3964 = vmax.xlane.f32.xlu0 %v3963_v34  ;;  %v3957_v41 = vsel %vm134_vm0, %v3953_v8, -inf }
0x2d5d   :  { %3958 = vmax.xlane.f32.xlu1 %v3957_v41  ;;  %v3966_v22 = vsel %vm134_vm0, %v3956_v12, -inf }
0x2d5e   :  { %v3960_v11 = vsel %vm134_vm0, %v3954_v53, -inf }
0x2d60   :  { %3961 = vmax.xlane.f32.xlu0 %v3960_v11 }
0x2d64   :  { %3967 = vmax.xlane.f32.xlu0 %v3966_v22 }
0x2d6e   :  { %4003 = vrot.lane.b32.xlu1 %v7260_v47, %s7609_s4 }
0x2de9   :  { %v3965_v13 = vpop.xlane.xlu0 %3964 }
0x2dea   :  { %v3971_v24 = vsub.f32 %v3955_v7, %v3965_v13  ;;  %v3959_v38 = vpop.xlane.xlu1 %3958 }
0x2deb   :  { %v3969_v26 = vsub.f32 %v3953_v8, %v3959_v38 }
0x2dec   :  { %v3977_v45 = vmul.f32 1.442695, %v3971_v24 }
0x2ded   :  { %v3973_v29 = vmul.f32 1.442695, %v3969_v26  ;;  %v3962_v39 = vpop.xlane.xlu0 %3961 }
0x2dee   :  { %6371 = vpow2.f32 %v3977_v45  ;;  %v4004_v30 = vpop.permute.xlu1 %4003  ;;  %v3970_v31 = vsub.f32 %v3954_v53, %v3962_v39 }
0x2def   :  { %5870 = vmatprep.subr.bf16.mxu1 %v4004_v30  ;;  %6373 = vpow2.f32 %v3973_v29 }
0x2df0   :  { %5871 = vmatpush3.bf16.msra.mxu1 %v4004_v30  ;;  %v3975_v46 = vmul.f32 1.442695, %v3970_v31 }
0x2df1   :  { %v3968_v37 = vpop.xlane.xlu0 %3967 }
0x2df2   :  { %v3972_v44 = vsub.f32 %v3956_v12, %v3968_v37 }
0x2df4   :  { %v3979_v20 = vmul.f32 1.442695, %v3972_v44 }
0x2df6   :  { %6375 = vpow2.f32 %v3979_v20 }
0x2df7   :  { %6377 = vpow2.f32 %v3975_v46 }
0x2df8   :  { %v6372_v43 = vpop.eup %6371 }
0x2df9   :  { %v3987_v2 = vsel %vm134_vm0, %v6372_v43, 0.0  ;;  %v6374_v48 = vpop.eup %6373 }
0x2dfa   :  { %3988 = vadd.xlane.f32.xlu1 %v3987_v2  ;;  %v3981_v21 = vsel %vm134_vm0, %v6374_v48, 0.0 }
0x2dfe   :  { %3982 = vadd.xlane.f32.xlu1 %v3981_v21 }
0x2e00   :  { %v6376_v59 = vpop.eup %6375 }
0x2e01   :  { %v3990_v35 = vsel %vm134_vm0, %v6376_v59, 0.0  ;;  %v6378_v49 = vpop.eup %6377 }
0x2e02   :  { %3991 = vadd.xlane.f32.xlu0 %v3990_v35  ;;  %v3984_v36 = vsel %vm134_vm0, %v6378_v49, 0.0 }
0x2e06   :  { %3985 = vadd.xlane.f32.xlu0 %v3984_v36 }
0x2e0f   :  { %4068 = vrot.lane.b32.xlu1 %v7260_v47, %s7617_s7 }
0x2e13   :  { %4070 = vrot.lane.b32.xlu1 %v7258_v40, %s7617_s7 }
0x2e17   :  { %4064 = vrot.lane.b32.xlu1 %v7260_v47, %s7618_s20 }
0x2e1c   :  { %4005 = vrot.lane.b32.xlu0 %v7258_v40, %s7609_s4  ;;  %s6497_s4 = smov 9  }
0x2e1d   :  { %s5149_s24 = sld [smem:[%s7551_s0 + %s6497_s4]]  }
0x2e20   :  { %4066 = vrot.lane.b32.xlu0 %v7258_v40, %s7618_s20  ;;  %s5165_s20 = sld [smem:[%s7551_s0 + %s6499_s16]]  }
0x2e87   :  { %v3989_v50 = vpop.xlane.xlu1 %3988 }
0x2e8b   :  { %v3983_v51 = vpop.xlane.xlu1 %3982 }
0x2e8f   :  { %v3992_v3 = vpop.xlane.xlu0 %3991  ;;  %v4069_v56 = vpop.permute.xlu1 %4068 }
0x2e90   :  { %6379 = vrcp.f32 %v3992_v3  ;;  %v4079_v34 = vsel %vm252_vm2, %v4069_v56, 0 }
0x2e91   :  { %6381 = vrcp.f32 %v3983_v51 }
0x2e92   :  { %6383 = vrcp.f32 %v3989_v50 }
0x2e93   :  { %v3986_v58 = vpop.xlane.xlu0 %3985  ;;  %v4071_v5 = vpop.permute.xlu1 %4070 }
0x2e94   :  { %6385 = vrcp.f32 %v3986_v58  ;;  %v4082_v41 = vsel %vm252_vm2, %v4071_v5, 0 }
0x2e97   :  { %v4006_v55 = vpop.permute.xlu0 %4005  ;;  %v4065_v53 = vpop.permute.xlu1 %4064 }
0x2e98   :  { %5872 = vmatprep.subr.bf16.mxu1 %v4006_v55 }
0x2e99   :  { %5873 = vmatpush3.bf16.msra.mxu1 %v4006_v55 }
0x2e9a   :  { %5974 = vmatprep.subr.msk.bf16.mxu1 %vm252_vm2, %v4069_v56  ;;  %v6380_v62 = vpop.eup %6379 }
0x2e9b   :  { %v6382_v0 = vpop.eup %6381  ;;  %v4000_v14 = vmul.f32 %v6380_v62, %v6376_v59  ;;  %v4067_v11 = vpop.permute.xlu0 %4066 }
0x2e9c   :  { %v6384_v17 = vpop.eup %6383  ;;  %v3997_v7 = vmul.f32 %v6382_v0, %v6374_v48 }
0x2e9d   :  { %v3999_v8 = vmul.f32 %v6384_v17, %v6372_v43 }
0x2e9e   :  { %v6386_v23 = vpop.eup %6385 }
0x2e9f   :  { %v3998_v54 = vmul.f32 %v6386_v23, %v6378_v49  ;;  %v4002_v32 = vpack.c.bf16 %v4000_v14, %v3999_v8 }
0x2ea1   :  { %v4001_v33 = vpack.c.bf16 %v3998_v54, %v3997_v7 }
0x2ea3   :  { %5874 = vmatprep.mubr.msk.bf16.mxu1 %vm134_vm0, %v4001_v33 }
0x2ea4   :  { %5875 = vmatmul.mubr.msk.bf16.vlgmr.msra.gmra.mrb[80].mxu1 %vm134_vm0, %v4002_v32 }
0x2ea5   :  { %5879 = vmatpush3.bf16.xpose.msra.mxu1 %v4079_v34  ;;  %5882 = vmatprep.mubr.msk.bf16.mxu1 %vm252_vm2, %v4065_v53 }
0x2ea6   :  { %5975 = vmatprep.subr.msk.bf16.mxu1 %vm252_vm2, %v4071_v5 }
0x2ead   :  { %5881 = vmatpush3.bf16.xpose.msra.mxu1 %v4082_v41 }
0x2eb4   :  { %5883 = vmatmul.mubr.msk.bf16.vlgmr.msra.gmra.mrb[84].mxu1 %vm252_vm2, %v4067_v11 }
0x2f77   :  { %v7358_v12 = vpop.f32.mrb[80].mxu1 }
0x2f78   :  { %v7360_v22 = vpop.f32.mrb[81].mxu1 }
0x2f79   :  { %v7362_v13 = vpop.f32.mrb[82].mxu1 }
0x2f7a   :  { %v6091_v24 = vpack.i.bf16 %v7362_v13, %v7358_v12  ;;  %v7366_v38 = vpop.f32.mrb[83].mxu1 }
0x2f7b   :  { %v6086_v26 = vpack.i.bf16 %v7366_v38, %v7360_v22 }
0x2f87   :  { %v5884_v45 = vpop.f32.mrb[84].mxu1 }
0x2f88   :  { %v4135_v29 = vmul.f32 0.35355338, %v5884_v45  ;;  %v4118_v39 = vpop.f32.mrb[85].mxu1 }
0x2f89   :  { %v4133_v30 = vmul.f32 0.35355338, %v4118_v39  ;;  %v5885_v31 = vpop.f32.mrb[86].mxu1 }
0x2f8a   :  { %v4139_v37 = vadd.f32 %v7279_v9, %v4135_v29  ;;  %v4121_v44 = vpop.f32.mrb[87].mxu1  ;;  %v4136_v43 = vmul.f32 0.35355338, %v5885_v31 }
0x2f8b   :  { %v4137_v46 = vadd.f32 %v7275_v52, %v4133_v30  ;;  %v4134_v20 = vmul.f32 0.35355338, %v4121_v44 }
0x2f8c   :  { %v4147_v2 = vsel %vm134_vm0, %v4139_v37, -inf  ;;  %v4140_v35 = vadd.f32 %v7288_v19, %v4136_v43 }
0x2f8d   :  { %v4138_v48 = vadd.f32 %v7283_v57, %v4134_v20  ;;  %4148 = vmax.xlane.f32.xlu0 %v4147_v2  ;;  %v4141_v21 = vsel %vm134_vm0, %v4137_v46, -inf }
0x2f8e   :  { %4142 = vmax.xlane.f32.xlu1 %v4141_v21  ;;  %v4150_v49 = vsel %vm134_vm0, %v4140_v35, -inf }
0x2f8f   :  { %v4144_v59 = vsel %vm134_vm0, %v4138_v48, -inf }
0x2f91   :  { %4145 = vmax.xlane.f32.xlu0 %v4144_v59 }
0x2f95   :  { %4151 = vmax.xlane.f32.xlu0 %v4150_v49 }
0x2f9f   :  { %4187 = vrot.lane.b32.xlu1 %v7260_v47, %s7607_s11 }
0x301a   :  { %v4149_v36 = vpop.xlane.xlu0 %4148 }
0x301b   :  { %v4155_v50 = vsub.f32 %v4139_v37, %v4149_v36  ;;  %v4143_v51 = vpop.xlane.xlu1 %4142 }
0x301c   :  { %v4153_v3 = vsub.f32 %v4137_v46, %v4143_v51 }
0x301d   :  { %v4161_v58 = vmul.f32 1.442695, %v4155_v50 }
0x301e   :  { %v4157_v55 = vmul.f32 1.442695, %v4153_v3  ;;  %v4146_v56 = vpop.xlane.xlu0 %4145 }
0x301f   :  { %6387 = vpow2.f32 %v4161_v58  ;;  %v4188_v62 = vpop.permute.xlu1 %4187  ;;  %v4154_v0 = vsub.f32 %v4138_v48, %v4146_v56 }
0x3020   :  { %5886 = vmatprep.subr.bf16.mxu0 %v4188_v62  ;;  %6389 = vpow2.f32 %v4157_v55 }
0x3021   :  { %5887 = vmatpush3.bf16.msra.mxu0 %v4188_v62  ;;  %v4159_v14 = vmul.f32 1.442695, %v4154_v0 }
0x3022   :  { %v4152_v17 = vpop.xlane.xlu0 %4151 }
0x3023   :  { %v4156_v23 = vsub.f32 %v4140_v35, %v4152_v17 }
0x3025   :  { %v4163_v5 = vmul.f32 1.442695, %v4156_v23 }
0x3027   :  { %6391 = vpow2.f32 %v4163_v5 }
0x3028   :  { %6393 = vpow2.f32 %v4159_v14 }
0x3029   :  { %v6388_v7 = vpop.eup %6387 }
0x302a   :  { %v4171_v54 = vsel %vm134_vm0, %v6388_v7, 0.0  ;;  %v6390_v8 = vpop.eup %6389 }
0x302b   :  { %4172 = vadd.xlane.f32.xlu1 %v4171_v54  ;;  %v4165_v33 = vsel %vm134_vm0, %v6390_v8, 0.0 }
0x302f   :  { %4166 = vadd.xlane.f32.xlu1 %v4165_v33 }
0x3031   :  { %v6392_v32 = vpop.eup %6391 }
0x3032   :  { %v4174_v34 = vsel %vm134_vm0, %v6392_v32, 0.0  ;;  %v6394_v53 = vpop.eup %6393 }
0x3033   :  { %4175 = vadd.xlane.f32.xlu0 %v4174_v34  ;;  %v4168_v41 = vsel %vm134_vm0, %v6394_v53, 0.0 }
0x3037   :  { %4169 = vadd.xlane.f32.xlu0 %v4168_v41 }
0x3040   :  { %4252 = vrot.lane.b32.xlu1 %v7260_v47, %s7605_s10 }
0x3044   :  { %4254 = vrot.lane.b32.xlu1 %v7258_v40, %s7605_s10 }
0x3048   :  { %4248 = vrot.lane.b32.xlu1 %v7260_v47, %s7619_s15 }
0x304d   :  { %4189 = vrot.lane.b32.xlu0 %v7258_v40, %s7607_s11 }
0x3051   :  { %4250 = vrot.lane.b32.xlu0 %v7258_v40, %s7619_s15  ;;  %s6500_s15 = smov 29  }
0x30b8   :  { %v4173_v11 = vpop.xlane.xlu1 %4172 }
0x30bc   :  { %v4167_v45 = vpop.xlane.xlu1 %4166 }
0x30c0   :  { %v4176_v29 = vpop.xlane.xlu0 %4175  ;;  %v4253_v31 = vpop.permute.xlu1 %4252 }
0x30c1   :  { %6395 = vrcp.f32 %v4176_v29  ;;  %v4263_v36 = vsel %vm252_vm2, %v4253_v31, 0 }
0x30c2   :  { %6397 = vrcp.f32 %v4167_v45 }
0x30c3   :  { %6399 = vrcp.f32 %v4173_v11 }
0x30c4   :  { %v4170_v39 = vpop.xlane.xlu0 %4169  ;;  %v4255_v2 = vpop.permute.xlu1 %4254 }
0x30c5   :  { %6401 = vrcp.f32 %v4170_v39  ;;  %v4266_v51 = vsel %vm252_vm2, %v4255_v2, 0 }
0x30c8   :  { %v4190_v30 = vpop.permute.xlu0 %4189  ;;  %v4249_v50 = vpop.permute.xlu1 %4248 }
0x30c9   :  { %5888 = vmatprep.subr.bf16.mxu0 %v4190_v30 }
0x30ca   :  { %5889 = vmatpush3.bf16.msra.mxu0 %v4190_v30 }
0x30cb   :  { %5976 = vmatprep.subr.msk.bf16.mxu0 %vm252_vm2, %v4253_v31  ;;  %v6396_v37 = vpop.eup %6395 }
0x30cc   :  { %v6398_v44 = vpop.eup %6397  ;;  %v4184_v43 = vmul.f32 %v6396_v37, %v6392_v32  ;;  %v4251_v3 = vpop.permute.xlu0 %4250 }
0x30cd   :  { %v6400_v46 = vpop.eup %6399  ;;  %v4181_v48 = vmul.f32 %v6398_v44, %v6390_v8 }
0x30ce   :  { %v4183_v59 = vmul.f32 %v6400_v46, %v6388_v7 }
0x30cf   :  { %v6402_v20 = vpop.eup %6401 }
0x30d0   :  { %v4182_v21 = vmul.f32 %v6402_v20, %v6394_v53  ;;  %v4186_v49 = vpack.c.bf16 %v4184_v43, %v4183_v59 }
0x30d2   :  { %v4185_v35 = vpack.c.bf16 %v4182_v21, %v4181_v48 }
0x30d4   :  { %5890 = vmatprep.mubr.msk.bf16.mxu0 %vm134_vm0, %v4185_v35 }
0x30d5   :  { %5891 = vmatmul.mubr.msk.bf16.vlgmr.msra.gmra.mrb[84].mxu0 %vm134_vm0, %v4186_v49 }
0x30d6   :  { %5895 = vmatpush3.bf16.xpose.msra.mxu0 %v4263_v36  ;;  %5898 = vmatprep.mubr.msk.bf16.mxu0 %vm252_vm2, %v4249_v50 }
0x30d7   :  { %5977 = vmatprep.subr.msk.bf16.mxu0 %vm252_vm2, %v4255_v2 }
0x30de   :  { %5897 = vmatpush3.bf16.xpose.msra.mxu0 %v4266_v51 }
0x30e5   :  { %5899 = vmatmul.mubr.msk.bf16.vlgmr.msra.gmra.mrb[88].mxu0 %vm252_vm2, %v4251_v3 }
0x31a8   :  { %v5892_v58 = vpop.f32.mrb[84].mxu0 }
0x31a9   :  { %v4233_v55 = vpop.f32.mrb[85].mxu0 }
0x31aa   :  { %v5893_v56 = vpop.f32.mrb[86].mxu0 }
0x31ab   :  { %v6101_v62 = vpack.i.bf16 %v5893_v56, %v5892_v58  ;;  %v4236_v0 = vpop.f32.mrb[87].mxu0 }
0x31ac   :  { %v6096_v17 = vpack.i.bf16 %v4236_v0, %v4233_v55 }
0x31b8   :  { %v5900_v23 = vpop.f32.mrb[88].mxu0 }
0x31b9   :  { %v4319_v14 = vmul.f32 0.35355338, %v5900_v23  ;;  %v4302_v5 = vpop.f32.mrb[89].mxu0 }
0x31ba   :  { %v4317_v7 = vmul.f32 0.35355338, %v4302_v5  ;;  %v5901_v54 = vpop.f32.mrb[90].mxu0  ;;  %v6155_v5 = vld [vmem:[%s6680_s6 + $0x10] sm:$0xff]  }
0x31bb   :  { %v4323_v8 = vadd.f32 %v7279_v9, %v4319_v14  ;;  %v4305_v33 = vpop.f32.mrb[91].mxu0  ;;  %v4320_v53 = vmul.f32 0.35355338, %v5901_v54 }
0x31bc   :  { %v4321_v32 = vadd.f32 %v7275_v52, %v4317_v7  ;;  %v4318_v34 = vmul.f32 0.35355338, %v4305_v33  ;;  %v6156_v7 = vld [vmem:[%s6680_s6 + $0x18] sm:$0xff]   ;;  %s6494_s6 = smov 127  }
0x31bd   :  { %v4331_v41 = vsel %vm134_vm0, %v4323_v8, -inf  ;;  %v4324_v39 = vadd.f32 %v7288_v19, %v4320_v53 }
0x31be   :  { %v4322_v11 = vadd.f32 %v7283_v57, %v4318_v34  ;;  %4332 = vmax.xlane.f32.xlu0 %v4331_v41  ;;  %v4325_v45 = vsel %vm134_vm0, %v4321_v32, -inf }
0x31bf   :  { %4326 = vmax.xlane.f32.xlu1 %v4325_v45  ;;  %v4334_v9 = vsel %vm134_vm0, %v4324_v39, -inf }
0x31c0   :  { %v4328_v29 = vsel %vm134_vm0, %v4322_v11, -inf }
0x31c2   :  { %4329 = vmax.xlane.f32.xlu0 %v4328_v29 }
0x31c6   :  { %4335 = vmax.xlane.f32.xlu0 %v4334_v9 }
0x324b   :  { %v4333_v30 = vpop.xlane.xlu0 %4332 }
0x324c   :  { %v4339_v52 = vsub.f32 %v4323_v8, %v4333_v30  ;;  %v4327_v31 = vpop.xlane.xlu1 %4326 }
0x324d   :  { %v4337_v37 = vsub.f32 %v4321_v32, %v4327_v31 }
0x324e   :  { %v4345_v44 = vmul.f32 1.442695, %v4339_v52 }
0x324f   :  { %v4341_v46 = vmul.f32 1.442695, %v4337_v37  ;;  %v4330_v20 = vpop.xlane.xlu0 %4329 }
0x3250   :  { %6403 = vpow2.f32 %v4345_v44  ;;  %v4338_v57 = vsub.f32 %v4322_v11, %v4330_v20 }
0x3251   :  { %6405 = vpow2.f32 %v4341_v46 }
0x3252   :  { %v4343_v48 = vmul.f32 1.442695, %v4338_v57 }
0x3253   :  { %v4336_v43 = vpop.xlane.xlu0 %4335 }
0x3254   :  { %v4340_v2 = vsub.f32 %v4324_v39, %v4336_v43 }
0x3256   :  { %v4347_v21 = vmul.f32 1.442695, %v4340_v2 }
0x3258   :  { %6407 = vpow2.f32 %v4347_v21 }
0x3259   :  { %6409 = vpow2.f32 %v4343_v48 }
0x325a   :  { %v6404_v19 = vpop.eup %6403 }
0x325b   :  { %v4355_v59 = vsel %vm134_vm0, %v6404_v19, 0.0  ;;  %v6406_v35 = vpop.eup %6405 }
0x325c   :  { %4356 = vadd.xlane.f32.xlu1 %v4355_v59  ;;  %v4349_v49 = vsel %vm134_vm0, %v6406_v35, 0.0 }
0x3260   :  { %4350 = vadd.xlane.f32.xlu1 %v4349_v49 }
0x3262   :  { %v6408_v36 = vpop.eup %6407 }
0x3263   :  { %v4358_v50 = vsel %vm134_vm0, %v6408_v36, 0.0  ;;  %v6410_v51 = vpop.eup %6409 }
0x3264   :  { %4359 = vadd.xlane.f32.xlu0 %v4358_v50  ;;  %v4352_v3 = vsel %vm134_vm0, %v6410_v51, 0.0 }
0x3268   :  { %4353 = vadd.xlane.f32.xlu0 %v4352_v3 }
0x3271   :  { %4371 = vrot.lane.b32.xlu1 %v7260_v47, %s7608_s12 }
0x3275   :  { %6087 = vrot.lane.b32.xlu1 %v6086_v26, %s7610_s18 }
0x3279   :  { %6092 = vrot.lane.b32.xlu1 %v6091_v24, %s7610_s18 }
0x327d   :  { %6097 = vrot.lane.b32.xlu1 %v6096_v17, %s7611_s23 }
0x327e   :  { %4373 = vrot.lane.b32.xlu0 %v7258_v40, %s7608_s12  ;;  %s7627_s12 = sld [smem:[#allocation2_spill]] }
0x3282   :  { %6102 = vrot.lane.b32.xlu0 %v6101_v62, %s7611_s23 }
0x32e9   :  { %v4357_v58 = vpop.xlane.xlu1 %4356 }
0x32ed   :  { %v4351_v55 = vpop.xlane.xlu1 %4350 }
0x32f1   :  { %v4372_v47 = vpop.permute.xlu1 %4371  ;;  %v4360_v56 = vpop.xlane.xlu0 %4359 }
0x32f2   :  { %5902 = vmatprep.subr.bf16.mxu1 %v4372_v47  ;;  %6411 = vrcp.f32 %v4360_v56 }
0x32f3   :  { %5903 = vmatpush3.bf16.msra.mxu1 %v4372_v47  ;;  %6413 = vrcp.f32 %v4351_v55  ;;  %v5342_v47 = vld [vmem:[%s6701_s3 + $0x1] ss:$0 sm:$0xff]  ;;  %s6496_s3 = smov 31  }
0x32f4   :  { %6415 = vrcp.f32 %v4357_v58  ;;  %s5171_s11 = sld [smem:[%s7551_s0 + %s6496_s3]]  }
0x32f5   :  { %v4354_v22 = vpop.xlane.xlu0 %4353  ;;  %v6088_v41 = vpop.permute.xlu1 %6087 }
0x32f6   :  { %6417 = vrcp.f32 %v4354_v22  ;;  %v6090_v29 = vunpack.i.h.bf16 %v6088_v41  ;;  %v6089_v39 = vunpack.i.l.bf16 %v6088_v41 }
0x32f8   :  { %v4481_v20 = vsel %vm252_vm2, %v7324_v15, %v6090_v29  ;;  %v4480_v57 = vsel %vm252_vm2, %v7320_v61, %v6089_v39 }
0x32f9   :  { %v4374_v12 = vpop.permute.xlu0 %4373  ;;  %v6093_v11 = vpop.permute.xlu1 %6092 }
0x32fa   :  { %5904 = vmatprep.subr.bf16.mxu1 %v4374_v12  ;;  %v6095_v30 = vunpack.i.h.bf16 %v6093_v11  ;;  %v6094_v52 = vunpack.i.l.bf16 %v6093_v11 }
0x32fb   :  { %5905 = vmatpush3.bf16.msra.mxu1 %v4374_v12 }
0x32fc   :  { %v6412_v13 = vpop.eup %6411  ;;  %5910 = vmatprep.subr.bf16.mxu1 %v6155_v5  ;;  %v4483_v2 = vsel %vm252_vm2, %v7322_v63, %v6095_v30  ;;  %v4482_v48 = vsel %vm252_vm2, %v7318_v60, %v6094_v52 }
0x32fd   :  { %v6414_v40 = vpop.eup %6413  ;;  %v4368_v26 = vmul.f32 %v6412_v13, %v6408_v36  ;;  %v6103_v45 = vpop.permute.xlu0 %6102 }
0x32fe   :  { %v6416_v24 = vpop.eup %6415  ;;  %v4365_v62 = vmul.f32 %v6414_v40, %v6406_v35  ;;  %v6098_v9 = vpop.permute.xlu1 %6097  ;;  %v6105_v31 = vunpack.i.h.bf16 %v6103_v45  ;;  %v6104_v37 = vunpack.i.l.bf16 %v6103_v45 }
0x32ff   :  { %v4367_v17 = vmul.f32 %v6416_v24, %v6404_v19  ;;  %v6100_v44 = vunpack.i.h.bf16 %v6098_v9  ;;  %v6099_v46 = vunpack.i.l.bf16 %v6098_v9 }
0x3300   :  { %v6418_v38 = vpop.eup %6417  ;;  %v4487_v35 = vsel %vm304_vm3, %v4483_v2, %v6105_v31  ;;  %v4486_v49 = vsel %vm304_vm3, %v4482_v48, %v6104_v37 }
0x3301   :  { %v4366_v0 = vmul.f32 %v6418_v38, %v6410_v51  ;;  %v4370_v14 = vpack.c.bf16 %v4368_v26, %v4367_v17  ;;  %v4484_v50 = vsel %vm304_vm3, %v4480_v57, %v6099_v46  ;;  %v4485_v61 = vsel %vm304_vm3, %v4481_v20, %v6100_v44  ;;  %v6157_v46 = vld [vmem:[%s6669_s19 + $0x10] sm:$0xff]   ;;  %v6158_v20 = vld [vmem:[%s6669_s19 + $0x18] sm:$0xff]   ;;  %s5170_s19 = sld [smem:[%s7551_s0 + %s6495_s13]]  }
0x3302   :  { %5918 = vmatprep.subr.bf16.mxu0 %v6157_v46 }
0x3303   :  { %v4369_v23 = vpack.c.bf16 %v4366_v0, %v4365_v62  ;;  %5919 = vmatpush3.bf16.msra.mxu0 %v6157_v46 }
0x3304   :  { %5920 = vmatprep.subr.bf16.mxu0 %v6158_v20 }
0x3305   :  { %5906 = vmatprep.mubr.msk.bf16.mxu1 %vm134_vm0, %v4369_v23 }
0x3306   :  { %5907 = vmatmul.mubr.msk.bf16.vlgmr.msra.gmra.mrb[88].mxu1 %vm134_vm0, %v4370_v14 }
0x3307   :  { %5911 = vmatpush3.bf16.msra.mxu1 %v6155_v5  ;;  %5921 = vmatpush3.bf16.msra.mxu0 %v6158_v20 }
0x3308   :  { %5912 = vmatprep.subr.bf16.mxu1 %v6156_v7  ;;  %5938 = vmatprep.subr.bf16.mxu0 %v6458_v18 }
0x330b   :  { %5913 = vmatpush3.bf16.msra.mxu1 %v6156_v7 }
0x33d9   :  { %v5908_v54 = vpop.f32.mrb[88].mxu1 }
0x33da   :  { %v4417_v8 = vpop.f32.mrb[89].mxu1 }
0x33db   :  { %v5909_v33 = vpop.f32.mrb[90].mxu1 }
0x33dc   :  { %v6111_v32 = vpack.i.bf16 %v5909_v33, %v5908_v54  ;;  %v4420_v34 = vpop.f32.mrb[91].mxu1 }
0x33dd   :  { %v6106_v53 = vpack.i.bf16 %v4420_v34, %v4417_v8 }
0x33de   :  { %6112 = vrot.lane.b32.xlu0 %v6111_v32, %s7612_s1 }
0x33df   :  { %6107 = vrot.lane.b32.xlu1 %v6106_v53, %s7612_s1 }
0x3450   :  { %v6113_v43 = vpop.permute.xlu0 %6112 }
0x3451   :  { %v6115_v21 = vunpack.i.h.bf16 %v6113_v43  ;;  %v6114_v19 = vunpack.i.l.bf16 %v6113_v43  ;;  %v6108_v59 = vpop.permute.xlu1 %6107 }
0x3452   :  { %v6110_v36 = vunpack.i.h.bf16 %v6108_v59  ;;  %v6109_v15 = vunpack.i.l.bf16 %v6108_v59 }
0x3453   :  { %v4490_v51 = vsel %vm778_vm4, %v4486_v49, %v6114_v19  ;;  %v4491_v63 = vsel %vm778_vm4, %v4487_v35, %v6115_v21 }
0x3454   :  { %v4493_v3 = vpack.c.bf16 %v4491_v63, %v4490_v51  ;;  %v4489_v60 = vsel %vm778_vm4, %v4485_v61, %v6110_v36  ;;  %v4488_v58 = vsel %vm778_vm4, %v4484_v50, %v6109_v15  ;;  %v5349_v63 = vld [vmem:[%s7620_s26 + $0x1] ss:$0 sm:$0xff] }
0x3455   :  { %v4492_v55 = vpack.c.bf16 %v4489_v60, %v4488_v58 }
0x3457   :  { %5914 = vmatprep.mubr.msk.bf16.mxu1 %vm134_vm0, %v4492_v55 }
0x3458   :  { %5915 = vmatmul.mubr.msk.bf16.vlgmr.msra.gmra.mrb[92].mxu1 %vm134_vm0, %v4493_v3 }
0x352b   :  { %v5916_v56 = vpop.f32.mrb[92].mxu1 }
0x352c   :  { %v4566_v22 = vadd.f32 %v5916_v56, %v5342_v47  ;;  %v4557_v12 = vpop.f32.mrb[93].mxu1  ;;  %v5350_v56 = vld [vmem:[%s7621_s28 + $0x1] ss:$0 sm:$0xff] }
0x352d   :  { %v4558_v13 = vadd.f32 %v5342_v47, %v4557_v12  ;;  %v5917_v40 = vpop.f32.mrb[94].mxu1 }
0x352e   :  { %v4574_v24 = vadd.f32 %v4566_v22, %v7250_v27  ;;  %v4560_v38 = vpop.f32.mrb[95].mxu1  ;;  %v4569_v0 = vadd.f32 %v5917_v40, %v5342_v47 }
0x352f   :  { %v4572_v26 = vadd.f32 %v4558_v13, %v7243_v42  ;;  %v4561_v62 = vadd.f32 %v5342_v47, %v4560_v38 }
0x3530   :  { %v4584_v17 = vsel %vm134_vm0, %v4574_v24, 0.0  ;;  %v4575_v7 = vadd.f32 %v4569_v0, %v7252_v28 }
0x3531   :  { %v4573_v23 = vadd.f32 %v4561_v62, %v7245_v25  ;;  %4585 = vadd.xlane.f32.xlu0 %v4584_v17  ;;  %v4578_v14 = vsel %vm134_vm0, %v4572_v26, 0.0 }
0x3532   :  { %4579 = vadd.xlane.f32.xlu1 %v4578_v14  ;;  %v4587_v27 = vsel %vm134_vm0, %v4575_v7, 0.0  ;;  %v6159_v14 = vld [vmem:[%s7622_s29 + $0x20] sm:$0xff]  }
0x3533   :  { %v4581_v5 = vsel %vm134_vm0, %v4573_v23, 0.0  ;;  %5926 = vmatprep.subr.bf16.mxu1 %v6159_v14 }
0x3534   :  { %5927 = vmatpush3.bf16.msra.mxu1 %v6159_v14 }
0x3535   :  { %4582 = vadd.xlane.f32.xlu0 %v4581_v5  ;;  %v6160_v5 = vld [vmem:[%s7622_s29 + $0x28] sm:$0xff]  }
0x3536   :  { %5928 = vmatprep.subr.bf16.mxu1 %v6160_v5 }
0x3538   :  { %5929 = vmatpush3.bf16.msra.mxu1 %v6160_v5 }
0x3539   :  { %4588 = vadd.xlane.f32.xlu0 %v4587_v27  ;;  %v6162_v27 = vld [vmem:[%s7622_s29 + $0x38] sm:$0xff]  }
0x35be   :  { %v4586_v54 = vpop.xlane.xlu0 %4585 }
0x35bf   :  { %v4592_v42 = vmul.f32 0.03125, %v4586_v54  ;;  %v4580_v8 = vpop.xlane.xlu1 %4579  ;;  %v5356_v54 = vld [vmem:[%s7623_s30 + $0x1] ss:$0 sm:$0xff]  ;;  %s6501_s30 = smov 27  }
0x35c0   :  { %v4590_v33 = vmul.f32 0.03125, %v4580_v8 }
0x35c1   :  { %v4596_v32 = vsub.f32 %v4574_v24, %v4592_v42 }
0x35c2   :  { %v4594_v34 = vsub.f32 %v4572_v26, %v4590_v33  ;;  %v4583_v53 = vpop.xlane.xlu0 %4582 }
0x35c3   :  { %v4591_v25 = vmul.f32 0.03125, %v4583_v53  ;;  %v4600_v28 = vmul.f32 %v4596_v32, %v4596_v32 }
0x35c4   :  { %v4598_v41 = vmul.f32 %v4594_v34, %v4594_v34 }
0x35c5   :  { %v4595_v11 = vsub.f32 %v4573_v23, %v4591_v25  ;;  %v4608_v31 = vsel %vm134_vm0, %v4600_v28, 0.0 }
0x35c6   :  { %v4589_v45 = vpop.xlane.xlu0 %4588  ;;  %v4602_v29 = vsel %vm134_vm0, %v4598_v41, 0.0 }
0x35c7   :  { %v4593_v39 = vmul.f32 0.03125, %v4589_v45  ;;  %4603 = vadd.xlane.f32.xlu1 %v4602_v29  ;;  %v4599_v9 = vmul.f32 %v4595_v11, %v4595_v11 }
0x35c9   :  { %v4597_v30 = vsub.f32 %v4575_v7, %v4593_v39  ;;  %v4605_v52 = vsel %vm134_vm0, %v4599_v9, 0.0  ;;  %v6161_v7 = vld [vmem:[%s7622_s29 + $0x30] sm:$0xff]   ;;  %s5169_s29 = sld [smem:[%s7551_s0 + %s6500_s15]]  }
0x35ca   :  { %4606 = vadd.xlane.f32.xlu0 %v4605_v52  ;;  %5930 = vmatprep.subr.bf16.mxu1 %v6161_v7 }
0x35cb   :  { %4609 = vadd.xlane.f32.xlu1 %v4608_v31  ;;  %v4601_v37 = vmul.f32 %v4597_v30, %v4597_v30  ;;  %5931 = vmatpush3.bf16.msra.mxu1 %v6161_v7 }
0x35cc   :  { %5932 = vmatprep.subr.bf16.mxu1 %v6162_v27 }
0x35cd   :  { %v4611_v44 = vsel %vm134_vm0, %v4601_v37, 0.0 }
0x35ce   :  { %4612 = vadd.xlane.f32.xlu0 %v4611_v44 }
0x35cf   :  { %5933 = vmatpush3.bf16.msra.mxu1 %v6162_v27 }
0x35d0   :  { %5954 = vmatprep.subr.bf16.mxu1 %v6458_v18 }
0x3654   :  { %v4604_v57 = vpop.xlane.xlu1 %4603 }
0x3655   :  { %v4614_v43 = vmul.f32 0.03125, %v4604_v57 }
0x3657   :  { %v4618_v2 = vadd.f32 1e-12, %v4614_v43  ;;  %v4607_v48 = vpop.xlane.xlu0 %4606 }
0x3658   :  { %v4615_v21 = vmul.f32 0.03125, %v4607_v48  ;;  %v4610_v19 = vpop.xlane.xlu1 %4609 }
0x3659   :  { %6419 = vrsqrt.f32 %v4618_v2  ;;  %v4616_v59 = vmul.f32 0.03125, %v4610_v19 }
0x365a   :  { %v4619_v35 = vadd.f32 1e-12, %v4615_v21 }
0x365b   :  { %v4620_v49 = vadd.f32 1e-12, %v4616_v59  ;;  %v4613_v36 = vpop.xlane.xlu0 %4612 }
0x365c   :  { %6421 = vrsqrt.f32 %v4619_v35  ;;  %v4617_v15 = vmul.f32 0.03125, %v4613_v36 }
0x365d   :  { %6423 = vrsqrt.f32 %v4620_v49 }
0x365e   :  { %v4621_v50 = vadd.f32 1e-12, %v4617_v15 }
0x3660   :  { %6425 = vrsqrt.f32 %v4621_v50 }
0x3663   :  { %v6420_v61 = vpop.eup %6419 }
0x3664   :  { %v4626_v51 = vmul.f32 %v6420_v61, %v4594_v34 }
0x3666   :  { %v6422_v3 = vpop.eup %6421  ;;  %v4636_v55 = vmul.f32 %v5349_v63, %v4626_v51 }
0x3667   :  { %v6424_v60 = vpop.eup %6423  ;;  %v4627_v58 = vmul.f32 %v6422_v3, %v4595_v11 }
0x3668   :  { %v4628_v47 = vmul.f32 %v6424_v60, %v4596_v32  ;;  %v7470_v24 = vadd.f32 %v5350_v56, %v4636_v55 }
0x3669   :  { %v4637_v22 = vmul.f32 %v5349_v63, %v4627_v58 }
0x366a   :  { %v6426_v12 = vpop.eup %6425  ;;  %v4638_v13 = vmul.f32 %v5349_v63, %v4628_v47 }
0x366b   :  { %v4629_v40 = vmul.f32 %v6426_v12, %v4597_v30  ;;  %v7472_v38 = vadd.f32 %v5350_v56, %v4637_v22 }
0x366c   :  { %v7477_v0 = vadd.f32 %v5350_v56, %v4638_v13 }
0x366d   :  { %v4639_v26 = vmul.f32 %v5349_v63, %v4629_v40  ;;  %v4650_v62 = vpack.c.bf16 %v7472_v38, %v7470_v24 }
0x366f   :  { %5922 = vmatprep.mubr.msk.bf16.mxu0 %vm134_vm0, %v4650_v62  ;;  %v7479_v17 = vadd.f32 %v5350_v56, %v4639_v26  ;;  %v5370_v26 = vld [vmem:[%s7624_s27 + $0x1] ss:$0 sm:$0xff] }
0x3671   :  { %v4651_v23 = vpack.c.bf16 %v7479_v17, %v7477_v0 }
0x3673   :  { %5923 = vmatmul.mubr.msk.bf16.vlgmr.msra.gmra.mrb[92].mxu0 %vm134_vm0, %v4651_v23 }
0x3674   :  { %5942 = vmatprep.mubr.msk.bf16.mxu0 %vm6460_vm1, %v6458_v18 }
0x3746   :  { %v5924_v42 = vpop.f32.mrb[92].mxu0 }
0x3747   :  { %v4724_v8 = vadd.f32 %v5924_v42, %v5356_v54  ;;  %v4715_v33 = vpop.f32.mrb[93].mxu0 }
0x3748   :  { %v4716_v32 = vadd.f32 %v5356_v54, %v4715_v33  ;;  %v5925_v34 = vpop.f32.mrb[94].mxu0 }
0x3749   :  { %v4732_v53 = vmul.f32 %v4724_v8, %v4724_v8  ;;  %v4727_v25 = vadd.f32 %v5925_v34, %v5356_v54  ;;  %v4718_v41 = vpop.f32.mrb[95].mxu0 }
0x374a   :  { %v4730_v11 = vmul.f32 %v4716_v32, %v4716_v32  ;;  %v4719_v45 = vadd.f32 %v5356_v54, %v4718_v41 }
0x374b   :  { %v4736_v29 = vmul.f32 %v4732_v53, %v4724_v8  ;;  %v4733_v28 = vmul.f32 %v4727_v25, %v4727_v25 }
0x374c   :  { %v4734_v39 = vmul.f32 %v4730_v11, %v4716_v32  ;;  %v4731_v9 = vmul.f32 %v4719_v45, %v4719_v45 }
0x374d   :  { %v4740_v30 = vmul.f32 0.044715, %v4736_v29  ;;  %v4737_v52 = vmul.f32 %v4733_v28, %v4727_v25 }
0x374e   :  { %v4738_v31 = vmul.f32 0.044715, %v4734_v39  ;;  %v4735_v37 = vmul.f32 %v4731_v9, %v4719_v45 }
0x374f   :  { %v4744_v44 = vadd.f32 %v4740_v30, %v4724_v8  ;;  %v4741_v46 = vmul.f32 0.044715, %v4737_v52 }
0x3750   :  { %v4742_v20 = vadd.f32 %v4738_v31, %v4716_v32  ;;  %v4739_v57 = vmul.f32 0.044715, %v4735_v37 }
0x3751   :  { %v4748_v43 = vmul.f32 0.7978846, %v4744_v44  ;;  %v4745_v2 = vadd.f32 %v4741_v46, %v4727_v25 }
0x3752   :  { %v4746_v48 = vmul.f32 0.7978846, %v4742_v20  ;;  %v4743_v21 = vadd.f32 %v4739_v57, %v4719_v45 }
0x3753   :  { %6427 = vtanh.f32 %v4748_v43  ;;  %v4749_v19 = vmul.f32 0.7978846, %v4745_v2 }
0x3754   :  { %6429 = vtanh.f32 %v4746_v48  ;;  %v4747_v59 = vmul.f32 0.7978846, %v4743_v21 }
0x3755   :  { %6431 = vtanh.f32 %v4749_v19 }
0x3756   :  { %6433 = vtanh.f32 %v4747_v59 }
0x375d   :  { %v6428_v35 = vpop.eup %6427 }
0x375e   :  { %v6430_v49 = vpop.eup %6429  ;;  %v4756_v36 = vadd.f32 1.0, %v6428_v35 }
0x375f   :  { %v6432_v15 = vpop.eup %6431  ;;  %v4754_v50 = vadd.f32 1.0, %v6430_v49 }
0x3760   :  { %v6434_v61 = vpop.eup %6433  ;;  %v4760_v51 = vmul.f32 0.5, %v4756_v36  ;;  %v4757_v63 = vadd.f32 1.0, %v6432_v15 }
0x3761   :  { %v4758_v3 = vmul.f32 0.5, %v4754_v50  ;;  %v4755_v60 = vadd.f32 1.0, %v6434_v61 }
0x3762   :  { %v4761_v58 = vmul.f32 0.5, %v4757_v63  ;;  %v4764_v47 = vmul.f32 %v4760_v51, %v4724_v8 }
0x3763   :  { %v4759_v55 = vmul.f32 0.5, %v4755_v60  ;;  %v4762_v22 = vmul.f32 %v4758_v3, %v4716_v32 }
0x3764   :  { %v4765_v56 = vmul.f32 %v4761_v58, %v4727_v25  ;;  %v5379_v58 = vld [vmem:[%s7625_s2 + $0x1] ss:$0 sm:$0xff] }
0x3765   :  { %v4763_v12 = vmul.f32 %v4759_v55, %v4719_v45 }
0x3766   :  { %v4767_v13 = vpack.c.bf16 %v4765_v56, %v4764_v47 }
0x3767   :  { %v4766_v40 = vpack.c.bf16 %v4763_v12, %v4762_v22 }
0x3769   :  { %5934 = vmatprep.mubr.msk.bf16.mxu1 %vm1021_vm5, %v4766_v40 }
0x376a   :  { %5935 = vmatmul.mubr.msk.bf16.vlgmr.msra.gmra.mrb[96].mxu1 %vm1021_vm5, %v4767_v13  ;;  %v5380_v13 = vld [vmem:[%s7626_s14 + $0x1] ss:$0 sm:$0xff]  ;;  %s5167_s14 = sld [smem:[%s7551_s0 + %s6501_s30]]  }
0x376b   :  { %5958 = vmatprep.mubr.msk.bf16.mxu1 %vm6460_vm1, %v6458_v18 }
0x383d   :  { %v5936_v62 = vpop.f32.mrb[96].mxu1 }
0x383e   :  { %v4847_v23 = vpop.f32.mrb[97].mxu1  ;;  %v4856_v14 = vadd.f32 %v5936_v62, %v5370_v26 }
0x383f   :  { %v4848_v5 = vadd.f32 %v5370_v26, %v4847_v23  ;;  %v5937_v7 = vpop.f32.mrb[98].mxu1 }
0x3840   :  { %v4850_v27 = vpop.f32.mrb[99].mxu1  ;;  %v4859_v42 = vadd.f32 %v5937_v7, %v5370_v26  ;;  %v4864_v33 = vadd.f32 %v4856_v14, %v7477_v0 }
0x3841   :  { %v4862_v54 = vadd.f32 %v4848_v5, %v7470_v24  ;;  %v4851_v8 = vadd.f32 %v5370_v26, %v4850_v27 }
0x3842   :  { %v4865_v53 = vadd.f32 %v4859_v42, %v7479_v17  ;;  %v4874_v41 = vsel %vm134_vm0, %v4864_v33, 0.0 }
0x3843   :  { %v4863_v32 = vadd.f32 %v4851_v8, %v7472_v38  ;;  %v4868_v34 = vsel %vm134_vm0, %v4862_v54, 0.0 }
0x3844   :  { %4869 = vadd.xlane.f32.xlu1 %v4868_v34  ;;  %v4877_v11 = vsel %vm134_vm0, %v4865_v53, 0.0  ;;  %v6163_v34 = vld [vmem:[%s7627_s12] sm:$0xff]  }
0x3845   :  { %v4871_v25 = vsel %vm134_vm0, %v4863_v32, 0.0 }
0x3846   :  { %4872 = vadd.xlane.f32.xlu0 %v4871_v25 }
0x3848   :  { %4875 = vadd.xlane.f32.xlu1 %v4874_v41 }
0x384a   :  { %4878 = vadd.xlane.f32.xlu0 %v4877_v11 }
0x38d1   :  { %v4870_v24 = vpop.xlane.xlu1 %4869 }
0x38d2   :  { %v4880_v45 = vmul.f32 0.03125, %v4870_v24 }
0x38d3   :  { %v4873_v29 = vpop.xlane.xlu0 %4872 }
0x38d4   :  { %v4884_v0 = vsub.f32 %v4862_v54, %v4880_v45  ;;  %v4881_v28 = vmul.f32 0.03125, %v4873_v29  ;;  %v6165_v29 = vld [vmem:[%s5166_s21] sm:$0xff]  }
0x38d5   :  { %v4876_v38 = vpop.xlane.xlu1 %4875  ;;  %5955 = vmatpush3.bf16.msra.mxu1 %v6165_v29 }
0x38d6   :  { %v4885_v39 = vsub.f32 %v4863_v32, %v4881_v28  ;;  %v4882_v9 = vmul.f32 0.03125, %v4876_v38  ;;  %v4888_v30 = vmul.f32 %v4884_v0, %v4884_v0  ;;  %v4940_v32 = vld [vmem:[%s5149_s24] sm:$0x3]  ;;  %5956 = vmatprep.subr.bf16.mxu1 %v6458_v18 }
0x38d7   :  { %v4879_v52 = vpop.xlane.xlu0 %4878  ;;  %v5382_v28 = vld [vmem:[%s5165_s20] ss:$0 sm:$0xff] }
0x38d8   :  { %v4886_v17 = vsub.f32 %v4864_v33, %v4882_v9  ;;  %v4883_v31 = vmul.f32 0.03125, %v4879_v52  ;;  %v4892_v37 = vsel %vm134_vm0, %v4888_v30, 0.0  ;;  %v4889_v44 = vmul.f32 %v4885_v39, %v4885_v39 }
0x38d9   :  { %4893 = vadd.xlane.f32.xlu1 %v4892_v37 }
0x38da   :  { %v4887_v46 = vsub.f32 %v4865_v53, %v4883_v31  ;;  %v4895_v20 = vsel %vm134_vm0, %v4889_v44, 0.0  ;;  %v4890_v57 = vmul.f32 %v4886_v17, %v4886_v17  ;;  %v6164_v53 = vld [vmem:[%s7627_s12 + $0x8] sm:$0xff]   ;;  %v5386_v31 = vld [vmem:[%s5167_s14] ss:$0 sm:$0xff] }
0x38db   :  { %4896 = vadd.xlane.f32.xlu0 %v4895_v20 }
0x38dc   :  { %v4898_v43 = vsel %vm134_vm0, %v4890_v57, 0.0  ;;  %v4891_v2 = vmul.f32 %v4887_v46, %v4887_v46 }
0x38dd   :  { %4899 = vadd.xlane.f32.xlu1 %v4898_v43 }
0x38de   :  { %v4901_v48 = vsel %vm134_vm0, %v4891_v2, 0.0 }
0x38df   :  { %4902 = vadd.xlane.f32.xlu0 %v4901_v48 }
0x38ee   :  { %6117 = vrot.lane.b32.xlu1 %v6116_v6, %s6494_s6 }
0x38f2   :  { %2179 = vrot.lane.b32.xlu1 %v6949_v16, %s6494_s6 }
0x38f5   :  { %2177 = vrot.lane.b32.xlu0 %v6946_v10, %s6494_s6  ;;  %s6502_s6 = smov 28  }
0x38f6   :  { %s5168_s1 = sld [smem:[%s7551_s0 + %s6502_s6]]  }
0x3966   :  { %v4894_v21 = vpop.xlane.xlu1 %4893 }
0x3967   :  { %v4904_v19 = vmul.f32 0.03125, %v4894_v21 }
0x3968   :  { %v4897_v59 = vpop.xlane.xlu0 %4896 }
0x3969   :  { %v4908_v35 = vadd.f32 1e-12, %v4904_v19  ;;  %v4905_v49 = vmul.f32 0.03125, %v4897_v59 }
0x396a   :  { %v4900_v1 = vpop.xlane.xlu1 %4899 }
0x396b   :  { %6435 = vrsqrt.f32 %v4908_v35  ;;  %v4909_v4 = vadd.f32 1e-12, %v4905_v49  ;;  %v4906_v6 = vmul.f32 0.03125, %v4900_v1 }
0x396c   :  { %v4903_v10 = vpop.xlane.xlu0 %4902 }
0x396d   :  { %6437 = vrsqrt.f32 %v4909_v4  ;;  %v4910_v16 = vadd.f32 1e-12, %v4906_v6  ;;  %v4907_v36 = vmul.f32 0.03125, %v4903_v10 }
0x396e   :  { %v6118_v15 = vpop.permute.xlu1 %6117 }
0x396f   :  { %6439 = vrsqrt.f32 %v4910_v16  ;;  %v4911_v50 = vadd.f32 1e-12, %v4907_v36  ;;  %v6120_v61 = vunpack.i.h.bf16 %v6118_v15  ;;  %v6119_v51 = vunpack.i.l.bf16 %v6118_v15 }
0x3970   :  { %v2178_v63 = vpop.permute.xlu0 %2177 }
0x3971   :  { %6441 = vrsqrt.f32 %v4911_v50  ;;  %2173 = vst.msk [vmem:[%s5170_s19] sm:$0xff] %vm2172_vm8, %v6119_v51  ;;  %2174 = vst.msk [vmem:[%s5170_s19 + $0x8] sm:$0xff] %vm2172_vm8, %v6120_v61 }
0x3972   :  { %2183 = vst.msk [vmem:[%s5171_s11] sm:$0xff] %vm2172_vm8, %v2178_v63  ;;  %v2180_v3 = vpop.permute.xlu1 %2179 }
0x3973   :  { %2184 = vst.msk [vmem:[%s5171_s11 + $0x8] sm:$0xff] %vm2172_vm8, %v2180_v3 }
0x3975   :  { %v6436_v60 = vpop.eup %6435 }
0x3976   :  { %v4916_v55 = vmul.f32 %v6436_v60, %v4884_v0  ;;  %v6166_v0 = vld [vmem:[%s5166_s21 + $0x8] sm:$0xff]  }
0x3977   :  { %v6438_v47 = vpop.eup %6437  ;;  %5957 = vmatpush3.bf16.msra.mxu1 %v6166_v0 }
0x3978   :  { %v4917_v56 = vmul.f32 %v6438_v47, %v4885_v39  ;;  %v4926_v22 = vmul.f32 %v5379_v58, %v4916_v55 }
0x3979   :  { %v6440_v12 = vpop.eup %6439 }
0x397a   :  { %v4918_v40 = vmul.f32 %v6440_v12, %v4886_v17  ;;  %v4927_v26 = vmul.f32 %v5379_v58, %v4917_v56  ;;  %v4936_v14 = vadd.f32 %v5380_v13, %v4926_v22 }
0x397b   :  { %v6442_v62 = vpop.eup %6441 }
0x397c   :  { %v4919_v23 = vmul.f32 %v6442_v62, %v4887_v46  ;;  %v4937_v5 = vadd.f32 %v5380_v13, %v4927_v26  ;;  %v4928_v7 = vmul.f32 %v5379_v58, %v4918_v40 }
0x397e   :  { %v4941_v27 = vpack.c.bf16 %v4937_v5, %v4936_v14  ;;  %v4929_v54 = vmul.f32 %v5379_v58, %v4919_v23  ;;  %v4938_v42 = vadd.f32 %v5380_v13, %v4928_v7 }
0x3980   :  { %5939 = vmatpush3.bf16.msra.mxu0 %v4941_v27  ;;  %v4939_v8 = vadd.f32 %v5380_v13, %v4929_v54 }
0x3981   :  { %5940 = vmatprep.subr.bf16.mxu0 %v6458_v18 }
0x3982   :  { %v4942_v33 = vpack.c.bf16 %v4939_v8, %v4938_v42 }
0x3984   :  { %5941 = vmatpush3.bf16.msra.mxu0 %v4942_v33 }
0x3985   :  { %5946 = vmatprep.subr.bf16.mxu0 %v6458_v18 }
0x3987   :  { %5943 = vmatmul.mubr.msk.bf16.vlgmr.msra.gmra.mrb[96].mxu0 %vm134_vm0, %v4940_v32 }
0x3988   :  { %5947 = vmatpush3.bf16.msra.mxu0 %v6163_v34  ;;  %5950 = vmatprep.mubr.msk.bf16.mxu0 %vm6460_vm1, %v6458_v18 }
0x3989   :  { %5948 = vmatprep.subr.bf16.mxu0 %v6458_v18 }
0x398c   :  { %5949 = vmatpush3.bf16.msra.mxu0 %v6164_v53 }
0x3a5a   :  { %v4980_v25 = vpop.f32.mrb[96].mxu0 }
0x3a5b   :  { %v4986_v41 = vpack.c.bf16 %v4980_v25, %v4980_v25  ;;  %v5944_v11 = vpop.f32.mrb[97].mxu0 }
0x3a5c   :  { %v4983_v24 = vpop.f32.mrb[98].mxu0 }
0x3a5d   :  { %v5945_v45 = vpop.f32.mrb[99].mxu0  ;;  %5951 = vmatmul.mubr.msk.bf16.vlgmr.msra.gmra.mrb[100].mxu0 %vm134_vm0, %v4986_v41 }
0x3b30   :  { %v5047_v38 = vpop.f32.mrb[100].mxu0 }
0x3b31   :  { %v5048_v39 = vadd.f32 %v5382_v28, %v5047_v38  ;;  %v5952_v9 = vpop.f32.mrb[101].mxu0 }
0x3b32   :  { %v5050_v30 = vpop.f32.mrb[102].mxu0 }
0x3b33   :  { %6443 = vtanh.f32 %v5048_v39  ;;  %v5953_v52 = vpop.f32.mrb[103].mxu0 }
0x3b3d   :  { %v6444_v18 = vpop.eup %6443 }
0x3b3e   :  { %5055 = vst.msk [vmem:[%s5169_s29] sm:$0xf] %vm5054_vm9, %v6444_v18  ;;  %v5056_v17 = vpack.c.bf16 %v6444_v18, %v6444_v18 }
0x3b40   :  { %5959 = vmatmul.mubr.msk.bf16.vlgmr.msra.gmra.mrb[100].mxu1 %vm134_vm0, %v5056_v17 }
0x3c13   :  { %v5117_v37 = vpop.f32.mrb[100].mxu1 }
0x3c14   :  { %v5118_v44 = vadd.f32 %v5386_v31, %v5117_v37  ;;  %v5960_v46 = vpop.f32.mrb[101].mxu1 }
0x3c15   :  { %v5120_v20 = vpop.f32.mrb[102].mxu1 }
0x3c16   :  { %5124 = vst.msk [vmem:[%s5168_s1] sm:$0xf] %vm5123_vm10, %v5118_v44  ;;  %v5961_v57 = vpop.f32.mrb[103].mxu1 }

</bundles_post_ra>
